<compile_context>
chip_gen: v7x
topology: tpu7x:2x2x1
jax: 0.10.0
libtpu: 0.0.40
codegen_flags: <defaults>
</compile_context>

<pallas_src>
import math

import numpy as np

import jax
import jax.numpy as jnp
from jax.experimental import pallas as pl
from jax.experimental.pallas import tpu as pltpu


# MXU operand dtype (per review): bf16 operands, f32 accumulation.  Padded
# activations stay f32 (avoids bf16 sublane-pair repacking on the tap shifts).
MXU_DTYPE = jnp.bfloat16

# Raise the scoped VMEM limit explicitly (v5e default is 16 MiB); tiny at demo
# sizes, required headroom before scaling to real WRN widths.
_VMEM_LIMIT_BYTES = 32 * 1024 * 1024

# 3x3 tap offsets, row-major (dy, dx) -> (oy, ox) = (dy-1, dx-1); must match the
# OIHW -> (kh, kw, cin, cout) -> (9*cin, cout) weight reshape in the plan.
_TAPS = tuple((dy - 1, dx - 1) for dy in range(3) for dx in range(3))


def _round_up(v, m):
    return ((v + m - 1) // m) * m


def _needs_col_mask(stride, wout, win, ox):
    """Static: does tap column-offset `ox` ever read outside [0, win)?"""
    if ox == 0:
        return False
    if ox > 0:
        return stride * (wout - 1) + ox >= win
    return True  # ox < 0: output column 0 always reads out of the image


# -----------------------------------------------------------------------------
# Feature probes (run once): keep the kernel runnable on any backend revision.
# -----------------------------------------------------------------------------
_FEATURE_CACHE = {}


def _feature(name, probe):
    if name not in _FEATURE_CACHE:
        _FEATURE_CACHE[name] = probe()
    return _FEATURE_CACHE[name]


def _supports_strided_ds():
    """Can this lowering do sublane-strided VMEM reads: ref[pl.ds(s, n, stride=k), :]?"""
    try:
        def k(x_ref, o_ref):
            o_ref[...] = x_ref[pl.ds(1, 8, stride=2), :]

        x = jnp.arange(24 * 8, dtype=jnp.float32).reshape(24, 8)
        y = pl.pallas_call(
            k, out_shape=jax.ShapeDtypeStruct((8, 8), jnp.float32))(x)
        jax.block_until_ready(y)
        return bool(jnp.allclose(y, x[1:17:2]))
    except Exception:
        return False


def _supports_buffered_one():
    """Can constant BlockSpecs be single-buffered via pipeline_mode=pl.Buffered(1)?"""
    try:
        def k(x_ref, o_ref):
            o_ref[...] = x_ref[...] + 1.0

        x = jnp.zeros((8, 128), jnp.float32)
        y = pl.pallas_call(
            k,
            out_shape=jax.ShapeDtypeStruct((8, 128), jnp.float32),
            grid=(2,),
            in_specs=[pl.BlockSpec((8, 128), lambda i: (0, 0),
                                   pipeline_mode=pl.Buffered(1))],
            out_specs=pl.BlockSpec((8, 128), lambda i: (0, 0)),
        )(x)
        jax.block_until_ready(y)
        return bool(jnp.allclose(y, 1.0))
    except Exception:
        return False


# -----------------------------------------------------------------------------
# Fused BasicBlock kernel (one static specialization per block configuration).
# -----------------------------------------------------------------------------
def _make_block_kernel(cfg):
    H, W, Ho, Wo = cfg["H"], cfg["W"], cfg["Ho"], cfg["Wo"]
    cin, cout = cfg["cin"], cfg["cout"]
    stride, equal, abr = cfg["stride"], cfg["equal"], cfg["abr"]
    alpha = cfg["alpha"]
    p0_1, p0_2 = cfg["pad1"], cfg["pad2"]
    use_strided = cfg["use_strided"]
    has_sel = (stride != 1) and not use_strided      # one-hot fallback path
    has_ws = not equal
    M, Mo = H * W, Ho * Wo

    def lrelu(v):
        return jnp.where(v >= 0, v, alpha * v)

    def mxu(a, b):
        return jnp.dot(a.astype(MXU_DTYPE), b.astype(MXU_DTYPE),
                       preferred_element_type=jnp.float32)

    def col_index(n_rows, w_row):
        # column index j of each flattened patch row (j = row % w_row);
        # power-of-two fast path avoids the integer remainder.
        r = jax.lax.broadcasted_iota(jnp.int32, (n_rows, 1), 0)
        if w_row & (w_row - 1) == 0:
            return r & (w_row - 1)
        return r % w_row

    def fill_pad(pad_ref, src, p0, m, c):
        # Interior is fully overwritten every grid step; only the halo rows
        # must be zero.  Re-zero the halos every step (cheap: 2*p0 rows) —
        # scratch is per-core under megacore "parallel" sharding, so gating on
        # pl.when(program_id == 0) could leave one core's halo uninitialized.
        zeros = jnp.zeros((p0, c), jnp.float32)
        pad_ref[0:p0, :] = zeros
        pad_ref[p0 + m:p0 + m + p0, :] = zeros
        pad_ref[p0:p0 + m, :] = src

    def build_patches_s1(pad_ref, patch_ref, h, w, c, p0):
        # stride-1 3x3 im2col: 9 statically shifted row-slices of the padded
        # activation.  The horizontal-wrap 0/1 mask is folded into each tap
        # store (no second full-size masked tensor); vertical out-of-image taps
        # read exact zeros from the halo.  Stores cast f32 -> bf16 (MXU dtype).
        m = h * w
        j = col_index(m, w)
        for k, (oy, ox) in enumerate(_TAPS):
            d = oy * w + ox
            sl = pad_ref[p0 + d:p0 + d + m, :]
            if _needs_col_mask(1, w, w, ox):
                valid = (j + ox >= 0) & (j + ox < w)
                sl = sl * valid.astype(jnp.float32)
            patch_ref[:, k * c:(k + 1) * c] = sl.astype(patch_ref.dtype)

    def build_patches_strided(pad_ref, patch_ref, c, p0):
        # stride-s 3x3 im2col built only at the Mo output rows: one sublane-
        # strided read of the padded activation per (output row, tap).  No full
        # stride-1 conv + one-hot subsample matmul.
        j = col_index(Wo, Wo)
        for k, (oy, ox) in enumerate(_TAPS):
            mask = None
            if _needs_col_mask(stride, Wo, W, ox):
                src = stride * j + ox
                mask = ((src >= 0) & (src < W)).astype(jnp.float32)
            for io in range(Ho):
                start = p0 + (stride * io + oy) * W + ox
                sl = pad_ref[pl.ds(start, Wo, stride=stride), :]
                if mask is not None:
                    sl = sl * mask
                patch_ref[io * Wo:(io + 1) * Wo, k * c:(k + 1) * c] = (
                    sl.astype(patch_ref.dtype))

    def kernel(*refs):
        it = iter(refs)
        x_ref = next(it)
        s1_ref, b1_ref, w1_ref = next(it), next(it), next(it)
        s2_ref, b2_ref, w2_ref = next(it), next(it), next(it)
        sel_ref = next(it) if has_sel else None
        ws_ref = next(it) if has_ws else None
        y_ref = next(it)
        pad1_ref, p1_ref, pad2_ref, p2_ref = (next(it), next(it),
                                              next(it), next(it))
        sbase_ref = next(it) if use_strided else None

        x = x_ref[...]                                    # (M, cin) f32
        xa = lrelu(x * s1_ref[...] + b1_ref[...])         # BN1 + LeakyReLU

        # WRN BasicBlock branch structure (matches the PyTorch reference).
        # Note: when not equal, the shortcut input equals conv1's input.
        conv1_in = x if ((not equal) and (not abr)) else xa

        # conv1: 3x3, pad 1, stride `stride` — 9 taps folded into one
        # (rows, 9*cin) @ (9*cin, cout) MXU contraction, f32 accumulation.
        fill_pad(pad1_ref, conv1_in, p0_1, M, cin)
        if use_strided:
            build_patches_strided(pad1_ref, p1_ref, cin, p0_1)
        else:
            build_patches_s1(pad1_ref, p1_ref, H, W, cin, p0_1)
        h = mxu(p1_ref[...], w1_ref[...])                 # (M or Mo, cout)
        if has_sel:                                       # fallback stride path
            h = mxu(sel_ref[...], h)                      # (Mo, cout)

        a2 = lrelu(h * s2_ref[...] + b2_ref[...])         # BN2 + LeakyReLU
        # TODO(synk): dropout with dropRate > 0 not implemented (identity).

        # conv2: 3x3, stride 1, pad 1 over (Ho, Wo).
        fill_pad(pad2_ref, a2, p0_2, Mo, cout)
        build_patches_s1(pad2_ref, p2_ref, Ho, Wo, cout, p0_2)
        o = mxu(p2_ref[...], w2_ref[...])                 # (Mo, cout)

        # Shortcut / residual, fused in-kernel (no HBM round trip).
        if equal:
            res = x                                       # identity (M == Mo)
        else:
            if use_strided:
                # Gather the strided 1x1-conv input rows straight from pad1
                # (conv1_in == shortcut input on every non-equal branch).
                for io in range(Ho):
                    sbase_ref[io * Wo:(io + 1) * Wo, :] = pad1_ref[
                        pl.ds(p0_1 + stride * io * W, Wo, stride=stride), :
                    ].astype(sbase_ref.dtype)
                base = sbase_ref[...]
            elif has_sel:
                base = mxu(sel_ref[...], conv1_in)        # one-hot stride
            else:
                base = conv1_in
            res = mxu(base, ws_ref[...])                  # (Mo, cout)

        y_ref[...] = (o + res).astype(y_ref.dtype)

    return kernel, has_sel, has_ws


# -----------------------------------------------------------------------------
# Static per-config constants (only the one-hot stride matrix, fallback path).
# -----------------------------------------------------------------------------
def _stride_sel(h, w, stride, ho, wo):
    sel = np.zeros((ho * wo, h * w), np.float32)
    for i in range(ho):
        for j in range(wo):
            sel[i * wo + j, (i * stride) * w + (j * stride)] = 1.0
    return jnp.asarray(sel)


# -----------------------------------------------------------------------------
# Deterministic parameter construction (shapes match the nn.Module __init__).
# -----------------------------------------------------------------------------
def _fold_bn(key, c, eps=1e-5):
    k1, k2, k3, k4 = jax.random.split(key, 4)
    gamma = jax.random.uniform(k1, (c,), minval=0.5, maxval=1.5, dtype=jnp.float32)
    beta = 0.1 * jax.random.normal(k2, (c,), dtype=jnp.float32)
    mean = 0.1 * jax.random.normal(k3, (c,), dtype=jnp.float32)
    var = jax.random.uniform(k4, (c,), minval=0.5, maxval=1.5, dtype=jnp.float32)
    scale = gamma / jnp.sqrt(var + eps)
    shift = beta - mean * scale
    return scale, shift


def _conv_weight(key, cout, cin, k):
    fan_in = cin * k * k
    return jax.random.normal(key, (cout, cin, k, k), dtype=jnp.float32) / math.sqrt(fan_in)


def init_basic_block(key, in_planes, out_planes, stride, act_before_res):
    ks = jax.random.split(key, 5)
    equal = in_planes == out_planes
    params = {
        "equal": equal,
        "stride": stride,
        "act_before_res": act_before_res,
        "bn1": _fold_bn(ks[0], in_planes),
        "conv1": _conv_weight(ks[1], out_planes, in_planes, 3),
        "bn2": _fold_bn(ks[2], out_planes),
        "conv2": _conv_weight(ks[3], out_planes, out_planes, 3),
    }
    if not equal:
        params["shortcut"] = _conv_weight(ks[4], out_planes, in_planes, 1)
    return params


def init_network_block(key, nb_layers, in_planes, out_planes, stride, act_before_res):
    keys = jax.random.split(key, nb_layers)
    return [
        init_basic_block(keys[i],
                         in_planes if i == 0 else out_planes,
                         out_planes,
                         stride if i == 0 else 1,
                         act_before_res)
        for i in range(nb_layers)
    ]


def build_block_plan(p, H, W, alpha):
    cout, cin = p["conv1"].shape[0], p["conv1"].shape[1]
    stride = p["stride"]
    Ho = (H - 1) // stride + 1          # 3x3, pad=1
    Wo = (W - 1) // stride + 1
    assert stride == 1 or not p["equal"]
    use_strided = (stride != 1) and _feature("strided_ds", _supports_strided_ds)
    cfg = dict(H=H, W=W, Ho=Ho, Wo=Wo, cin=cin, cout=cout, stride=stride,
               equal=p["equal"], abr=p["act_before_res"], alpha=alpha,
               pad1=_round_up(W + 1, 8), pad2=_round_up(Wo + 1, 8),
               use_strided=use_strided)
    kernel, has_sel, has_ws = _make_block_kernel(cfg)
    plan = {
        "cfg": cfg, "kernel": kernel, "has_sel": has_sel, "has_ws": has_ws,
        # Weights reshaped + cast ONCE at plan-build time (no per-call work):
        # OIHW -> (kh, kw, cin, cout) -> (9*cin, cout), stored in MXU dtype.
        "w1": jnp.transpose(p["conv1"], (2, 3, 1, 0)).reshape(9 * cin, cout).astype(MXU_DTYPE),
        "w2": jnp.transpose(p["conv2"], (2, 3, 1, 0)).reshape(9 * cout, cout).astype(MXU_DTYPE),
        "s1": p["bn1"][0].reshape(1, cin), "b1": p["bn1"][1].reshape(1, cin),
        "s2": p["bn2"][0].reshape(1, cout), "b2": p["bn2"][1].reshape(1, cout),
    }
    if has_sel:                         # only when strided reads are unsupported
        plan["sel"] = _stride_sel(H, W, stride, Ho, Wo).astype(MXU_DTYPE)
    if has_ws:
        plan["ws"] = jnp.transpose(p["shortcut"].reshape(cout, cin), (1, 0)).astype(MXU_DTYPE)
    return plan


def build_network_plans(params_list, H, W, alpha):
    plans = []
    for p in params_list:
        plan = build_block_plan(p, H, W, alpha)
        plans.append(plan)
        H, W = plan["cfg"]["Ho"], plan["cfg"]["Wo"]
    return plans


# -----------------------------------------------------------------------------
# Forward pass: one fused pallas_call per BasicBlock, grid over batch.
# -----------------------------------------------------------------------------
def basic_block_apply(x2d, plan):
    cfg = plan["cfg"]
    n = x2d.shape[0]
    M, Mo = cfg["H"] * cfg["W"], cfg["Ho"] * cfg["Wo"]
    cin, cout = cfg["cin"], cfg["cout"]
    p1_rows = Mo if cfg["use_strided"] else M
    buffered_one = _feature("buffered_one", _supports_buffered_one)

    def const_spec(a):
        # Per-block constants map to the same block every grid step, so they
        # are fetched once; single-buffer them when supported so the default
        # 2-deep pipelining does not double their VMEM footprint.
        if buffered_one:
            return pl.BlockSpec(a.shape, lambda i: (0, 0),
                                pipeline_mode=pl.Buffered(1))
        return pl.BlockSpec(a.shape, lambda i: (0, 0))

    inputs = [x2d, plan["s1"], plan["b1"], plan["w1"],
              plan["s2"], plan["b2"], plan["w2"]]
    in_specs = [pl.BlockSpec((None, M, cin), lambda i: (i, 0, 0))]
    in_specs += [const_spec(a) for a in inputs[1:]]
    if plan["has_sel"]:
        inputs.append(plan["sel"])
        in_specs.append(const_spec(plan["sel"]))
    if plan["has_ws"]:
        inputs.append(plan["ws"])
        in_specs.append(const_spec(plan["ws"]))

    scratch = [
        pltpu.VMEM((M + 2 * cfg["pad1"], cin), jnp.float32),     # padded act 1 (f32)
        pltpu.VMEM((p1_rows, 9 * cin), MXU_DTYPE),               # patches 1 (bf16)
        pltpu.VMEM((Mo + 2 * cfg["pad2"], cout), jnp.float32),   # padded act 2 (f32)
        pltpu.VMEM((Mo, 9 * cout), MXU_DTYPE),                   # patches 2 (bf16)
    ]
    if cfg["use_strided"]:
        scratch.append(pltpu.VMEM((Mo, cin), MXU_DTYPE))         # strided shortcut base

    return pl.pallas_call(
        plan["kernel"],
        out_shape=jax.ShapeDtypeStruct((n, Mo, cout), x2d.dtype),
        grid=(n,),
        in_specs=in_specs,
        out_specs=pl.BlockSpec((None, Mo, cout), lambda i: (i, 0, 0)),
        scratch_shapes=scratch,
        # batch axis "parallel": shards across the 2 TensorCores on v7x.
        compiler_params=pltpu.CompilerParams(
            dimension_semantics=("parallel",),
            vmem_limit_bytes=_VMEM_LIMIT_BYTES),
    )(*inputs)


def network_block_forward(x_nchw, plans):
    # layout: accept PyTorch NCHW, run kernels on (N, H*W, C), return NCHW.
    n, c, h, w = x_nchw.shape
    x = jnp.transpose(x_nchw, (0, 2, 3, 1)).reshape(n, h * w, c)
    for plan in plans:
        x = basic_block_apply(x, plan)
    cfg = plans[-1]["cfg"]
    y = x.reshape(n, cfg["Ho"], cfg["Wo"], cfg["cout"])
    return jnp.transpose(y, (0, 3, 1, 2))


# -----------------------------------------------------------------------------
# Pure-JAX f32 reference (for correctness check only).
# -----------------------------------------------------------------------------
def _conv_ref(x, w_oihw, stride, pad):
    return jax.lax.conv_general_dilated(
        x, jnp.transpose(w_oihw, (2, 3, 1, 0)),
        window_strides=(stride, stride),
        padding=[(pad, pad), (pad, pad)],
        dimension_numbers=("NHWC", "HWIO", "NHWC"))


def _bn_lrelu_ref(x, scale, shift, alpha):
    y = x * scale + shift
    return jnp.where(y >= 0, y, alpha * y)


def network_block_ref(x_nchw, params_list, leaky_rate=0.01):
    x = jnp.transpose(x_nchw, (0, 2, 3, 1))
    for p in params_list:
        equal, stride = p["equal"], p["stride"]
        s1, b1 = p["bn1"]
        s2, b2 = p["bn2"]
        if (not equal) and p["act_before_res"]:
            x = _bn_lrelu_ref(x, s1, b1, leaky_rate)
            out = x
        else:
            out = _bn_lrelu_ref(x, s1, b1, leaky_rate)
        h = _conv_ref(out if equal else x, p["conv1"], stride, 1)
        h = _bn_lrelu_ref(h, s2, b2, leaky_rate)
        res = x if equal else _conv_ref(x, p["shortcut"], stride, 0)
        x = _conv_ref(h, p["conv2"], 1, 1) + res
    return jnp.transpose(x, (0, 3, 1, 2))


if __name__ == "__main__":
    key = jax.random.PRNGKey(0)
    k_x, k_p = jax.random.split(key)

    # NetworkBlock(nb_layers=2, in_planes=4, out_planes=8, block=BasicBlock,
    #              stride=2, dropRate=0.0, leakyRate=0.01, actBeforeRes=True)
    nb_layers, in_planes, out_planes, stride = 2, 4, 8, 2
    leaky_rate = 0.01
    H = W = 16

    x_nchw = jax.random.normal(k_x, (2, in_planes, H, W), dtype=jnp.float32)
    params = init_network_block(k_p, nb_layers, in_planes, out_planes, stride,
                                act_before_res=True)
    plans = build_network_plans(params, H, W, leaky_rate)

    y = network_block_forward(x_nchw, plans)
    y = jax.block_until_ready(y)

    y_ref = network_block_ref(x_nchw, params, leaky_rate)
    assert y.shape == (2, out_planes, 8, 8), y.shape
    max_err = float(jnp.max(jnp.abs(y - y_ref)))
    # bf16 MXU operands vs. the f32 reference: tolerance relaxed accordingly.
    tol = 5e-2 if MXU_DTYPE == jnp.bfloat16 else 1e-3
    assert jnp.allclose(y, y_ref, rtol=tol, atol=tol), max_err

    print("KERNEL_OK")
</pallas_src>

<mosaic_0001>
module attributes {stable_mosaic.version = 11 : i64} {
  func.func @k(%arg0: memref<24x8xf32, #tpu.memory_space<vmem>>, %arg1: memref<8x8xf32, #tpu.memory_space<vmem>>) attributes {dimension_semantics = [], scalar_prefetch = 0 : i64, scratch_operands = 0 : i64, tpu.core_type = #tpu.core_type<tc>} {
    %c1 = arith.constant 1 : index
    %c0 = arith.constant 0 : index
    %0 = tpu.strided_load %arg0[%c1, %c0] {strides = array<i32: 2, 1>} : memref<24x8xf32, #tpu.memory_space<vmem>>, vector<8x8xf32>
    %c0_0 = arith.constant 0 : index
    %c0_1 = arith.constant 0 : index
    %1 = vector.load %arg1[%c0_0, %c0_1] : memref<8x8xf32, #tpu.memory_space<vmem>>, vector<8x8xf32>
    tpu.vector_store %arg1[%c0_0, %c0_1], %0 {strides = array<i32>} : memref<8x8xf32, #tpu.memory_space<vmem>>, vector<8x8xf32>,
    return
  }
}

module attributes {stable_mosaic.version = 11 : i64} {
  func.func @k(%arg0: i32, %arg1: memref<8x128xf32, #tpu.memory_space<vmem>>, %arg2: memref<8x128xf32, #tpu.memory_space<vmem>>) attributes {dimension_semantics = [#tpu.dimension_semantics<arbitrary>], iteration_bounds = array<i64: 2>, scalar_prefetch = 0 : i64, scratch_operands = 0 : i64, tpu.core_type = #tpu.core_type<tc>, window_params = [{pipeline_mode = #tpu.pipeline_mode<synchronous>, transform_indices = @transform_0, window_bounds = array<i64: 8, 128>}, {pipeline_mode = #tpu.pipeline_mode<synchronous>, transform_indices = @transform_1, window_bounds = array<i64: 8, 128>}]} {
    %c0 = arith.constant 0 : index
    %c0_0 = arith.constant 0 : index
    %0 = vector.load %arg1[%c0, %c0_0] : memref<8x128xf32, #tpu.memory_space<vmem>>, vector<8x128xf32>
    %cst = arith.constant 1.000000e+00 : f32
    %1 = vector.broadcast %cst : f32 to vector<8x128xf32>
    %2 = arith.addf %0, %1 : vector<8x128xf32>
    %c0_1 = arith.constant 0 : index
    %c0_2 = arith.constant 0 : index
    %3 = vector.load %arg2[%c0_1, %c0_2] : memref<8x128xf32, #tpu.memory_space<vmem>>, vector<8x128xf32>
    tpu.vector_store %arg2[%c0_1, %c0_2], %2 {strides = array<i32>} : memref<8x128xf32, #tpu.memory_space<vmem>>, vector<8x128xf32>,
    return
  }
  func.func @transform_0(%arg0: i32) -> (i32, i32) {
    %c0_i32 = arith.constant 0 : i32
    %c0_i32_0 = arith.constant 0 : i32
    %c0_i32_1 = arith.constant 0 : i32
    return %c0_i32, %c0_i32_0 : i32, i32
  }
  func.func @transform_1(%arg0: i32) -> (i32, i32) {
    %c0_i32 = arith.constant 0 : i32
    %c0_i32_0 = arith.constant 0 : i32
    %c0_i32_1 = arith.constant 0 : i32
    return %c0_i32, %c0_i32_0 : i32, i32
  }
}

module attributes {stable_mosaic.version = 11 : i64} {
  func.func @kernel(%arg0: i32, %arg1: memref<1x256x4xf32, #tpu.memory_space<vmem>>, %arg2: memref<1x4xf32, #tpu.memory_space<vmem>>, %arg3: memref<1x4xf32, #tpu.memory_space<vmem>>, %arg4: memref<36x8xbf16, #tpu.memory_space<vmem>>, %arg5: memref<1x8xf32, #tpu.memory_space<vmem>>, %arg6: memref<1x8xf32, #tpu.memory_space<vmem>>, %arg7: memref<72x8xbf16, #tpu.memory_space<vmem>>, %arg8: memref<64x256xbf16, #tpu.memory_space<vmem>>, %arg9: memref<4x8xbf16, #tpu.memory_space<vmem>>, %arg10: memref<1x64x8xf32, #tpu.memory_space<vmem>>, %arg11: memref<304x4xf32, #tpu.memory_space<vmem>>, %arg12: memref<256x36xbf16, #tpu.memory_space<vmem>>, %arg13: memref<96x8xf32, #tpu.memory_space<vmem>>, %arg14: memref<64x72xbf16, #tpu.memory_space<vmem>>) attributes {dimension_semantics = [#tpu.dimension_semantics<parallel>], iteration_bounds = array<i64: 2>, scalar_prefetch = 0 : i64, scratch_operands = 4 : i64, tpu.core_type = #tpu.core_type<tc>, window_params = [{transform_indices = @transform_0, window_bounds = array<i64: 1, 256, 4>}, {pipeline_mode = #tpu.pipeline_mode<synchronous>, transform_indices = @transform_1, window_bounds = array<i64: 1, 4>}, {pipeline_mode = #tpu.pipeline_mode<synchronous>, transform_indices = @transform_2, window_bounds = array<i64: 1, 4>}, {pipeline_mode = #tpu.pipeline_mode<synchronous>, transform_indices = @transform_3, window_bounds = array<i64: 36, 8>}, {pipeline_mode = #tpu.pipeline_mode<synchronous>, transform_indices = @transform_4, window_bounds = array<i64: 1, 8>}, {pipeline_mode = #tpu.pipeline_mode<synchronous>, transform_indices = @transform_5, window_bounds = array<i64: 1, 8>}, {pipeline_mode = #tpu.pipeline_mode<synchronous>, transform_indices = @transform_6, window_bounds = array<i64: 72, 8>}, {pipeline_mode = #tpu.pipeline_mode<synchronous>, transform_indices = @transform_7, window_bounds = array<i64: 64, 256>}, {pipeline_mode = #tpu.pipeline_mode<synchronous>, transform_indices = @transform_8, window_bounds = array<i64: 4, 8>}, {transform_indices = @transform_9, window_bounds = array<i64: 1, 64, 8>}]} {
    %c0 = arith.constant 0 : index
    %c0_0 = arith.constant 0 : index
    %c0_1 = arith.constant 0 : index
    %0 = vector.load %arg1[%c0, %c0_0, %c0_1] : memref<1x256x4xf32, #tpu.memory_space<vmem>>, vector<1x256x4xf32>
    %1 = vector.shape_cast %0 : vector<1x256x4xf32> to vector<256x4xf32>
    %c0_2 = arith.constant 0 : index
    %c0_3 = arith.constant 0 : index
    %2 = vector.load %arg2[%c0_2, %c0_3] : memref<1x4xf32, #tpu.memory_space<vmem>>, vector<1x4xf32>
    %3 = vector.broadcast %2 : vector<1x4xf32> to vector<256x4xf32>
    %4 = arith.mulf %1, %3 : vector<256x4xf32>
    %c0_4 = arith.constant 0 : index
    %c0_5 = arith.constant 0 : index
    %5 = vector.load %arg3[%c0_4, %c0_5] : memref<1x4xf32, #tpu.memory_space<vmem>>, vector<1x4xf32>
    %6 = vector.broadcast %5 : vector<1x4xf32> to vector<256x4xf32>
    %7 = arith.addf %4, %6 : vector<256x4xf32>
    %cst = arith.constant 0.000000e+00 : f32
    %8 = vector.broadcast %cst : f32 to vector<256x4xf32>
    %9 = arith.cmpf oge, %7, %8 : vector<256x4xf32>
    %cst_6 = arith.constant 0.00999999977 : f32
    %10 = vector.broadcast %cst_6 : f32 to vector<256x4xf32>
    %11 = arith.mulf %10, %7 : vector<256x4xf32>
    %12 = arith.select %9, %7, %11 : vector<256x4xi1>, vector<256x4xf32>
    %cst_7 = arith.constant 0.000000e+00 : f32
    %13 = vector.broadcast %cst_7 : f32 to vector<24x4xf32>
    %c0_8 = arith.constant 0 : index
    %c0_9 = arith.constant 0 : index
    %14 = vector.load %arg11[%c0_8, %c0_9] : memref<304x4xf32, #tpu.memory_space<vmem>>, vector<24x4xf32>
    tpu.vector_store %arg11[%c0_8, %c0_9], %13 {strides = array<i32>} : memref<304x4xf32, #tpu.memory_space<vmem>>, vector<24x4xf32>,
    %c280 = arith.constant 280 : index
    %c0_10 = arith.constant 0 : index
    %15 = vector.load %arg11[%c280, %c0_10] : memref<304x4xf32, #tpu.memory_space<vmem>>, vector<24x4xf32>
    tpu.vector_store %arg11[%c280, %c0_10], %13 {strides = array<i32>} : memref<304x4xf32, #tpu.memory_space<vmem>>, vector<24x4xf32>,
    %c24 = arith.constant 24 : index
    %c0_11 = arith.constant 0 : index
    %16 = vector.load %arg11[%c24, %c0_11] : memref<304x4xf32, #tpu.memory_space<vmem>>, vector<256x4xf32>
    tpu.vector_store %arg11[%c24, %c0_11], %12 {strides = array<i32>} : memref<304x4xf32, #tpu.memory_space<vmem>>, vector<256x4xf32>,
    %17 = tpu.iota {dimensions = array<i32: 0>} : vector<256x1xi32>
    %c15_i32 = arith.constant 15 : i32
    %18 = vector.broadcast %c15_i32 : i32 to vector<256x1xi32>
    %19 = arith.andi %17, %18 : vector<256x1xi32>
    %c7 = arith.constant 7 : index
    %c0_12 = arith.constant 0 : index
    %20 = vector.load %arg11[%c7, %c0_12] : memref<304x4xf32, #tpu.memory_space<vmem>>, vector<256x4xf32>
    %c-1_i32 = arith.constant -1 : i32
    %21 = vector.broadcast %c-1_i32 : i32 to vector<256x1xi32>
    %22 = arith.addi %19, %21 : vector<256x1xi32>
    %c0_i32 = arith.constant 0 : i32
    %23 = vector.broadcast %c0_i32 : i32 to vector<256x1xi32>
    %24 = arith.cmpi sge, %22, %23 : vector<256x1xi32>
    %c-1_i32_13 = arith.constant -1 : i32
    %25 = vector.broadcast %c-1_i32_13 : i32 to vector<256x1xi32>
    %26 = arith.addi %19, %25 : vector<256x1xi32>
    %c16_i32 = arith.constant 16 : i32
    %27 = vector.broadcast %c16_i32 : i32 to vector<256x1xi32>
    %28 = arith.cmpi slt, %26, %27 : vector<256x1xi32>
    %29 = arith.andi %24, %28 : vector<256x1xi1>
    %30 = arith.extui %29 : vector<256x1xi1> to vector<256x1xi32>
    %31 = arith.sitofp %30 : vector<256x1xi32> to vector<256x1xf32>
    %32 = vector.broadcast %31 : vector<256x1xf32> to vector<256x4xf32>
    %33 = arith.mulf %20, %32 : vector<256x4xf32>
    %34 = arith.truncf %33 : vector<256x4xf32> to vector<256x4xbf16>
    %c0_14 = arith.constant 0 : index
    %c0_15 = arith.constant 0 : index
    %35 = vector.load %arg12[%c0_14, %c0_15] : memref<256x36xbf16, #tpu.memory_space<vmem>>, vector<256x4xbf16>
    tpu.vector_store %arg12[%c0_14, %c0_15], %34 {strides = array<i32>} : memref<256x36xbf16, #tpu.memory_space<vmem>>, vector<256x4xbf16>,
    %c8 = arith.constant 8 : index
    %c0_16 = arith.constant 0 : index
    %36 = vector.load %arg11[%c8, %c0_16] : memref<304x4xf32, #tpu.memory_space<vmem>>, vector<256x4xf32>
    %37 = arith.truncf %36 : vector<256x4xf32> to vector<256x4xbf16>
    %c0_17 = arith.constant 0 : index
    %c4 = arith.constant 4 : index
    %38 = vector.load %arg12[%c0_17, %c4] : memref<256x36xbf16, #tpu.memory_space<vmem>>, vector<256x4xbf16>
    tpu.vector_store %arg12[%c0_17, %c4], %37 {strides = array<i32>} : memref<256x36xbf16, #tpu.memory_space<vmem>>, vector<256x4xbf16>,
    %c9 = arith.constant 9 : index
    %c0_18 = arith.constant 0 : index
    %39 = vector.load %arg11[%c9, %c0_18] : memref<304x4xf32, #tpu.memory_space<vmem>>, vector<256x4xf32>
    %c1_i32 = arith.constant 1 : i32
    %40 = vector.broadcast %c1_i32 : i32 to vector<256x1xi32>
    %41 = arith.addi %19, %40 : vector<256x1xi32>
    %c0_i32_19 = arith.constant 0 : i32
    %42 = vector.broadcast %c0_i32_19 : i32 to vector<256x1xi32>
    %43 = arith.cmpi sge, %41, %42 : vector<256x1xi32>
    %c1_i32_20 = arith.constant 1 : i32
    %44 = vector.broadcast %c1_i32_20 : i32 to vector<256x1xi32>
    %45 = arith.addi %19, %44 : vector<256x1xi32>
    %c16_i32_21 = arith.constant 16 : i32
    %46 = vector.broadcast %c16_i32_21 : i32 to vector<256x1xi32>
    %47 = arith.cmpi slt, %45, %46 : vector<256x1xi32>
    %48 = arith.andi %43, %47 : vector<256x1xi1>
    %49 = arith.extui %48 : vector<256x1xi1> to vector<256x1xi32>
    %50 = arith.sitofp %49 : vector<256x1xi32> to vector<256x1xf32>
    %51 = vector.broadcast %50 : vector<256x1xf32> to vector<256x4xf32>
    %52 = arith.mulf %39, %51 : vector<256x4xf32>
    %53 = arith.truncf %52 : vector<256x4xf32> to vector<256x4xbf16>
    %c0_22 = arith.constant 0 : index
    %c8_23 = arith.constant 8 : index
    %54 = vector.load %arg12[%c0_22, %c8_23] : memref<256x36xbf16, #tpu.memory_space<vmem>>, vector<256x4xbf16>
    tpu.vector_store %arg12[%c0_22, %c8_23], %53 {strides = array<i32>} : memref<256x36xbf16, #tpu.memory_space<vmem>>, vector<256x4xbf16>,
    %c23 = arith.constant 23 : index
    %c0_24 = arith.constant 0 : index
    %55 = vector.load %arg11[%c23, %c0_24] : memref<304x4xf32, #tpu.memory_space<vmem>>, vector<256x4xf32>
    %c-1_i32_25 = arith.constant -1 : i32
    %56 = vector.broadcast %c-1_i32_25 : i32 to vector<256x1xi32>
    %57 = arith.addi %19, %56 : vector<256x1xi32>
    %c0_i32_26 = arith.constant 0 : i32
    %58 = vector.broadcast %c0_i32_26 : i32 to vector<256x1xi32>
    %59 = arith.cmpi sge, %57, %58 : vector<256x1xi32>
    %c-1_i32_27 = arith.constant -1 : i32
    %60 = vector.broadcast %c-1_i32_27 : i32 to vector<256x1xi32>
    %61 = arith.addi %19, %60 : vector<256x1xi32>
    %c16_i32_28 = arith.constant 16 : i32
    %62 = vector.broadcast %c16_i32_28 : i32 to vector<256x1xi32>
    %63 = arith.cmpi slt, %61, %62 : vector<256x1xi32>
    %64 = arith.andi %59, %63 : vector<256x1xi1>
    %65 = arith.extui %64 : vector<256x1xi1> to vector<256x1xi32>
    %66 = arith.sitofp %65 : vector<256x1xi32> to vector<256x1xf32>
    %67 = vector.broadcast %66 : vector<256x1xf32> to vector<256x4xf32>
    %68 = arith.mulf %55, %67 : vector<256x4xf32>
    %69 = arith.truncf %68 : vector<256x4xf32> to vector<256x4xbf16>
    %c0_29 = arith.constant 0 : index
    %c12 = arith.constant 12 : index
    %70 = vector.load %arg12[%c0_29, %c12] : memref<256x36xbf16, #tpu.memory_space<vmem>>, vector<256x4xbf16>
    tpu.vector_store %arg12[%c0_29, %c12], %69 {strides = array<i32>} : memref<256x36xbf16, #tpu.memory_space<vmem>>, vector<256x4xbf16>,
    %c24_30 = arith.constant 24 : index
    %c0_31 = arith.constant 0 : index
    %71 = vector.load %arg11[%c24_30, %c0_31] : memref<304x4xf32, #tpu.memory_space<vmem>>, vector<256x4xf32>
    %72 = arith.truncf %71 : vector<256x4xf32> to vector<256x4xbf16>
    %c0_32 = arith.constant 0 : index
    %c16 = arith.constant 16 : index
    %73 = vector.load %arg12[%c0_32, %c16] : memref<256x36xbf16, #tpu.memory_space<vmem>>, vector<256x4xbf16>
    tpu.vector_store %arg12[%c0_32, %c16], %72 {strides = array<i32>} : memref<256x36xbf16, #tpu.memory_space<vmem>>, vector<256x4xbf16>,
    %c25 = arith.constant 25 : index
    %c0_33 = arith.constant 0 : index
    %74 = vector.load %arg11[%c25, %c0_33] : memref<304x4xf32, #tpu.memory_space<vmem>>, vector<256x4xf32>
    %c1_i32_34 = arith.constant 1 : i32
    %75 = vector.broadcast %c1_i32_34 : i32 to vector<256x1xi32>
    %76 = arith.addi %19, %75 : vector<256x1xi32>
    %c0_i32_35 = arith.constant 0 : i32
    %77 = vector.broadcast %c0_i32_35 : i32 to vector<256x1xi32>
    %78 = arith.cmpi sge, %76, %77 : vector<256x1xi32>
    %c1_i32_36 = arith.constant 1 : i32
    %79 = vector.broadcast %c1_i32_36 : i32 to vector<256x1xi32>
    %80 = arith.addi %19, %79 : vector<256x1xi32>
    %c16_i32_37 = arith.constant 16 : i32
    %81 = vector.broadcast %c16_i32_37 : i32 to vector<256x1xi32>
    %82 = arith.cmpi slt, %80, %81 : vector<256x1xi32>
    %83 = arith.andi %78, %82 : vector<256x1xi1>
    %84 = arith.extui %83 : vector<256x1xi1> to vector<256x1xi32>
    %85 = arith.sitofp %84 : vector<256x1xi32> to vector<256x1xf32>
    %86 = vector.broadcast %85 : vector<256x1xf32> to vector<256x4xf32>
    %87 = arith.mulf %74, %86 : vector<256x4xf32>
    %88 = arith.truncf %87 : vector<256x4xf32> to vector<256x4xbf16>
    %c0_38 = arith.constant 0 : index
    %c20 = arith.constant 20 : index
    %89 = vector.load %arg12[%c0_38, %c20] : memref<256x36xbf16, #tpu.memory_space<vmem>>, vector<256x4xbf16>
    tpu.vector_store %arg12[%c0_38, %c20], %88 {strides = array<i32>} : memref<256x36xbf16, #tpu.memory_space<vmem>>, vector<256x4xbf16>,
    %c39 = arith.constant 39 : index
    %c0_39 = arith.constant 0 : index
    %90 = vector.load %arg11[%c39, %c0_39] : memref<304x4xf32, #tpu.memory_space<vmem>>, vector<256x4xf32>
    %c-1_i32_40 = arith.constant -1 : i32
    %91 = vector.broadcast %c-1_i32_40 : i32 to vector<256x1xi32>
    %92 = arith.addi %19, %91 : vector<256x1xi32>
    %c0_i32_41 = arith.constant 0 : i32
    %93 = vector.broadcast %c0_i32_41 : i32 to vector<256x1xi32>
    %94 = arith.cmpi sge, %92, %93 : vector<256x1xi32>
    %c-1_i32_42 = arith.constant -1 : i32
    %95 = vector.broadcast %c-1_i32_42 : i32 to vector<256x1xi32>
    %96 = arith.addi %19, %95 : vector<256x1xi32>
    %c16_i32_43 = arith.constant 16 : i32
    %97 = vector.broadcast %c16_i32_43 : i32 to vector<256x1xi32>
    %98 = arith.cmpi slt, %96, %97 : vector<256x1xi32>
    %99 = arith.andi %94, %98 : vector<256x1xi1>
    %100 = arith.extui %99 : vector<256x1xi1> to vector<256x1xi32>
    %101 = arith.sitofp %100 : vector<256x1xi32> to vector<256x1xf32>
    %102 = vector.broadcast %101 : vector<256x1xf32> to vector<256x4xf32>
    %103 = arith.mulf %90, %102 : vector<256x4xf32>
    %104 = arith.truncf %103 : vector<256x4xf32> to vector<256x4xbf16>
    %c0_44 = arith.constant 0 : index
    %c24_45 = arith.constant 24 : index
    %105 = vector.load %arg12[%c0_44, %c24_45] : memref<256x36xbf16, #tpu.memory_space<vmem>>, vector<256x4xbf16>
    tpu.vector_store %arg12[%c0_44, %c24_45], %104 {strides = array<i32>} : memref<256x36xbf16, #tpu.memory_space<vmem>>, vector<256x4xbf16>,
    %c40 = arith.constant 40 : index
    %c0_46 = arith.constant 0 : index
    %106 = vector.load %arg11[%c40, %c0_46] : memref<304x4xf32, #tpu.memory_space<vmem>>, vector<256x4xf32>
    %107 = arith.truncf %106 : vector<256x4xf32> to vector<256x4xbf16>
    %c0_47 = arith.constant 0 : index
    %c28 = arith.constant 28 : index
    %108 = vector.load %arg12[%c0_47, %c28] : memref<256x36xbf16, #tpu.memory_space<vmem>>, vector<256x4xbf16>
    tpu.vector_store %arg12[%c0_47, %c28], %107 {strides = array<i32>} : memref<256x36xbf16, #tpu.memory_space<vmem>>, vector<256x4xbf16>,
    %c41 = arith.constant 41 : index
    %c0_48 = arith.constant 0 : index
    %109 = vector.load %arg11[%c41, %c0_48] : memref<304x4xf32, #tpu.memory_space<vmem>>, vector<256x4xf32>
    %c1_i32_49 = arith.constant 1 : i32
    %110 = vector.broadcast %c1_i32_49 : i32 to vector<256x1xi32>
    %111 = arith.addi %19, %110 : vector<256x1xi32>
    %c0_i32_50 = arith.constant 0 : i32
    %112 = vector.broadcast %c0_i32_50 : i32 to vector<256x1xi32>
    %113 = arith.cmpi sge, %111, %112 : vector<256x1xi32>
    %c1_i32_51 = arith.constant 1 : i32
    %114 = vector.broadcast %c1_i32_51 : i32 to vector<256x1xi32>
    %115 = arith.addi %19, %114 : vector<256x1xi32>
    %c16_i32_52 = arith.constant 16 : i32
    %116 = vector.broadcast %c16_i32_52 : i32 to vector<256x1xi32>
    %117 = arith.cmpi slt, %115, %116 : vector<256x1xi32>
    %118 = arith.andi %113, %117 : vector<256x1xi1>
    %119 = arith.extui %118 : vector<256x1xi1> to vector<256x1xi32>
    %120 = arith.sitofp %119 : vector<256x1xi32> to vector<256x1xf32>
    %121 = vector.broadcast %120 : vector<256x1xf32> to vector<256x4xf32>
    %122 = arith.mulf %109, %121 : vector<256x4xf32>
    %123 = arith.truncf %122 : vector<256x4xf32> to vector<256x4xbf16>
    %c0_53 = arith.constant 0 : index
    %c32 = arith.constant 32 : index
    %124 = vector.load %arg12[%c0_53, %c32] : memref<256x36xbf16, #tpu.memory_space<vmem>>, vector<256x4xbf16>
    tpu.vector_store %arg12[%c0_53, %c32], %123 {strides = array<i32>} : memref<256x36xbf16, #tpu.memory_space<vmem>>, vector<256x4xbf16>,
    %c0_54 = arith.constant 0 : index
    %c0_55 = arith.constant 0 : index
    %125 = vector.load %arg12[%c0_54, %c0_55] : memref<256x36xbf16, #tpu.memory_space<vmem>>, vector<256x36xbf16>
    %c0_56 = arith.constant 0 : index
    %c0_57 = arith.constant 0 : index
    %126 = vector.load %arg4[%c0_56, %c0_57] : memref<36x8xbf16, #tpu.memory_space<vmem>>, vector<36x8xbf16>
    %cst_58 = arith.constant dense<0.000000e+00> : vector<256x8xf32>
    %127 = tpu.matmul %125, %126, %cst_58 {dimension_numbers = #tpu.dot_dimension_numbers<[1], [0], [0], [1], [0, 0, 1, 1], [], []>} : vector<256x36xbf16>, vector<36x8xbf16>, vector<256x8xf32> -> vector<256x8xf32>
    %c0_59 = arith.constant 0 : index
    %c0_60 = arith.constant 0 : index
    %128 = vector.load %arg8[%c0_59, %c0_60] : memref<64x256xbf16, #tpu.memory_space<vmem>>, vector<64x256xbf16>
    %129 = arith.truncf %127 : vector<256x8xf32> to vector<256x8xbf16>
    %cst_61 = arith.constant dense<0.000000e+00> : vector<64x8xf32>
    %130 = tpu.matmul %128, %129, %cst_61 {dimension_numbers = #tpu.dot_dimension_numbers<[1], [0], [0], [1], [0, 0, 1, 1], [], []>} : vector<64x256xbf16>, vector<256x8xbf16>, vector<64x8xf32> -> vector<64x8xf32>
    %c0_62 = arith.constant 0 : index
    %c0_63 = arith.constant 0 : index
    %131 = vector.load %arg5[%c0_62, %c0_63] : memref<1x8xf32, #tpu.memory_space<vmem>>, vector<1x8xf32>
    %132 = vector.broadcast %131 : vector<1x8xf32> to vector<64x8xf32>
    %133 = arith.mulf %130, %132 : vector<64x8xf32>
    %c0_64 = arith.constant 0 : index
    %c0_65 = arith.constant 0 : index
    %134 = vector.load %arg6[%c0_64, %c0_65] : memref<1x8xf32, #tpu.memory_space<vmem>>, vector<1x8xf32>
    %135 = vector.broadcast %134 : vector<1x8xf32> to vector<64x8xf32>
    %136 = arith.addf %133, %135 : vector<64x8xf32>
    %cst_66 = arith.constant 0.000000e+00 : f32
    %137 = vector.broadcast %cst_66 : f32 to vector<64x8xf32>
    %138 = arith.cmpf oge, %136, %137 : vector<64x8xf32>
    %cst_67 = arith.constant 0.00999999977 : f32
    %139 = vector.broadcast %cst_67 : f32 to vector<64x8xf32>
    %140 = arith.mulf %139, %136 : vector<64x8xf32>
    %141 = arith.select %138, %136, %140 : vector<64x8xi1>, vector<64x8xf32>
    %cst_68 = arith.constant 0.000000e+00 : f32
    %142 = vector.broadcast %cst_68 : f32 to vector<16x8xf32>
    %c0_69 = arith.constant 0 : index
    %c0_70 = arith.constant 0 : index
    %143 = vector.load %arg13[%c0_69, %c0_70] : memref<96x8xf32, #tpu.memory_space<vmem>>, vector<16x8xf32>
    tpu.vector_store %arg13[%c0_69, %c0_70], %142 {strides = array<i32>} : memref<96x8xf32, #tpu.memory_space<vmem>>, vector<16x8xf32>,
    %c80 = arith.constant 80 : index
    %c0_71 = arith.constant 0 : index
    %144 = vector.load %arg13[%c80, %c0_71] : memref<96x8xf32, #tpu.memory_space<vmem>>, vector<16x8xf32>
    tpu.vector_store %arg13[%c80, %c0_71], %142 {strides = array<i32>} : memref<96x8xf32, #tpu.memory_space<vmem>>, vector<16x8xf32>,
    %c16_72 = arith.constant 16 : index
    %c0_73 = arith.constant 0 : index
    %145 = vector.load %arg13[%c16_72, %c0_73] : memref<96x8xf32, #tpu.memory_space<vmem>>, vector<64x8xf32>
    tpu.vector_store %arg13[%c16_72, %c0_73], %141 {strides = array<i32>} : memref<96x8xf32, #tpu.memory_space<vmem>>, vector<64x8xf32>,
    %146 = tpu.iota {dimensions = array<i32: 0>} : vector<64x1xi32>
    %c7_i32 = arith.constant 7 : i32
    %147 = vector.broadcast %c7_i32 : i32 to vector<64x1xi32>
    %148 = arith.andi %146, %147 : vector<64x1xi32>
    %c7_74 = arith.constant 7 : index
    %c0_75 = arith.constant 0 : index
    %149 = vector.load %arg13[%c7_74, %c0_75] : memref<96x8xf32, #tpu.memory_space<vmem>>, vector<64x8xf32>
    %c-1_i32_76 = arith.constant -1 : i32
    %150 = vector.broadcast %c-1_i32_76 : i32 to vector<64x1xi32>
    %151 = arith.addi %148, %150 : vector<64x1xi32>
    %c0_i32_77 = arith.constant 0 : i32
    %152 = vector.broadcast %c0_i32_77 : i32 to vector<64x1xi32>
    %153 = arith.cmpi sge, %151, %152 : vector<64x1xi32>
    %c-1_i32_78 = arith.constant -1 : i32
    %154 = vector.broadcast %c-1_i32_78 : i32 to vector<64x1xi32>
    %155 = arith.addi %148, %154 : vector<64x1xi32>
    %c8_i32 = arith.constant 8 : i32
    %156 = vector.broadcast %c8_i32 : i32 to vector<64x1xi32>
    %157 = arith.cmpi slt, %155, %156 : vector<64x1xi32>
    %158 = arith.andi %153, %157 : vector<64x1xi1>
    %159 = arith.extui %158 : vector<64x1xi1> to vector<64x1xi32>
    %160 = arith.sitofp %159 : vector<64x1xi32> to vector<64x1xf32>
    %161 = vector.broadcast %160 : vector<64x1xf32> to vector<64x8xf32>
    %162 = arith.mulf %149, %161 : vector<64x8xf32>
    %163 = arith.truncf %162 : vector<64x8xf32> to vector<64x8xbf16>
    %c0_79 = arith.constant 0 : index
    %c0_80 = arith.constant 0 : index
    %164 = vector.load %arg14[%c0_79, %c0_80] : memref<64x72xbf16, #tpu.memory_space<vmem>>, vector<64x8xbf16>
    tpu.vector_store %arg14[%c0_79, %c0_80], %163 {strides = array<i32>} : memref<64x72xbf16, #tpu.memory_space<vmem>>, vector<64x8xbf16>,
    %c8_81 = arith.constant 8 : index
    %c0_82 = arith.constant 0 : index
    %165 = vector.load %arg13[%c8_81, %c0_82] : memref<96x8xf32, #tpu.memory_space<vmem>>, vector<64x8xf32>
    %166 = arith.truncf %165 : vector<64x8xf32> to vector<64x8xbf16>
    %c0_83 = arith.constant 0 : index
    %c8_84 = arith.constant 8 : index
    %167 = vector.load %arg14[%c0_83, %c8_84] : memref<64x72xbf16, #tpu.memory_space<vmem>>, vector<64x8xbf16>
    tpu.vector_store %arg14[%c0_83, %c8_84], %166 {strides = array<i32>} : memref<64x72xbf16, #tpu.memory_space<vmem>>, vector<64x8xbf16>,
    %c9_85 = arith.constant 9 : index
    %c0_86 = arith.constant 0 : index
    %168 = vector.load %arg13[%c9_85, %c0_86] : memref<96x8xf32, #tpu.memory_space<vmem>>, vector<64x8xf32>
    %c1_i32_87 = arith.constant 1 : i32
    %169 = vector.broadcast %c1_i32_87 : i32 to vector<64x1xi32>
    %170 = arith.addi %148, %169 : vector<64x1xi32>
    %c0_i32_88 = arith.constant 0 : i32
    %171 = vector.broadcast %c0_i32_88 : i32 to vector<64x1xi32>
    %172 = arith.cmpi sge, %170, %171 : vector<64x1xi32>
    %c1_i32_89 = arith.constant 1 : i32
    %173 = vector.broadcast %c1_i32_89 : i32 to vector<64x1xi32>
    %174 = arith.addi %148, %173 : vector<64x1xi32>
    %c8_i32_90 = arith.constant 8 : i32
    %175 = vector.broadcast %c8_i32_90 : i32 to vector<64x1xi32>
    %176 = arith.cmpi slt, %174, %175 : vector<64x1xi32>
    %177 = arith.andi %172, %176 : vector<64x1xi1>
    %178 = arith.extui %177 : vector<64x1xi1> to vector<64x1xi32>
    %179 = arith.sitofp %178 : vector<64x1xi32> to vector<64x1xf32>
    %180 = vector.broadcast %179 : vector<64x1xf32> to vector<64x8xf32>
    %181 = arith.mulf %168, %180 : vector<64x8xf32>
    %182 = arith.truncf %181 : vector<64x8xf32> to vector<64x8xbf16>
    %c0_91 = arith.constant 0 : index
    %c16_92 = arith.constant 16 : index
    %183 = vector.load %arg14[%c0_91, %c16_92] : memref<64x72xbf16, #tpu.memory_space<vmem>>, vector<64x8xbf16>
    tpu.vector_store %arg14[%c0_91, %c16_92], %182 {strides = array<i32>} : memref<64x72xbf16, #tpu.memory_space<vmem>>, vector<64x8xbf16>,
    %c15 = arith.constant 15 : index
    %c0_93 = arith.constant 0 : index
    %184 = vector.load %arg13[%c15, %c0_93] : memref<96x8xf32, #tpu.memory_space<vmem>>, vector<64x8xf32>
    %c-1_i32_94 = arith.constant -1 : i32
    %185 = vector.broadcast %c-1_i32_94 : i32 to vector<64x1xi32>
    %186 = arith.addi %148, %185 : vector<64x1xi32>
    %c0_i32_95 = arith.constant 0 : i32
    %187 = vector.broadcast %c0_i32_95 : i32 to vector<64x1xi32>
    %188 = arith.cmpi sge, %186, %187 : vector<64x1xi32>
    %c-1_i32_96 = arith.constant -1 : i32
    %189 = vector.broadcast %c-1_i32_96 : i32 to vector<64x1xi32>
    %190 = arith.addi %148, %189 : vector<64x1xi32>
    %c8_i32_97 = arith.constant 8 : i32
    %191 = vector.broadcast %c8_i32_97 : i32 to vector<64x1xi32>
    %192 = arith.cmpi slt, %190, %191 : vector<64x1xi32>
    %193 = arith.andi %188, %192 : vector<64x1xi1>
    %194 = arith.extui %193 : vector<64x1xi1> to vector<64x1xi32>
    %195 = arith.sitofp %194 : vector<64x1xi32> to vector<64x1xf32>
    %196 = vector.broadcast %195 : vector<64x1xf32> to vector<64x8xf32>
    %197 = arith.mulf %184, %196 : vector<64x8xf32>
    %198 = arith.truncf %197 : vector<64x8xf32> to vector<64x8xbf16>
    %c0_98 = arith.constant 0 : index
    %c24_99 = arith.constant 24 : index
    %199 = vector.load %arg14[%c0_98, %c24_99] : memref<64x72xbf16, #tpu.memory_space<vmem>>, vector<64x8xbf16>
    tpu.vector_store %arg14[%c0_98, %c24_99], %198 {strides = array<i32>} : memref<64x72xbf16, #tpu.memory_space<vmem>>, vector<64x8xbf16>,
    %c16_100 = arith.constant 16 : index
    %c0_101 = arith.constant 0 : index
    %200 = vector.load %arg13[%c16_100, %c0_101] : memref<96x8xf32, #tpu.memory_space<vmem>>, vector<64x8xf32>
    %201 = arith.truncf %200 : vector<64x8xf32> to vector<64x8xbf16>
    %c0_102 = arith.constant 0 : index
    %c32_103 = arith.constant 32 : index
    %202 = vector.load %arg14[%c0_102, %c32_103] : memref<64x72xbf16, #tpu.memory_space<vmem>>, vector<64x8xbf16>
    tpu.vector_store %arg14[%c0_102, %c32_103], %201 {strides = array<i32>} : memref<64x72xbf16, #tpu.memory_space<vmem>>, vector<64x8xbf16>,
    %c17 = arith.constant 17 : index
    %c0_104 = arith.constant 0 : index
    %203 = vector.load %arg13[%c17, %c0_104] : memref<96x8xf32, #tpu.memory_space<vmem>>, vector<64x8xf32>
    %c1_i32_105 = arith.constant 1 : i32
    %204 = vector.broadcast %c1_i32_105 : i32 to vector<64x1xi32>
    %205 = arith.addi %148, %204 : vector<64x1xi32>
    %c0_i32_106 = arith.constant 0 : i32
    %206 = vector.broadcast %c0_i32_106 : i32 to vector<64x1xi32>
    %207 = arith.cmpi sge, %205, %206 : vector<64x1xi32>
    %c1_i32_107 = arith.constant 1 : i32
    %208 = vector.broadcast %c1_i32_107 : i32 to vector<64x1xi32>
    %209 = arith.addi %148, %208 : vector<64x1xi32>
    %c8_i32_108 = arith.constant 8 : i32
    %210 = vector.broadcast %c8_i32_108 : i32 to vector<64x1xi32>
    %211 = arith.cmpi slt, %209, %210 : vector<64x1xi32>
    %212 = arith.andi %207, %211 : vector<64x1xi1>
    %213 = arith.extui %212 : vector<64x1xi1> to vector<64x1xi32>
    %214 = arith.sitofp %213 : vector<64x1xi32> to vector<64x1xf32>
    %215 = vector.broadcast %214 : vector<64x1xf32> to vector<64x8xf32>
    %216 = arith.mulf %203, %215 : vector<64x8xf32>
    %217 = arith.truncf %216 : vector<64x8xf32> to vector<64x8xbf16>
    %c0_109 = arith.constant 0 : index
    %c40_110 = arith.constant 40 : index
    %218 = vector.load %arg14[%c0_109, %c40_110] : memref<64x72xbf16, #tpu.memory_space<vmem>>, vector<64x8xbf16>
    tpu.vector_store %arg14[%c0_109, %c40_110], %217 {strides = array<i32>} : memref<64x72xbf16, #tpu.memory_space<vmem>>, vector<64x8xbf16>,
    %c23_111 = arith.constant 23 : index
    %c0_112 = arith.constant 0 : index
    %219 = vector.load %arg13[%c23_111, %c0_112] : memref<96x8xf32, #tpu.memory_space<vmem>>, vector<64x8xf32>
    %c-1_i32_113 = arith.constant -1 : i32
    %220 = vector.broadcast %c-1_i32_113 : i32 to vector<64x1xi32>
    %221 = arith.addi %148, %220 : vector<64x1xi32>
    %c0_i32_114 = arith.constant 0 : i32
    %222 = vector.broadcast %c0_i32_114 : i32 to vector<64x1xi32>
    %223 = arith.cmpi sge, %221, %222 : vector<64x1xi32>
    %c-1_i32_115 = arith.constant -1 : i32
    %224 = vector.broadcast %c-1_i32_115 : i32 to vector<64x1xi32>
    %225 = arith.addi %148, %224 : vector<64x1xi32>
    %c8_i32_116 = arith.constant 8 : i32
    %226 = vector.broadcast %c8_i32_116 : i32 to vector<64x1xi32>
    %227 = arith.cmpi slt, %225, %226 : vector<64x1xi32>
    %228 = arith.andi %223, %227 : vector<64x1xi1>
    %229 = arith.extui %228 : vector<64x1xi1> to vector<64x1xi32>
    %230 = arith.sitofp %229 : vector<64x1xi32> to vector<64x1xf32>
    %231 = vector.broadcast %230 : vector<64x1xf32> to vector<64x8xf32>
    %232 = arith.mulf %219, %231 : vector<64x8xf32>
    %233 = arith.truncf %232 : vector<64x8xf32> to vector<64x8xbf16>
    %c0_117 = arith.constant 0 : index
    %c48 = arith.constant 48 : index
    %234 = vector.load %arg14[%c0_117, %c48] : memref<64x72xbf16, #tpu.memory_space<vmem>>, vector<64x8xbf16>
    tpu.vector_store %arg14[%c0_117, %c48], %233 {strides = array<i32>} : memref<64x72xbf16, #tpu.memory_space<vmem>>, vector<64x8xbf16>,
    %c24_118 = arith.constant 24 : index
    %c0_119 = arith.constant 0 : index
    %235 = vector.load %arg13[%c24_118, %c0_119] : memref<96x8xf32, #tpu.memory_space<vmem>>, vector<64x8xf32>
    %236 = arith.truncf %235 : vector<64x8xf32> to vector<64x8xbf16>
    %c0_120 = arith.constant 0 : index
    %c56 = arith.constant 56 : index
    %237 = vector.load %arg14[%c0_120, %c56] : memref<64x72xbf16, #tpu.memory_space<vmem>>, vector<64x8xbf16>
    tpu.vector_store %arg14[%c0_120, %c56], %236 {strides = array<i32>} : memref<64x72xbf16, #tpu.memory_space<vmem>>, vector<64x8xbf16>,
    %c25_121 = arith.constant 25 : index
    %c0_122 = arith.constant 0 : index
    %238 = vector.load %arg13[%c25_121, %c0_122] : memref<96x8xf32, #tpu.memory_space<vmem>>, vector<64x8xf32>
    %c1_i32_123 = arith.constant 1 : i32
    %239 = vector.broadcast %c1_i32_123 : i32 to vector<64x1xi32>
    %240 = arith.addi %148, %239 : vector<64x1xi32>
    %c0_i32_124 = arith.constant 0 : i32
    %241 = vector.broadcast %c0_i32_124 : i32 to vector<64x1xi32>
    %242 = arith.cmpi sge, %240, %241 : vector<64x1xi32>
    %c1_i32_125 = arith.constant 1 : i32
    %243 = vector.broadcast %c1_i32_125 : i32 to vector<64x1xi32>
    %244 = arith.addi %148, %243 : vector<64x1xi32>
    %c8_i32_126 = arith.constant 8 : i32
    %245 = vector.broadcast %c8_i32_126 : i32 to vector<64x1xi32>
    %246 = arith.cmpi slt, %244, %245 : vector<64x1xi32>
    %247 = arith.andi %242, %246 : vector<64x1xi1>
    %248 = arith.extui %247 : vector<64x1xi1> to vector<64x1xi32>
    %249 = arith.sitofp %248 : vector<64x1xi32> to vector<64x1xf32>
    %250 = vector.broadcast %249 : vector<64x1xf32> to vector<64x8xf32>
    %251 = arith.mulf %238, %250 : vector<64x8xf32>
    %252 = arith.truncf %251 : vector<64x8xf32> to vector<64x8xbf16>
    %c0_127 = arith.constant 0 : index
    %c64 = arith.constant 64 : index
    %253 = vector.load %arg14[%c0_127, %c64] : memref<64x72xbf16, #tpu.memory_space<vmem>>, vector<64x8xbf16>
    tpu.vector_store %arg14[%c0_127, %c64], %252 {strides = array<i32>} : memref<64x72xbf16, #tpu.memory_space<vmem>>, vector<64x8xbf16>,
    %c0_128 = arith.constant 0 : index
    %c0_129 = arith.constant 0 : index
    %254 = vector.load %arg14[%c0_128, %c0_129] : memref<64x72xbf16, #tpu.memory_space<vmem>>, vector<64x72xbf16>
    %c0_130 = arith.constant 0 : index
    %c0_131 = arith.constant 0 : index
    %255 = vector.load %arg7[%c0_130, %c0_131] : memref<72x8xbf16, #tpu.memory_space<vmem>>, vector<72x8xbf16>
    %cst_132 = arith.constant dense<0.000000e+00> : vector<64x8xf32>
    %256 = tpu.matmul %254, %255, %cst_132 {dimension_numbers = #tpu.dot_dimension_numbers<[1], [0], [0], [1], [0, 0, 1, 1], [], []>} : vector<64x72xbf16>, vector<72x8xbf16>, vector<64x8xf32> -> vector<64x8xf32>
    %c0_133 = arith.constant 0 : index
    %c0_134 = arith.constant 0 : index
    %257 = vector.load %arg8[%c0_133, %c0_134] : memref<64x256xbf16, #tpu.memory_space<vmem>>, vector<64x256xbf16>
    %258 = arith.truncf %12 : vector<256x4xf32> to vector<256x4xbf16>
    %cst_135 = arith.constant dense<0.000000e+00> : vector<64x4xf32>
    %259 = tpu.matmul %257, %258, %cst_135 {dimension_numbers = #tpu.dot_dimension_numbers<[1], [0], [0], [1], [0, 0, 1, 1], [], []>} : vector<64x256xbf16>, vector<256x4xbf16>, vector<64x4xf32> -> vector<64x4xf32>
    %c0_136 = arith.constant 0 : index
    %c0_137 = arith.constant 0 : index
    %260 = vector.load %arg9[%c0_136, %c0_137] : memref<4x8xbf16, #tpu.memory_space<vmem>>, vector<4x8xbf16>
    %261 = arith.truncf %259 : vector<64x4xf32> to vector<64x4xbf16>
    %cst_138 = arith.constant dense<0.000000e+00> : vector<64x8xf32>
    %262 = tpu.matmul %261, %260, %cst_138 {dimension_numbers = #tpu.dot_dimension_numbers<[1], [0], [0], [1], [0, 0, 1, 1], [], []>} : vector<64x4xbf16>, vector<4x8xbf16>, vector<64x8xf32> -> vector<64x8xf32>
    %263 = arith.addf %256, %262 : vector<64x8xf32>
    %c0_139 = arith.constant 0 : index
    %c0_140 = arith.constant 0 : index
    %c0_141 = arith.constant 0 : index
    %264 = vector.load %arg10[%c0_139, %c0_140, %c0_141] : memref<1x64x8xf32, #tpu.memory_space<vmem>>, vector<1x64x8xf32>
    %265 = vector.shape_cast %264 : vector<1x64x8xf32> to vector<64x8xf32>
    %266 = vector.shape_cast %263 : vector<64x8xf32> to vector<1x64x8xf32>
    tpu.vector_store %arg10[%c0_139, %c0_140, %c0_141], %266 {strides = array<i32>} : memref<1x64x8xf32, #tpu.memory_space<vmem>>, vector<1x64x8xf32>,
    return
  }
  func.func @transform_0(%arg0: i32) -> (i32, i32, i32) {
    %c0_i32 = arith.constant 0 : i32
    %c0_i32_0 = arith.constant 0 : i32
    %c0_i32_1 = arith.constant 0 : i32
    return %arg0, %c0_i32, %c0_i32_0 : i32, i32, i32
  }
  func.func @transform_1(%arg0: i32) -> (i32, i32) {
    %c0_i32 = arith.constant 0 : i32
    %c0_i32_0 = arith.constant 0 : i32
    %c0_i32_1 = arith.constant 0 : i32
    return %c0_i32, %c0_i32_0 : i32, i32
  }
  func.func @transform_2(%arg0: i32) -> (i32, i32) {
    %c0_i32 = arith.constant 0 : i32
    %c0_i32_0 = arith.constant 0 : i32
    %c0_i32_1 = arith.constant 0 : i32
    return %c0_i32, %c0_i32_0 : i32, i32
  }
  func.func @transform_3(%arg0: i32) -> (i32, i32) {
    %c0_i32 = arith.constant 0 : i32
    %c0_i32_0 = arith.constant 0 : i32
    %c0_i32_1 = arith.constant 0 : i32
    return %c0_i32, %c0_i32_0 : i32, i32
  }
  func.func @transform_4(%arg0: i32) -> (i32, i32) {
    %c0_i32 = arith.constant 0 : i32
    %c0_i32_0 = arith.constant 0 : i32
    %c0_i32_1 = arith.constant 0 : i32
    return %c0_i32, %c0_i32_0 : i32, i32
  }
  func.func @transform_5(%arg0: i32) -> (i32, i32) {
    %c0_i32 = arith.constant 0 : i32
    %c0_i32_0 = arith.constant 0 : i32
    %c0_i32_1 = arith.constant 0 : i32
    return %c0_i32, %c0_i32_0 : i32, i32
  }
  func.func @transform_6(%arg0: i32) -> (i32, i32) {
    %c0_i32 = arith.constant 0 : i32
    %c0_i32_0 = arith.constant 0 : i32
    %c0_i32_1 = arith.constant 0 : i32
    return %c0_i32, %c0_i32_0 : i32, i32
  }
  func.func @transform_7(%arg0: i32) -> (i32, i32) {
    %c0_i32 = arith.constant 0 : i32
    %c0_i32_0 = arith.constant 0 : i32
    %c0_i32_1 = arith.constant 0 : i32
    return %c0_i32, %c0_i32_0 : i32, i32
  }
  func.func @transform_8(%arg0: i32) -> (i32, i32) {
    %c0_i32 = arith.constant 0 : i32
    %c0_i32_0 = arith.constant 0 : i32
    %c0_i32_1 = arith.constant 0 : i32
    return %c0_i32, %c0_i32_0 : i32, i32
  }
  func.func @transform_9(%arg0: i32) -> (i32, i32, i32) {
    %c0_i32 = arith.constant 0 : i32
    %c0_i32_0 = arith.constant 0 : i32
    %c0_i32_1 = arith.constant 0 : i32
    return %arg0, %c0_i32, %c0_i32_0 : i32, i32, i32
  }
}

</mosaic_0001>

<bundles_post_ra>
// kernel: tpu_custom_call.1
= control target key start
LH: loop header
LB: loop body
LE: loop exit
PB: predicated region body
PF: predicated region fallthrough
CT: control target
= control target key end

     0   :  { %vm11_vm0 = vcmask 64512   ;;  %s79_s0 = inlined_call_operand.vmem [shape: f32[24,8], index: 0, kind: input, shape index: {}]   ;;  %s80_s1 = inlined_call_operand.hbm [shape: f32[8,8], index: 1, kind: output, shape index: {}]  }
   0x1   :  { %v27_v0 = vld [vmem:[%s79_s0 + $0x1] ss:$2 sm:$0xff] }
   0x2   :  { %6 = vsyncpa [#allocation3], 0  ;;  %12 = vst.msk [vmem:[#allocation2] sm:$0xff] %vm11_vm0, %v27_v0  ;;  %s53_s8 = smov [#allocation2]  }
   0x3   :  { %s19_s9 = sshll.u32 %s53_s8, 4  ;;  %s20_s9 = int_to_ptr.vmem [resolvable:$true] %s19_s9 }
   0x4   :  { %s29_s10 = scalar_lea.vmem %s20_s9, 128  ;;  %p34_p1 = scmp.lt.s32.totalorder %s20_s9, %s20_s9 }
   0x5   :  { %p30_p0 = scmp.ne.s32.totalorder %s20_s9, %s29_s10  ;;  %p35_p2 = scmp.lt.s32.totalorder %s29_s10, %s29_s10 }
   0x7   :  { %p36_p3 = por %p35_p2, %p34_p1 }
   0x9   :  { %p37_p4 = pnand %p36_p3, %p30_p0 }
   0xb   :  { %40 = shalt.err (!%p37_p4)
}
   0xc   :  { %s41_s13 = scalar_lea.hbm %s80_s1, 128 }
   0xd   :  { %p42_p5 = scmp.ne.s32.totalorder %s80_s1, %s41_s13  ;;  %p45_p6 = scmp.lt.u32.totalorder %s41_s13, %s80_s1 }
   0xf   :  { %p47_p7 = pnand %p45_p6, %p42_p5 }
  0x11   :  { %50 = shalt.err (!%p47_p7)
}
  0x12   :  { %22 = dma.vmem_to_hbm [thread:$0]  %s20_s9, 128, %s80_s1, [#allocation3]  }
  0x13   :  { %51 = dma.done.wait [#allocation3], 128  }
  0x14   :  { %52 = vsyncadd [#allocation3], 4294967168 }
  0x15   :  { %26 = vsyncpa [#allocation3], 1 }

// kernel: tpu_custom_call.1
= control target key start
LH: loop header
LB: loop body
LE: loop exit
PB: predicated region body
PF: predicated region fallthrough
CT: control target
= control target key end

     0   :  { %6 = vsyncpa [#allocation3], 0  ;;  %s341_s0 = inlined_call_operand.hbm [shape: f32[8,128], index: 0, kind: input, shape index: {}]   ;;  %s342_s1 = inlined_call_operand.hbm [shape: f32[8,128], index: 1, kind: output, shape index: {}]  }
   0x1   :  { %7 = vsyncpa [#allocation4], 0  ;;  %s262_s6 = smov 0  }
   0x2 LB: > { %s145_s7 = sadd.s32 4294967295, %s248_s6   ;;  %p146_p0 = scmp.ge.s32.totalorder %s248_s6, 1  ;;  %s248_s6 = sphi %s262_s6, %s13_s6  }
   0x3   : > { %p60_p1 = scmp.lt.s32.totalorder %s248_s6, 3  ;;  %p276_p3 = scmp.eq.s32.totalorder %s145_s7, 0 }
   0x4   : > { %s250_s10 = smov [#allocation2]   ;;  %s180_s15 = scalar_lea.hbm %s341_s0, 128 }
   0x5   : > { %p270_p2 = pnand %p146_p0, %p60_p1  ;;  %s73_s11 = sshll.u32 %s250_s10, 4  ;;  %s74_s11 = int_to_ptr.vmem [resolvable:$true] %s73_s11 }
   0x6   : > { %s347_s9 = scalar_select %p276_p3, 1, 0 }
   0x7   : > { %s346_s8 = scalar_select %p270_p2, 1, 0 }
   0x8   : > { %p162_p4 = pneg %p270_p2  ;;  %p181_p6 = scmp.ne.s32.totalorder %s341_s0, %s180_s15 }
   0x9   : > { %p187_p10 = scmp.lt.u32.totalorder %s180_s15, %s341_s0 }
   0xa   : > { %p284_p5 = pnand %p276_p3, %p162_p4 }
   0xc   : > { %p182_p7 = pneg %p284_p5 }
   0xe   : > { %p183_p8 = pnand %p182_p7, %p181_p6 }
  0x10   : > { %p184_p9 = pneg %p183_p8 }
  0x12   : > { %p189_p11 = pnand %p187_p10, %p184_p9 }
  0x14   : > { %192 = shalt.err (!%p189_p11)
}
  0x15   : > { %s193_s20 = scalar_lea.vmem %s74_s11, 128  ;;  %p201_p1 = scmp.lt.s32.totalorder %s74_s11, %s74_s11 }
  0x16   : > { %p194_p12 = scmp.ne.s32.totalorder %s74_s11, %s193_s20  ;;  %p202_p4 = scmp.lt.s32.totalorder %s193_s20, %s193_s20 }
  0x18   : > { %p196_p13 = pnand %p194_p12, %p182_p7  ;;  %p203_p3 = por %p202_p4, %p201_p1 }
  0x1a   : > { %p197_p0 = pneg %p196_p13 }
  0x1c   : > { %p204_p2 = pnand %p203_p3, %p197_p0 }
  0x1e   : > { %207 = shalt.err (!%p204_p2)
}
  0x1f   : > { %165 = dma.hbm_to_vmem [thread:$0]  (!%p284_p5), %s341_s0, 128, %s74_s11, [#allocation3]  }
  0x20   : > { %p349_p6 = scmp.ne.s32.totalorder %s346_s8, 0 }
  0x21   : > { %p350_p8 = scmp.ne.s32.totalorder (!%p349_p6), %s347_s9, 0 }
  0x22   : > { %86 = sbr.rel (%p349_p6) target bundleno = 67 (0x43), region = 24 }
  0x29   : > { %239 = dma.done.wait (%p350_p8), [#allocation3], 128  }
  0x2a   : > { %241 = vsyncadd (%p350_p8), [#allocation3], 4294967168  ;;  %s251_s23 = smov [#allocation5]   ;;  %v96_v0 = vld [vmem:[#allocation2] sm:$0xff]  ;;  %p312_p2 = scmp.eq.s32.totalorder %s145_s7, 1 }
  0x2b   : > { %s106_s24 = sshll.u32 %s251_s23, 4  ;;  %v97_v1 = vadd.f32 1.0, %v96_v0  ;;  %s107_s24 = int_to_ptr.vmem [resolvable:$true] %s106_s24 }
  0x2c   : > { %s208_s26 = scalar_lea.vmem %s107_s24, 128  ;;  %p215_p9 = scmp.lt.s32.totalorder %s107_s24, %s107_s24 }
  0x2d   : > { %98 = vst [vmem:[#allocation5] sm:$0xff] %v97_v1  ;;  %p209_p3 = scmp.ne.s32.totalorder %s107_s24, %s208_s26  ;;  %p216_p10 = scmp.lt.s32.totalorder %s208_s26, %s208_s26 }
  0x2f   : > { %p210_p5 = pnand %p209_p3, %p312_p2  ;;  %p217_p11 = por %p216_p10, %p215_p9 }
  0x31   : > { %p211_p7 = pneg %p210_p5 }
  0x33   : > { %p218_p12 = pnand %p217_p11, %p211_p7 }
  0x35   : > { %221 = shalt.err (!%p218_p12)
}
  0x36   : > { %s222_s29 = scalar_lea.hbm %s342_s1, 128 }
  0x37   : > { %p223_p13 = scmp.ne.s32.totalorder %s342_s1, %s222_s29  ;;  %p228_p4 = scmp.lt.u32.totalorder %s222_s29, %s342_s1 }
  0x39   : > { %p224_p0 = pnand %p223_p13, %p312_p2 }
  0x3b   : > { %p225_p1 = pneg %p224_p0 }
  0x3d   : > { %p230_p6 = pnand %p228_p4, %p225_p1 }
  0x3f   : > { %233 = shalt.err (!%p230_p6)
}
  0x40   : > { %159 = dma.vmem_to_hbm [thread:$0]  (%p312_p2), %s107_s24, 128, %s342_s1, [#allocation4]  }
  0x41   : > { %243 = dma.done.wait (%p312_p2), [#allocation4], 128  }
  0x42   : > { %245 = vsyncadd (%p312_p2), [#allocation4], 4294967168 }
  0x43 PF: > { %s13_s6 = sadd.s32 1, %s248_s6  }
  0x44   : > { %p10_p8 = scmp.ge.s32.totalorder %s13_s6, 4  }
  0x46   :  { %12 = sbr.rel (!%p10_p8) target bundleno = 2 (0x2), region = 53 }
  0x4d   :  { %119 = vsyncpa [#allocation3], 1 }
  0x4e   :  { %121 = vsyncpa [#allocation3 + $0x1], 1 }
  0x4f   :  { %122 = vsyncpa [#allocation4], 1 }
  0x50   :  { %124 = vsyncpa [#allocation4 + $0x1], 1 }

// kernel: tpu_custom_call.1
= control target key start
LH: loop header
LB: loop body
LE: loop exit
PB: predicated region body
PF: predicated region fallthrough
CT: control target
= control target key end

     0   :  { %s4021_s30 = smov 0   ;;  %s5579_s0 = inlined_call_operand.vmem [shape: f32[2,256,4], index: 0, kind: input, shape index: {}]   ;;  %s5580_s1 = inlined_call_operand.vmem [shape: f32[1,4], index: 1, kind: input, shape index: {}]   ;;  %s5581_s2 = inlined_call_operand.vmem [shape: f32[1,4], index: 2, kind: input, shape index: {}]   ;;  %s5582_s3 = inlined_call_operand.vmem [shape: bf16[36,8], index: 3, kind: input, shape index: {}]   ;;  %s5583_s4 = inlined_call_operand.vmem [shape: f32[1,8], index: 4, kind: input, shape index: {}]   ;;  %s5584_s5 = inlined_call_operand.vmem [shape: f32[1,8], index: 5, kind: input, shape index: {}]   ;;  %s5585_s6 = inlined_call_operand.vmem [shape: bf16[72,8], index: 6, kind: input, shape index: {}]   ;;  %s5586_s7 = inlined_call_operand.vmem [shape: bf16[64,256], index: 7, kind: input, shape index: {}]   ;;  %s5587_s8 = inlined_call_operand.vmem [shape: bf16[4,8], index: 8, kind: input, shape index: {}]   ;;  %s5588_s9 = inlined_call_operand.vmem [shape: f32[2,64,8], index: 9, kind: output, shape index: {}]  }
   0x1 LB: > { %s3593_s10 = sadd.s32 4294967295, %s3956_s30   ;;  %p3597_p0 = scmp.ge.s32.totalorder %s3956_s30, 1  ;;  %s3956_s30 = sphi %s4021_s30, %s19_s30  }
   0x2   : > { %p287_p1 = scmp.lt.s32.totalorder %s3956_s30, 3 }
   0x4   : > { %p288_p2 = pnand %p3597_p0, %p287_p1 }
   0x6   : > { %291 = sbr.rel (%p288_p2) target bundleno = 1277 (0x4fd), region = 56 }
   0xd   : > { %vm540_vm0 = vcmask 31744   ;;  %p323_p3 = scmp.lt.s32.totalorder %s3593_s10, 1  ;;  %v579_v0 = vlaneseq  ;;  %v5589_v1 = vmov 0.0   ;;  %v4049_v3 = vld [vmem:[%s5580_s1] ss:$0 sm:$0xff]  ;;  %s3959_s19 = smov 4  }
   0xe   : > { %542 = vst.msk [vmem:[#allocation2 + $0x8] sm:$0xff] %vm540_vm0, %v5589_v1  ;;  %543 = vst.msk [vmem:[#allocation2 + $0x10] sm:$0xff] %vm540_vm0, %v5589_v1  ;;  %v4065_v6 = vld [vmem:[%s5581_s2] ss:$0 sm:$0xff]  ;;  %s3960_s20 = smov 16   ;;  %s3961_s21 = smov 28  }
   0xf   : > { %541 = vst.msk [vmem:[#allocation2] sm:$0xff] %vm540_vm0, %v5589_v1  ;;  %544 = vst.msk [vmem:[#allocation2 + $0x118] sm:$0xff] %vm540_vm0, %v5589_v1  ;;  %s5604_s10 = smov (!%p323_p3, %s3593_s10), 1  ;;  %v4043_v2 = vshrl.u32 %v579_v0, 7  ;;  %s3962_s22 = smov 8  }
  0x10   : > { %545 = vst.msk [vmem:[#allocation2 + $0x120] sm:$0xff] %vm540_vm0, %v5589_v1  ;;  %546 = vst.msk [vmem:[#allocation2 + $0x128] sm:$0xff] %vm540_vm0, %v5589_v1  ;;  %s3704_s11 = sshll.u32 %s5604_s10, 8  ;;  %s3963_s25 = smov 12  }
  0x11   : > { %v4052_v4 = vadd.s32 8, %v4043_v2  ;;  %v4055_v5 = vadd.s32 24, %v4043_v2  ;;  %s4060_s16 = scalar_lea.vmem %s5579_s0, %s3704_s11  ;;  %v4078_v17 = vadd.s32 16, %v4043_v2  ;;  %v612_v43 = vand.u32 15, %v4043_v2  ;;  %s3964_s28 = smov 20  }
  0x12   : > { %v336_v7 = vld [vmem:[%s4060_s16 + $0x10] sm:$0xff]  ;;  %v337_v8 = vld [vmem:[%s4060_s16 + $0x18] sm:$0xff]  ;;  %v334_v9 = vld [vmem:[%s4060_s16] sm:$0xff]  ;;  %s3965_s29 = smov 24   ;;  %s3966_s11 = smov 32  }
  0x13   : > { %v613_v10 = vand.u32 15, %v4052_v4  ;;  %v375_v11 = vmul.f32 %v4049_v3, %v336_v7  ;;  %v376_v12 = vmul.f32 %v4049_v3, %v337_v8  ;;  %v335_v13 = vld [vmem:[%s4060_s16 + $0x8] sm:$0xff]  ;;  %v373_v14 = vmul.f32 %v4049_v3, %v334_v9  ;;  %v338_v15 = vld [vmem:[%s4060_s16 + $0x20] sm:$0xff]  ;;  %v340_v38 = vld [vmem:[%s4060_s16 + $0x30] sm:$0xff]  ;;  %s3967_s27 = smov 56   ;;  %s3969_s12 = smov 48  }
  0x14   : > { %v339_v16 = vld [vmem:[%s4060_s16 + $0x28] sm:$0xff]  ;;  %v374_v20 = vmul.f32 %v4049_v3, %v335_v13  ;;  %v377_v21 = vmul.f32 %v4049_v3, %v338_v15  ;;  %v615_v23 = vand.u32 15, %v4055_v5  ;;  %v614_v46 = vand.u32 15, %v4078_v17  ;;  %v341_v48 = vld [vmem:[%s4060_s16 + $0x38] sm:$0xff] }
  0x15   : > { %v932_v18 = vld [vmem:[#allocation2 + $0x8] sm:$0xff]  ;;  %v933_v19 = vld [vmem:[#allocation2 + $0x10] sm:$0xff]  ;;  %v378_v22 = vmul.f32 %v4049_v3, %v339_v16  ;;  %v414_v25 = vadd.f32 %v4065_v6, %v375_v11  ;;  %v415_v26 = vadd.f32 %v4065_v6, %v376_v12  ;;  %v412_v27 = vadd.f32 %v4065_v6, %v373_v14 }
  0x16   : > { %v964_v24 = vpack.c.bf16 %v933_v19, %v932_v18  ;;  %v413_v28 = vadd.f32 %v4065_v6, %v374_v20  ;;  %v416_v29 = vadd.f32 %v4065_v6, %v377_v21  ;;  %v1094_v31 = vadd.s32 1, %v613_v10  ;;  %v1061_v11 = vld [vmem:[#allocation2 + $0x9] sm:$0xff]  ;;  %v342_v19 = vld [vmem:[%s4060_s16 + $0x40] sm:$0xff] }
  0x17   : > { %v417_v30 = vadd.f32 %v4065_v6, %v378_v22  ;;  %vm446_vm1 = vcmp.ge.f32.partialorder %v414_v25, 0.0  ;;  %vm447_vm2 = vcmp.ge.f32.partialorder %v415_v26, 0.0  ;;  %v478_v32 = vmul.f32 0.01, %v414_v25 }
  0x18   : > { %996 = vrot.lane.b32.xlu0 %v964_v24, %s3959_s19  ;;  %v479_v33 = vmul.f32 0.01, %v415_v26  ;;  %vm444_vm3 = vcmp.ge.f32.partialorder %v412_v27, 0.0  ;;  %vm445_vm4 = vcmp.ge.f32.partialorder %v413_v28, 0.0  ;;  %v476_v34 = vmul.f32 0.01, %v412_v27 }
  0x19   : > { %v477_v35 = vmul.f32 0.01, %v413_v28  ;;  %v4091_v36 = vsel %vm446_vm1, %v414_v25, %v478_v32  ;;  %vm448_vm5 = vcmp.ge.f32.partialorder %v416_v29, 0.0  ;;  %vm449_vm6 = vcmp.ge.f32.partialorder %v417_v30, 0.0 }
  0x1a   : > { %v4093_v37 = vsel %vm447_vm2, %v415_v26, %v479_v33  ;;  %549 = vst.msk [vmem:[#allocation2 + $0x28] sm:$0xff] %vm540_vm0, %v4091_v36  ;;  %v4100_v39 = vsel %vm444_vm3, %v412_v27, %v476_v34  ;;  %v480_v41 = vmul.f32 0.01, %v416_v29  ;;  %v481_v42 = vmul.f32 0.01, %v417_v30 }
  0x1b   : > { %550 = vst.msk [vmem:[#allocation2 + $0x30] sm:$0xff] %vm540_vm0, %v4093_v37  ;;  %v4102_v40 = vsel %vm445_vm4, %v413_v28, %v477_v35  ;;  %547 = vst.msk [vmem:[#allocation2 + $0x18] sm:$0xff] %vm540_vm0, %v4100_v39  ;;  %v379_v47 = vmul.f32 %v4049_v3, %v340_v38  ;;  %vm1158_vm7 = vcmp.lt.s32.totalorder %v1094_v31, 16  ;;  %v1096_v49 = vadd.s32 1, %v615_v23  ;;  %v344_v31 = vld [vmem:[%s4060_s16 + $0x50] sm:$0xff] }
  0x1c   : > { %548 = vst.msk [vmem:[#allocation2 + $0x20] sm:$0xff] %vm540_vm0, %v4102_v40  ;;  %v4109_v44 = vsel %vm448_vm5, %v416_v29, %v480_v41  ;;  %v4111_v45 = vsel %vm449_vm6, %v417_v30, %v481_v42  ;;  %v676_v51 = vadd.s32 4294967295, %v612_v43  ;;  %v678_v52 = vadd.s32 4294967295, %v614_v46  ;;  %v343_v29 = vld [vmem:[%s4060_s16 + $0x48] sm:$0xff] }
  0x1d   : > { %551 = vst.msk [vmem:[#allocation2 + $0x38] sm:$0xff] %vm540_vm0, %v4109_v44  ;;  %552 = vst.msk [vmem:[#allocation2 + $0x40] sm:$0xff] %vm540_vm0, %v4111_v45  ;;  %v418_v50 = vadd.f32 %v4065_v6, %v379_v47  ;;  %v4122_v56 = vsel %vm1158_vm7, 1.0, %v5589_v1  ;;  %v380_v57 = vmul.f32 %v4049_v3, %v341_v48  ;;  %vm1160_vm9 = vcmp.lt.s32.totalorder %v1096_v49, 16 }
  0x1e   : > { %vm708_vm10 = vcmp.ge.s32.totalorder %v676_v51, 0  ;;  %vm710_vm11 = vcmp.ge.s32.totalorder %v678_v52, 0  ;;  %v4140_v13 = vsel %vm1160_vm9, 1.0, %v5589_v1  ;;  %v4151_v18 = vadd.s32 40, %v4043_v2 }
  0x1f   : > { %vm450_vm8 = vcmp.ge.f32.partialorder %v418_v50, 0.0  ;;  %v482_v53 = vmul.f32 0.01, %v418_v50  ;;  %v419_v0 = vadd.f32 %v4065_v6, %v380_v57  ;;  %v4143_v14 = vsel %vm708_vm10, 1.0, %v5589_v1 }
  0x20   : > { %v4148_v16 = vsel %vm710_vm11, 1.0, %v5589_v1  ;;  %v4165_v27 = vadd.s32 56, %v4043_v2  ;;  %v617_v30 = vand.u32 15, %v4151_v18  ;;  %v381_v35 = vmul.f32 %v4049_v3, %v342_v19  ;;  %v346_v19 = vld [vmem:[%s4060_s16 + $0x60] sm:$0xff] }
  0x21   : > { %v1577_v54 = vld [vmem:[#allocation2 + $0x28] sm:$0xff]  ;;  %v4127_v62 = vsel %vm450_vm8, %v418_v50, %v482_v53  ;;  %vm451_vm12 = vcmp.ge.f32.partialorder %v419_v0, 0.0  ;;  %v483_v24 = vmul.f32 0.01, %v419_v0  ;;  %v382_v43 = vmul.f32 %v4049_v3, %v343_v29  ;;  %v3928_v50 = vld [vmem:[%s5582_s3] sm:$0xff]  }
  0x22   : > { %v1578_v55 = vld [vmem:[#allocation2 + $0x30] sm:$0xff]  ;;  %v934_v59 = vld [vmem:[#allocation2 + $0x18] sm:$0xff]  ;;  %553 = vst.msk [vmem:[#allocation2 + $0x48] sm:$0xff] %vm540_vm0, %v4127_v62  ;;  %5596 = vst [vmem:[#allocation6_spill] sm:$0xff] %v4165_v27  ;;  %v4188_v46 = vadd.s32 32, %v4043_v2  ;;  %v4191_v47 = vadd.s32 48, %v4043_v2  ;;  %v420_v48 = vadd.f32 %v4065_v6, %v381_v35  ;;  %v383_v49 = vmul.f32 %v4049_v3, %v344_v31  ;;  %3819 = vmatprep.subr.bf16.mxu0 %v3928_v50 }
  0x23   : > { %v4125_v58 = vpack.c.bf16 %v1578_v55, %v1577_v54  ;;  %v935_v60 = vld [vmem:[#allocation2 + $0x20] sm:$0xff]  ;;  %v1062_v61 = vld [vmem:[#allocation2 + $0x11] sm:$0xff]  ;;  %v4167_v28 = vsel %vm451_vm12, %v419_v0, %v483_v24  ;;  %v1098_v52 = vadd.s32 1, %v617_v30  ;;  %v619_v53 = vand.u32 15, %v4165_v27  ;;  %3820 = vmatpush3.bf16.msra.mxu0 %v3928_v50  ;;  %v347_v30 = vld [vmem:[%s4060_s16 + $0x68] sm:$0xff] }
  0x24   : > { %v965_v63 = vpack.c.bf16 %v935_v60, %v934_v59  ;;  %v2028_v7 = vld [vmem:[#allocation2 + $0x38] sm:$0xff]  ;;  %v2029_v8 = vld [vmem:[#allocation2 + $0x40] sm:$0xff]  ;;  %v1286_v9 = vmul.f32 %v4122_v56, %v1062_v61  ;;  %554 = vst.msk [vmem:[#allocation2 + $0x50] sm:$0xff] %vm540_vm0, %v4167_v28  ;;  %v4183_v41 = vld [vmem:[#allocation2 + $0x2f] sm:$0xff]  ;;  %v421_v54 = vadd.f32 %v4065_v6, %v382_v43  ;;  %vm452_vm13 = vcmp.ge.f32.partialorder %v420_v48, 0.0 }
  0x25   : > { %1641 = vrot.lane.b32.xlu1 %v4125_v58, %s3960_s20  ;;  %v4136_v10 = vpack.c.bf16 %v2029_v8, %v2028_v7  ;;  %v1064_v12 = vld [vmem:[#allocation2 + $0x21] sm:$0xff]  ;;  %v4145_v15 = vld [vmem:[#allocation2 + $0x17] sm:$0xff]  ;;  %5597 = vst [vmem:[#allocation7_spill] sm:$0xff] %v4188_v46  ;;  %5598 = vst [vmem:[#allocation8_spill] sm:$0xff] %v4191_v47  ;;  %v484_v59 = vmul.f32 0.01, %v420_v48  ;;  %v422_v60 = vadd.f32 %v4065_v6, %v383_v49 }
  0x26   : > { %998 = vrot.lane.b32.xlu0 %v965_v63, %s3959_s19  ;;  %v1317_v20 = vpack.c.bf16 %v1286_v9, %v1061_v11  ;;  %v4156_v21 = vld [vmem:[#allocation2 + $0x19] sm:$0xff]  ;;  %v1288_v22 = vmul.f32 %v4140_v13, %v1064_v12  ;;  %v1416_v23 = vld [vmem:[#allocation2 + $0x27] sm:$0xff]  ;;  %v1446_v25 = vmul.f32 %v4143_v14, %v4145_v15  ;;  %v4177_v34 = vld [vmem:[#allocation2 + $0x31] sm:$0xff]  ;;  %v1737_v42 = vmul.f32 %v4122_v56, %v1064_v12 }
  0x27   : > { %v4162_v26 = vld [vmem:[#allocation2 + $0x1f] sm:$0xff]  ;;  %v1448_v33 = vmul.f32 %v4148_v16, %v1416_v23  ;;  %v1739_v51 = vmul.f32 %v4140_v13, %v4177_v34  ;;  %v1897_v0 = vmul.f32 %v4143_v14, %v1416_v23  ;;  %v4211_v7 = vld [vmem:[#allocation2 + $0x37] sm:$0xff]  ;;  %vm453_vm14 = vcmp.ge.f32.partialorder %v421_v54, 0.0 }
  0x28   : > { %v1318_v32 = vpack.c.bf16 %v1288_v22, %v4156_v21  ;;  %v1478_v38 = vpack.c.bf16 %v4162_v26, %v1446_v25  ;;  %v345_v55 = vld [vmem:[%s4060_s16 + $0x58] sm:$0xff]  ;;  %v1768_v61 = vpack.c.bf16 %v1737_v42, %v4156_v21  ;;  %v485_v8 = vmul.f32 0.01, %v421_v54  ;;  %v3929_v22 = vld [vmem:[%s5582_s3 + $0x8] sm:$0xff]   ;;  %v348_v35 = vld [vmem:[%s4060_s16 + $0x70] sm:$0xff] }
  0x29   : > { %2092 = vrot.lane.b32.xlu1 %v4136_v10, %s3961_s21  ;;  %v1479_v57 = vpack.c.bf16 %v4183_v41, %v1448_v33  ;;  %v4213_v9 = vsel %vm452_vm13, %v420_v48, %v484_v59  ;;  %vm454_vm15 = vcmp.ge.f32.partialorder %v422_v60, 0.0  ;;  %v486_v11 = vmul.f32 0.01, %v422_v60  ;;  %3821 = vmatprep.subr.bf16.mxu0 %v3929_v22 }
  0x2a   : > { %1639 = vrot.lane.b32.xlu0 %v965_v63, %s3960_s20  ;;  %v4208_v63 = vld [vmem:[#allocation2 + $0x29] sm:$0xff]  ;;  %v384_v12 = vmul.f32 %v4049_v3, %v345_v55  ;;  %555 = vst.msk [vmem:[#allocation2 + $0x58] sm:$0xff] %vm540_vm0, %v4213_v9  ;;  %v4220_v21 = vsel %vm453_vm14, %v421_v54, %v485_v8  ;;  %v1899_v24 = vmul.f32 %v4148_v16, %v4211_v7  ;;  %vm1162_vm1 = vcmp.lt.s32.totalorder %v1098_v52, 16 }
  0x2b   : > { %v1769_v23 = vpack.c.bf16 %v1739_v51, %v4208_v63  ;;  %v2188_v25 = vmul.f32 %v4122_v56, %v4177_v34  ;;  %556 = vst.msk [vmem:[#allocation2 + $0x60] sm:$0xff] %vm540_vm0, %v4220_v21  ;;  %v4233_v29 = vsel %vm454_vm15, %v422_v60, %v486_v11  ;;  %v1929_v31 = vpack.c.bf16 %v4183_v41, %v1897_v0  ;;  %v4263_v60 = vld [vmem:[#allocation2 + $0x39] sm:$0xff] }
  0x2c   : > { %557 = vst.msk [vmem:[#allocation2 + $0x68] sm:$0xff] %vm540_vm0, %v4233_v29  ;;  %v423_v33 = vadd.f32 %v4065_v6, %v384_v12  ;;  %v385_v56 = vmul.f32 %v4049_v3, %v346_v19  ;;  %v1100_v42 = vadd.s32 1, %v619_v53  ;;  %v618_v43 = vand.u32 15, %v4191_v47  ;;  %3822 = vmatpush3.bf16.msra.mxu0 %v3929_v22  ;;  %v349_v0 = vld [vmem:[%s4060_s16 + $0x78] sm:$0xff] }
  0x2d   : > { %1349 = vrot.lane.b32.xlu1 %v1317_v20, %s3962_s22  ;;  %v616_v20 = vand.u32 15, %v4188_v46  ;;  %v386_v49 = vmul.f32 %v4049_v3, %v347_v30  ;;  %v387_v54 = vmul.f32 %v4049_v3, %v348_v35  ;;  %v2219_v53 = vpack.c.bf16 %v2188_v25, %v4208_v63  ;;  %v644_v35 = vld [vmem:[#allocation2 + $0x7] sm:$0xff] }
  0x2e   : > { %2090 = vrot.lane.b32.xlu0 %v4125_v58, %s3961_s21  ;;  %vm455_vm2 = vcmp.ge.f32.partialorder %v423_v33, 0.0  ;;  %v487_v41 = vmul.f32 0.01, %v423_v33  ;;  %v424_v51 = vadd.f32 %v4065_v6, %v385_v56  ;;  %vm1164_vm3 = vcmp.lt.s32.totalorder %v1100_v42, 16 }
  0x2f   : > { %v680_v48 = vadd.s32 4294967295, %v616_v20  ;;  %v425_v8 = vadd.f32 %v4065_v6, %v386_v49  ;;  %v426_v11 = vadd.f32 %v4065_v6, %v387_v54  ;;  %v4276_v19 = vsel %vm1164_vm3, 1.0, %v5589_v1  ;;  %v645_v49 = vld [vmem:[#allocation2 + $0xf] sm:$0xff] }
  0x30   : > { %v4261_v59 = vsel %vm455_vm2, %v423_v33, %v487_v41  ;;  %vm456_vm5 = vcmp.ge.f32.partialorder %v424_v51, 0.0  ;;  %v488_v52 = vmul.f32 0.01, %v424_v51  ;;  %v388_v20 = vmul.f32 %v4049_v3, %v349_v0 }
  0x31   : > { %1351 = vrot.lane.b32.xlu1 %v1318_v32, %s3962_s22  ;;  %v4238_v32 = vld [vmem:[#allocation2 + $0x3f] sm:$0xff]  ;;  %558 = vst.msk [vmem:[#allocation2 + $0x70] sm:$0xff] %vm540_vm0, %v4261_v59  ;;  %vm712_vm4 = vcmp.ge.s32.totalorder %v680_v48, 0  ;;  %vm457_vm7 = vcmp.ge.f32.partialorder %v425_v8, 0.0  ;;  %v489_v25 = vmul.f32 0.01, %v425_v8  ;;  %v868_v54 = vmul.f32 %v4143_v14, %v644_v35 }
  0x32   : > { %1510 = vrot.lane.b32.xlu0 %v1478_v38, %s3963_s25  ;;  %v4245_v38 = vld [vmem:[#allocation2 + $0x41] sm:$0xff]  ;;  %v1930_v50 = vpack.c.bf16 %v4238_v32, %v1899_v24  ;;  %v4280_v22 = vsel %vm712_vm4, 1.0, %v5589_v1  ;;  %vm458_vm8 = vcmp.ge.f32.partialorder %v426_v11, 0.0  ;;  %v490_v33 = vmul.f32 0.01, %v426_v11  ;;  %v4343_v35 = vld [vmem:[#allocation2 + $0x57] sm:$0xff] }
  0x33   : > { %v2190_v55 = vmul.f32 %v4140_v13, %v4245_v38  ;;  %v1292_v24 = vmul.f32 %v4276_v19, %v4245_v38  ;;  %v1450_v30 = vmul.f32 %v4280_v22, %v4211_v7  ;;  %v4298_v56 = vsel %vm457_vm7, %v425_v8, %v489_v25 }
  0x34   : > { %560 = vst.msk [vmem:[#allocation2 + $0x80] sm:$0xff] %vm540_vm0, %v4298_v56  ;;  %v4302_v42 = vsel %vm458_vm8, %v426_v11, %v490_v33  ;;  %v900_v0 = vpack.c.bf16 %v645_v49, %v868_v54  ;;  %v870_v25 = vmul.f32 %v4148_v16, %v4145_v15  ;;  %v4340_v33 = vld [vmem:[#allocation2 + $0x49] sm:$0xff]  ;;  %v590_v15 = vadd.s32 80, %v4043_v2 }
  0x35   : > { %1512 = vrot.lane.b32.xlu1 %v1479_v57, %s3963_s25  ;;  %v4259_v57 = vsel %vm1162_vm1, 1.0, %v5589_v1  ;;  %v2220_v12 = vpack.c.bf16 %v2190_v55, %v4263_v60  ;;  %v1320_v7 = vpack.c.bf16 %v1292_v24, %v4263_v60  ;;  %561 = vst.msk [vmem:[#allocation2 + $0x88] sm:$0xff] %vm540_vm0, %v4302_v42  ;;  %vm2401_vm3 = vcmask 1041408  }
  0x36   : > { %1800 = vrot.lane.b32.xlu0 %v1768_v61, %s3964_s28  ;;  %v682_v61 = vadd.s32 4294967295, %v618_v43  ;;  %v1290_v13 = vmul.f32 %v4259_v57, %v4177_v34  ;;  %v350_v43 = vld [vmem:[%s4060_s16 + $0x80] sm:$0xff]  ;;  %v1741_v14 = vmul.f32 %v4259_v57, %v4245_v38  ;;  %916 = vst.msk [vmem:[#allocation3] sm:$0xff] %vm540_vm0, %v900_v0  ;;  %v5599_v47 = vmov 0.0  }
  0x37   : > { %v389_v55 = vmul.f32 %v4049_v3, %v350_v43  ;;  %v4361_v0 = vld [vmem:[#allocation2 + $0x5f] sm:$0xff] }
  0x38   : > { %vm714_vm6 = vcmp.ge.s32.totalorder %v682_v61, 0  ;;  %v1319_v34 = vpack.c.bf16 %v1290_v13, %v4208_v63  ;;  %v427_v63 = vadd.f32 %v4065_v6, %v388_v20  ;;  %v589_v61 = vadd.s32 72, %v4043_v2  ;;  %v1581_v13 = vld [vmem:[#allocation2 + $0x48] sm:$0xff] }
  0x39   : > { %1802 = vrot.lane.b32.xlu1 %v1769_v23, %s3964_s28  ;;  %v4282_v23 = vsel %vm456_vm5, %v424_v51, %v488_v52  ;;  %v1421_v51 = vld [vmem:[#allocation2 + $0x4f] sm:$0xff]  ;;  %v428_v11 = vadd.f32 %v4065_v6, %v389_v55  ;;  %v353_v55 = vld [vmem:[%s4060_s16 + $0x98] sm:$0xff] }
  0x3a   : > { %1961 = vrot.lane.b32.xlu0 %v1929_v31, %s3965_s29  ;;  %559 = vst.msk [vmem:[#allocation2 + $0x78] sm:$0xff] %vm540_vm0, %v4282_v23  ;;  %v4295_v31 = vsel %vm714_vm6, 1.0, %v5589_v1  ;;  %vm459_vm9 = vcmp.ge.f32.partialorder %v427_v63, 0.0  ;;  %v491_v41 = vmul.f32 0.01, %v427_v63  ;;  %v4324_v52 = vld [vmem:[#allocation2 + $0x51] sm:$0xff] }
  0x3b   : > { %v621_v20 = vand.u32 15, %v589_v61  ;;  %v1743_v38 = vmul.f32 %v4276_v19, %v4324_v52  ;;  %vm460_vm10 = vcmp.ge.f32.partialorder %v428_v11, 0.0  ;;  %v492_v43 = vmul.f32 0.01, %v428_v11 }
  0x3d   : > { %1963 = vrot.lane.b32.xlu1 %v1930_v50, %s3965_s29  ;;  %v1480_v50 = vpack.c.bf16 %v4238_v32, %v1450_v30  ;;  %v1582_v32 = vld [vmem:[#allocation2 + $0x50] sm:$0xff]  ;;  %v1770_v30 = vpack.c.bf16 %v1741_v14, %v4263_v60  ;;  %v1102_v49 = vadd.s32 1, %v621_v20  ;;  %v4348_v16 = vsel %vm460_vm10, %v428_v11, %v492_v43  ;;  %v4374_v43 = vld [vmem:[#allocation2 + $0x61] sm:$0xff] }
  0x3e   : > { %2251 = vrot.lane.b32.xlu0 %v2219_v53, %s3966_s11  ;;  %v4314_v53 = vsel %vm459_vm9, %v427_v63, %v491_v41  ;;  %v4331_v24 = vpack.c.bf16 %v1582_v32, %v1581_v13  ;;  %v352_v41 = vld [vmem:[%s4060_s16 + $0x90] sm:$0xff]  ;;  %v1903_v60 = vmul.f32 %v4295_v31, %v4343_v35  ;;  %563 = vst.msk [vmem:[#allocation2 + $0x98] sm:$0xff] %vm540_vm0, %v4348_v16 }
  0x3f   : > { %562 = vst.msk [vmem:[#allocation2 + $0x90] sm:$0xff] %vm540_vm0, %v4314_v53  ;;  %vm1166_vm11 = vcmp.lt.s32.totalorder %v1102_v49, 16  ;;  %v650_v49 = vld [vmem:[#allocation2 + $0x37] sm:$0xff] }
  0x41   : > { %1000 = vrot.lane.b32.xlu1 %v4125_v58, %s3959_s19  ;;  %v1420_v58 = vld [vmem:[#allocation2 + $0x47] sm:$0xff] }
  0x42   : > { %2253 = vrot.lane.b32.xlu0 %v2220_v12, %s3966_s11  ;;  %v1452_v48 = vmul.f32 %v4295_v31, %v1420_v58  ;;  %v591_v12 = vadd.s32 88, %v4043_v2  ;;  %v1901_v63 = vmul.f32 %v4280_v22, %v1420_v58  ;;  %v901_v58 = vpack.c.bf16 %v4162_v26, %v870_v25 }
  0x43   : > { %v392_v26 = vmul.f32 %v4049_v3, %v353_v55  ;;  %v2192_v25 = vmul.f32 %v4259_v57, %v4324_v52  ;;  %v4387_v57 = vsel %vm1166_vm11, 1.0, %v5589_v1  ;;  %v4397_v55 = vld [vmem:[#allocation2 + $0x59] sm:$0xff] }
  0x44   : > { %v1481_v8 = vpack.c.bf16 %v1421_v51, %v1452_v48  ;;  %v623_v48 = vand.u32 15, %v591_v12  ;;  %v1931_v61 = vpack.c.bf16 %v1421_v51, %v1901_v63  ;;  %917 = vst.msk [vmem:[#allocation3 + $0x8] sm:$0xff] %vm540_vm0, %v901_v58  ;;  %v1932_v12 = vpack.c.bf16 %v4361_v0, %v1903_v60  ;;  %v648_v58 = vld [vmem:[#allocation2 + $0x27] sm:$0xff] }
  0x45   : > { %1002 = vrot.lane.b32.xlu1 %v4136_v10, %s3959_s19  ;;  %v622_v51 = vand.u32 15, %v590_v15  ;;  %v431_v63 = vadd.f32 %v4065_v6, %v392_v26  ;;  %v2194_v15 = vmul.f32 %v4276_v19, %v4374_v43  ;;  %v651_v26 = vld [vmem:[#allocation2 + $0x3f] sm:$0xff] }
  0x46   : > { %1353 = vrot.lane.b32.xlu0 %v1319_v34, %s3962_s22  ;;  %v588_v34 = vadd.s32 64, %v4043_v2  ;;  %v1104_v13 = vadd.s32 1, %v623_v48 }
  0x47   : > { %vm463_vm1 = vcmp.ge.f32.partialorder %v431_v63, 0.0  ;;  %v495_v60 = vmul.f32 0.01, %v431_v63 }
  0x48   : > { %vm1168_vm14 = vcmp.lt.s32.totalorder %v1104_v13, 16  ;;  %v872_v13 = vmul.f32 %v4280_v22, %v648_v58 }
  0x49   : > { %1355 = vrot.lane.b32.xlu1 %v1320_v7, %s3962_s22  ;;  %v351_v7 = vld [vmem:[%s4060_s16 + $0x88] sm:$0xff]  ;;  %v4410_v19 = vsel %vm463_vm1, %v431_v63, %v495_v60 }
  0x4a   : > { %1514 = vrot.lane.b32.xlu0 %v1480_v50, %s3963_s25  ;;  %v620_v50 = vand.u32 15, %v588_v34  ;;  %v390_v54 = vmul.f32 %v4049_v3, %v351_v7  ;;  %v2032_v34 = vld [vmem:[#allocation2 + $0x58] sm:$0xff]  ;;  %566 = vst.msk [vmem:[#allocation2 + $0xb0] sm:$0xff] %vm540_vm0, %v4410_v19 }
  0x4c   : > { %v429_v32 = vadd.f32 %v4065_v6, %v390_v54  ;;  %v684_v14 = vadd.s32 4294967295, %v620_v50  ;;  %v2221_v50 = vpack.c.bf16 %v2192_v25, %v4340_v33  ;;  %v354_v54 = vld [vmem:[%s4060_s16 + $0xa0] sm:$0xff] }
  0x4d   : > { %1516 = vrot.lane.b32.xlu1 %v1481_v8, %s3963_s25  ;;  %v391_v8 = vmul.f32 %v4049_v3, %v352_v41 }
  0x4e   : > { %1643 = vrot.lane.b32.xlu0 %v4136_v10, %s3960_s20  ;;  %v1771_v10 = vpack.c.bf16 %v1743_v38, %v4340_v33  ;;  %vm461_vm12 = vcmp.ge.f32.partialorder %v429_v32, 0.0  ;;  %v493_v20 = vmul.f32 0.01, %v429_v32  ;;  %v2033_v38 = vld [vmem:[#allocation2 + $0x60] sm:$0xff]  ;;  %vm716_vm15 = vcmp.ge.s32.totalorder %v684_v14, 0 }
  0x4f   : > { %v430_v11 = vadd.f32 %v4065_v6, %v391_v8  ;;  %v4383_v41 = vpack.c.bf16 %v2033_v38, %v2032_v34  ;;  %v355_v8 = vld [vmem:[%s4060_s16 + $0xa8] sm:$0xff]  ;;  %v4408_v14 = vsel %vm716_vm15, 1.0, %v5589_v1  ;;  %v2222_v34 = vpack.c.bf16 %v2194_v15, %v4397_v55 }
  0x50   : > { %v4376_v7 = vsel %vm461_vm12, %v429_v32, %v493_v20  ;;  %v4405_v32 = vsel %vm1168_vm14, 1.0, %v5589_v1  ;;  %v874_v20 = vmul.f32 %v4295_v31, %v650_v49  ;;  %v394_v38 = vmul.f32 %v4049_v3, %v355_v8  ;;  %v652_v8 = vld [vmem:[#allocation2 + $0x47] sm:$0xff] }
  0x51   : > { %1645 = vrot.lane.b32.xlu1 %v4331_v24, %s3960_s20  ;;  %vm462_vm13 = vcmp.ge.f32.partialorder %v430_v11, 0.0  ;;  %564 = vst.msk [vmem:[#allocation2 + $0xa0] sm:$0xff] %vm540_vm0, %v4376_v7  ;;  %v1296_v31 = vmul.f32 %v4405_v32, %v4374_v43  ;;  %v1454_v63 = vmul.f32 %v4408_v14, %v4343_v35 }
  0x52   : > { %1804 = vrot.lane.b32.xlu0 %v1770_v30, %s3964_s28  ;;  %v494_v30 = vmul.f32 0.01, %v430_v11 }
  0x54   : > { %v4380_v48 = vsel %vm462_vm13, %v430_v11, %v494_v30  ;;  %v649_v11 = vld [vmem:[#allocation2 + $0x2f] sm:$0xff]  ;;  %v903_v30 = vpack.c.bf16 %v651_v26, %v874_v20 }
  0x55   : > { %1806 = vrot.lane.b32.xlu1 %v1771_v10, %s3964_s28  ;;  %565 = vst.msk [vmem:[#allocation2 + $0xa8] sm:$0xff] %vm540_vm0, %v4380_v48  ;;  %v686_v10 = vadd.s32 4294967295, %v622_v51  ;;  %v393_v51 = vmul.f32 %v4049_v3, %v354_v54  ;;  %v902_v25 = vpack.c.bf16 %v649_v11, %v872_v13  ;;  %v433_v54 = vadd.f32 %v4065_v6, %v394_v38  ;;  %v4455_v26 = vld [vmem:[#allocation2 + $0x6f] sm:$0xff] }
  0x56   : > { %1965 = vrot.lane.b32.xlu0 %v1931_v61, %s3965_s29  ;;  %v3930_v61 = vld [vmem:[%s5582_s3 + $0x10] ss:$0 sps:$4 sm:$0x33]   ;;  %919 = vst.msk [vmem:[#allocation3 + $0x18] sm:$0xff] %vm540_vm0, %v903_v30  ;;  %v1482_v11 = vpack.c.bf16 %v4361_v0, %v1454_v63  ;;  %v876_v38 = vmul.f32 %v4408_v14, %v652_v8 }
  0x57   : > { %vm718_vm2 = vcmp.ge.s32.totalorder %v686_v10, 0  ;;  %3903 = vmatprep.subr.msk.bf16.mxu0 %vm2401_vm3, %v3930_v61  ;;  %v2403_v22 = vsel %vm2401_vm3, %v3930_v61, 0  ;;  %918 = vst.msk [vmem:[#allocation3 + $0x10] sm:$0xff] %vm540_vm0, %v902_v25  ;;  %v357_v61 = vld [vmem:[%s4060_s16 + $0xb8] sm:$0xff]  ;;  %vm465_vm5 = vcmp.ge.f32.partialorder %v433_v54, 0.0  ;;  %v358_v25 = vld [vmem:[%s4060_s16 + $0xc0] sm:$0xff] }
  0x58   : > { %3824 = vmatpush3.bf16.msra.mxu0 %v2403_v22  ;;  %v4440_v60 = vsel %vm718_vm2, 1.0, %v5589_v1  ;;  %v497_v13 = vmul.f32 0.01, %v433_v54  ;;  %v396_v20 = vmul.f32 %v4049_v3, %v357_v61  ;;  %v1745_v22 = vmul.f32 %v4387_v57, %v4374_v43 }
  0x59   : > { %1967 = vrot.lane.b32.xlu1 %v1932_v12, %s3965_s29  ;;  %v1294_v12 = vmul.f32 %v4387_v57, %v4324_v52  ;;  %v432_v52 = vadd.f32 %v4065_v6, %v393_v51  ;;  %v397_v43 = vmul.f32 %v4049_v3, %v358_v25 }
  0x5a   : > { %2094 = vrot.lane.b32.xlu0 %v4331_v24, %s3961_s21  ;;  %v435_v63 = vadd.f32 %v4065_v6, %v396_v20  ;;  %v655_v20 = vld [vmem:[#allocation2 + $0x5f] sm:$0xff] }
  0x5b   : > { %v1321_v15 = vpack.c.bf16 %v1294_v12, %v4340_v33  ;;  %vm464_vm4 = vcmp.ge.f32.partialorder %v432_v52, 0.0  ;;  %v496_v58 = vmul.f32 0.01, %v432_v52  ;;  %v1322_v33 = vpack.c.bf16 %v1296_v31, %v4397_v55 }
  0x5c   : > { %v592_v12 = vadd.s32 96, %v4043_v2  ;;  %v593_v31 = vadd.s32 104, %v4043_v2  ;;  %vm467_vm7 = vcmp.ge.f32.partialorder %v435_v63, 0.0 }
  0x5d   : > { %2096 = vrot.lane.b32.xlu1 %v4383_v41, %s3961_s21  ;;  %v4443_v49 = vsel %vm464_vm4, %v432_v52, %v496_v58  ;;  %v4462_v52 = vsel %vm465_vm5, %v433_v54, %v497_v13  ;;  %v1586_v58 = vld [vmem:[#allocation2 + $0x70] sm:$0xff]  ;;  %vm1044_vm4 = vcmask 64544  }
  0x5e   : > { %2255 = vrot.lane.b32.xlu0 %v2221_v50, %s3966_s11  ;;  %v356_v50 = vld [vmem:[%s4060_s16 + $0xb0] sm:$0xff]  ;;  %567 = vst.msk [vmem:[#allocation2 + $0xb8] sm:$0xff] %vm540_vm0, %v4443_v49  ;;  %568 = vst.msk [vmem:[#allocation2 + $0xc0] sm:$0xff] %vm540_vm0, %v4462_v52 }
  0x5f   : > { %v395_v35 = vmul.f32 %v4049_v3, %v356_v50  ;;  %v654_v50 = vld [vmem:[#allocation2 + $0x57] sm:$0xff] }
  0x60   : > { %v4473_v54 = vld [vmem:[#allocation2 + $0x71] sm:$0xff] }
  0x61   : > { %1004 = vrot.lane.b32.xlu1 %v4331_v24, %s3959_s19  ;;  %v1424_v24 = vld [vmem:[#allocation2 + $0x67] sm:$0xff]  ;;  %v434_v51 = vadd.f32 %v4065_v6, %v395_v35  ;;  %v624_v35 = vand.u32 15, %v592_v12  ;;  %v1747_v13 = vmul.f32 %v4405_v32, %v4473_v54 }
  0x62   : > { %2257 = vrot.lane.b32.xlu0 %v2222_v34, %s3966_s11  ;;  %v1456_v10 = vmul.f32 %v4440_v60, %v1424_v24  ;;  %v653_v34 = vld [vmem:[#allocation2 + $0x4f] sm:$0xff]  ;;  %v1905_v25 = vmul.f32 %v4408_v14, %v1424_v24 }
  0x63   : > { %vm466_vm6 = vcmp.ge.f32.partialorder %v434_v51, 0.0  ;;  %v498_v30 = vmul.f32 0.01, %v434_v51  ;;  %v904_v8 = vpack.c.bf16 %v653_v34, %v876_v38  ;;  %v1772_v34 = vpack.c.bf16 %v1745_v22, %v4397_v55  ;;  %v4491_v38 = vld [vmem:[#allocation2 + $0x69] sm:$0xff] }
  0x64   : > { %v1483_v0 = vpack.c.bf16 %v4455_v26, %v1456_v10  ;;  %v436_v10 = vadd.f32 %v4065_v6, %v397_v43  ;;  %v1773_v14 = vpack.c.bf16 %v1747_v13, %v4491_v38  ;;  %v4513_v43 = vld [vmem:[#allocation2 + $0x7f] sm:$0xff] }
  0x65   : > { %1006 = vrot.lane.b32.xlu1 %v4383_v41, %s3959_s19  ;;  %v4475_v61 = vsel %vm466_vm6, %v434_v51, %v498_v30  ;;  %920 = vst.msk [vmem:[#allocation3 + $0x20] sm:$0xff] %vm540_vm0, %v904_v8  ;;  %v625_v51 = vand.u32 15, %v593_v31  ;;  %v4494_v30 = vld [vmem:[#allocation2 + $0x77] sm:$0xff]  ;;  %v594_v31 = vadd.s32 112, %v4043_v2  ;;  %v1933_v8 = vpack.c.bf16 %v4455_v26, %v1905_v25 }
  0x66   : > { %1357 = vrot.lane.b32.xlu0 %v1321_v15, %s3962_s22  ;;  %v1585_v15 = vld [vmem:[#allocation2 + $0x68] sm:$0xff]  ;;  %569 = vst.msk [vmem:[#allocation2 + $0xc8] sm:$0xff] %vm540_vm0, %v4475_v61  ;;  %vm468_vm8 = vcmp.ge.f32.partialorder %v436_v10, 0.0  ;;  %v500_v55 = vmul.f32 0.01, %v436_v10  ;;  %v1907_v24 = vmul.f32 %v4440_v60, %v4494_v30  ;;  %v2196_v25 = vmul.f32 %v4387_v57, %v4473_v54  ;;  %v362_v57 = vld [vmem:[%s4060_s16 + $0xe0] sm:$0xff] }
  0x67   : > { %v4484_v12 = vpack.c.bf16 %v1586_v58, %v1585_v15  ;;  %v359_v15 = vld [vmem:[%s4060_s16 + $0xc8] sm:$0xff]  ;;  %v595_v58 = vadd.s32 120, %v4043_v2 }
  0x69   : > { %1359 = vrot.lane.b32.xlu1 %v1322_v33, %s3962_s22  ;;  %v499_v33 = vmul.f32 0.01, %v435_v63  ;;  %v627_v13 = vand.u32 15, %v595_v58  ;;  %v2037_v58 = vld [vmem:[#allocation2 + $0x80] sm:$0xff] }
  0x6a   : > { %1518 = vrot.lane.b32.xlu0 %v1482_v11, %s3963_s25  ;;  %v878_v11 = vmul.f32 %v4440_v60, %v654_v50  ;;  %v361_v60 = vld [vmem:[%s4060_s16 + $0xd8] sm:$0xff] }
  0x6b   : > { %v4497_v50 = vsel %vm467_vm7, %v435_v63, %v499_v33  ;;  %v1106_v63 = vadd.s32 1, %v625_v51  ;;  %v4515_v33 = vsel %vm468_vm8, %v436_v10, %v500_v55  ;;  %v656_v51 = vld [vmem:[#allocation2 + $0x67] sm:$0xff]  ;;  %v1934_v10 = vpack.c.bf16 %v4513_v43, %v1907_v24  ;;  %v657_v55 = vld [vmem:[#allocation2 + $0x6f] sm:$0xff] }
  0x6c   : > { %570 = vst.msk [vmem:[#allocation2 + $0xd0] sm:$0xff] %vm540_vm0, %v4497_v50  ;;  %v905_v22 = vpack.c.bf16 %v655_v20, %v878_v11  ;;  %v626_v20 = vand.u32 15, %v594_v31  ;;  %571 = vst.msk [vmem:[#allocation2 + $0xd8] sm:$0xff] %vm540_vm0, %v4515_v33  ;;  %v1108_v24 = vadd.s32 1, %v627_v13 }
  0x6d   : > { %1520 = vrot.lane.b32.xlu1 %v1483_v0, %s3963_s25  ;;  %v688_v0 = vadd.s32 4294967295, %v624_v35  ;;  %v398_v35 = vmul.f32 %v4049_v3, %v359_v15  ;;  %vm1170_vm10 = vcmp.lt.s32.totalorder %v1106_v63, 16  ;;  %v2036_v15 = vld [vmem:[#allocation2 + $0x78] sm:$0xff]  ;;  %v401_v63 = vmul.f32 %v4049_v3, %v362_v57 }
  0x6e   : > { %1647 = vrot.lane.b32.xlu0 %v4383_v41, %s3960_s20  ;;  %v360_v41 = vld [vmem:[%s4060_s16 + $0xd0] sm:$0xff]  ;;  %921 = vst.msk [vmem:[#allocation3 + $0x28] sm:$0xff] %vm540_vm0, %v905_v22  ;;  %v4544_v46 = vsel %vm1170_vm10, 1.0, %v5599_v47  ;;  %vm1172_vm13 = vcmp.lt.s32.totalorder %v1108_v24, 16  ;;  %v596_v57 = vadd.s32 128, %v4043_v2 }
  0x6f   : > { %vm720_vm9 = vcmp.ge.s32.totalorder %v688_v0, 0  ;;  %v399_v11 = vmul.f32 %v4049_v3, %v360_v41  ;;  %v400_v41 = vmul.f32 %v4049_v3, %v361_v60  ;;  %v2223_v60 = vpack.c.bf16 %v2196_v25, %v4491_v38  ;;  %v363_v25 = vld [vmem:[%s4060_s16 + $0xe8] sm:$0xff] }
  0x70   : > { %v4529_v0 = vsel %vm720_vm9, 1.0, %v5589_v1 }
  0x71   : > { %1649 = vrot.lane.b32.xlu1 %v4484_v12, %s3960_s20  ;;  %v438_v26 = vadd.f32 %v4065_v6, %v399_v11  ;;  %v880_v22 = vmul.f32 %v4529_v0, %v656_v51  ;;  %v439_v13 = vadd.f32 %v4065_v6, %v400_v41 }
  0x72   : > { %1808 = vrot.lane.b32.xlu0 %v1772_v34, %s3964_s28  ;;  %v437_v34 = vadd.f32 %v4065_v6, %v398_v35  ;;  %v690_v35 = vadd.s32 4294967295, %v626_v20 }
  0x73   : > { %vm470_vm12 = vcmp.ge.f32.partialorder %v438_v26, 0.0  ;;  %v502_v1 = vmul.f32 0.01, %v438_v26  ;;  %v906_v20 = vpack.c.bf16 %v657_v55, %v880_v22  ;;  %vm471_vm15 = vcmp.ge.f32.partialorder %v439_v13, 0.0  ;;  %v659_v55 = vld [vmem:[#allocation2 + $0x7f] sm:$0xff] }
  0x74   : > { %vm469_vm11 = vcmp.ge.f32.partialorder %v437_v34, 0.0  ;;  %v501_v31 = vmul.f32 0.01, %v437_v34  ;;  %vm722_vm14 = vcmp.ge.s32.totalorder %v690_v35, 0  ;;  %v503_v3 = vmul.f32 0.01, %v439_v13 }
  0x75   : > { %1810 = vrot.lane.b32.xlu1 %v1773_v14, %s3964_s28  ;;  %v4534_v14 = vld [vmem:[#allocation2 + $0x81] sm:$0xff]  ;;  %922 = vst.msk [vmem:[#allocation3 + $0x30] sm:$0xff] %vm540_vm0, %v906_v20  ;;  %v364_v35 = vld [vmem:[%s4060_s16 + $0xf0] sm:$0xff]  ;;  %v365_v20 = vld [vmem:[%s4060_s16 + $0xf8] sm:$0xff] }
  0x76   : > { %1969 = vrot.lane.b32.xlu0 %v1933_v8, %s3965_s29  ;;  %v4537_v11 = vsel %vm469_vm11, %v437_v34, %v501_v31  ;;  %v4540_v8 = vpack.c.bf16 %v2037_v58, %v2036_v15  ;;  %v2198_v51 = vmul.f32 %v4405_v32, %v4534_v14  ;;  %v4554_v34 = vsel %vm470_vm12, %v438_v26, %v502_v1  ;;  %v658_v15 = vld [vmem:[#allocation2 + $0x77] sm:$0xff] }
  0x77   : > { %572 = vst.msk [vmem:[#allocation2 + $0xe0] sm:$0xff] %vm540_vm0, %v4537_v11  ;;  %573 = vst.msk [vmem:[#allocation2 + $0xe8] sm:$0xff] %vm540_vm0, %v4554_v34  ;;  %v1298_v1 = vmul.f32 %v4544_v46, %v4473_v54  ;;  %v4570_v26 = vsel %vm1172_vm13, 1.0, %v5599_v47  ;;  %v4573_v58 = vsel %vm722_vm14, 1.0, %v5599_v47  ;;  %v440_v31 = vadd.f32 %v4065_v6, %v401_v63  ;;  %v3948_v54 = vld [vmem:[%s5580_s1] ss:$0 sm:$0xff] }
  0x78   : > { %v4576_v41 = vsel %vm471_vm15, %v439_v13, %v503_v3  ;;  %v882_v22 = vmul.f32 %v4573_v58, %v658_v15  ;;  %v402_v24 = vmul.f32 %v3948_v54, %v363_v25  ;;  %v1300_v13 = vmul.f32 %v4570_v26, %v4534_v14  ;;  %v1428_v63 = vld [vmem:[#allocation2 + $0x87] sm:$0xff]  ;;  %v3949_v25 = vld [vmem:[%s5581_s2] ss:$0 sm:$0xff] }
  0x79   : > { %1971 = vrot.lane.b32.xlu1 %v1934_v10, %s3965_s29  ;;  %v4557_v10 = vld [vmem:[#allocation2 + $0x79] sm:$0xff]  ;;  %574 = vst.msk [vmem:[#allocation2 + $0xf0] sm:$0xff] %vm540_vm0, %v4576_v41  ;;  %v1323_v6 = vpack.c.bf16 %v1298_v1, %v4491_v38  ;;  %vm472_vm1 = vcmp.ge.f32.partialorder %v440_v31, 0.0  ;;  %v404_v27 = vmul.f32 %v3948_v54, %v365_v20  ;;  %v628_v38 = vand.u32 15, %v596_v57 }
  0x7a   : > { %2098 = vrot.lane.b32.xlu0 %v4484_v12, %s3961_s21  ;;  %v2224_v32 = vpack.c.bf16 %v2198_v51, %v4557_v10  ;;  %v1458_v51 = vmul.f32 %v4529_v0, %v4494_v30  ;;  %v907_v15 = vpack.c.bf16 %v659_v55, %v882_v22  ;;  %v441_v3 = vadd.f32 %v3949_v25, %v402_v24  ;;  %v1429_v22 = vld [vmem:[#allocation2 + $0x8f] sm:$0xff] }
  0x7b   : > { %v1460_v30 = vmul.f32 %v4573_v58, %v1428_v63  ;;  %v598_v24 = vadd.s32 144, %v4043_v2  ;;  %v692_v57 = vadd.s32 4294967295, %v628_v38  ;;  %v597_v38 = vadd.s32 136, %v4043_v2 }
  0x7c   : > { %923 = vst.msk [vmem:[#allocation3 + $0x38] sm:$0xff] %vm540_vm0, %v907_v15  ;;  %vm473_vm2 = vcmp.ge.f32.partialorder %v441_v3, 0.0  ;;  %v1484_v55 = vpack.c.bf16 %v4513_v43, %v1458_v51  ;;  %v1589_v43 = vld [vmem:[#allocation2 + $0x88] sm:$0xff]  ;;  %v1749_v51 = vmul.f32 %v4544_v46, %v4534_v14  ;;  %v4618_v15 = vld [vmem:[#allocation2 + $0x91] sm:$0xff]  ;;  %vm1397_vm11 = vcmask 97344  }
  0x7d   : > { %2100 = vrot.lane.b32.xlu1 %v4540_v8, %s3961_s21  ;;  %vm724_vm7 = vcmp.ge.s32.totalorder %v692_v57, 0  ;;  %vm1558_vm12 = vcmask 130144   ;;  %vm1687_vm13 = vcmask 162944   ;;  %vm1848_vm14 = vcmask 195744  }
  0x7e   : > { %2259 = vrot.lane.b32.xlu0 %v2223_v60, %s3966_s11  ;;  %v504_v60 = vmul.f32 0.01, %v440_v31  ;;  %v4643_v57 = vsel %vm724_vm7, 1.0, %v5599_v47  ;;  %vm2009_vm15 = vcmask 228544   ;;  %vm2352_vm7 = vcmask 293888  }
  0x80   : > { %v4598_v1 = vsel %vm472_vm1, %v440_v31, %v504_v60  ;;  %v505_v31 = vmul.f32 0.01, %v441_v3  ;;  %v1590_v60 = vld [vmem:[#allocation2 + $0x90] sm:$0xff]  ;;  %vm2138_vm1 = vcmask 261344  }
  0x81   : > { %1008 = vrot.lane.b32.xlu1 %v4484_v12, %s3959_s19  ;;  %v403_v12 = vmul.f32 %v3948_v54, %v364_v35  ;;  %575 = vst.msk [vmem:[#allocation2 + $0xf8] sm:$0xff] %vm540_vm0, %v4598_v1  ;;  %v443_v35 = vadd.f32 %v3949_v25, %v404_v27  ;;  %v4629_v14 = vpack.c.bf16 %v1590_v60, %v1589_v43  ;;  %v629_v43 = vand.u32 15, %v597_v38 }
  0x82   : > { %2261 = vrot.lane.b32.xlu0 %v2224_v32, %s3966_s11  ;;  %v1324_v32 = vpack.c.bf16 %v1300_v13, %v4557_v10  ;;  %v4610_v20 = vsel %vm473_vm2, %v441_v3, %v505_v31  ;;  %v1485_v13 = vpack.c.bf16 %v1429_v22, %v1460_v30  ;;  %v630_v3 = vand.u32 15, %v598_v24  ;;  %v4638_v31 = vld [vmem:[#allocation2 + $0x89] sm:$0xff]  ;;  %v1879_v24 = vld [vmem:[#allocation2 + $0x97] sm:$0xff] }
  0x83   : > { %v442_v54 = vadd.f32 %v3949_v25, %v403_v12  ;;  %576 = vst.msk [vmem:[#allocation2 + $0x100] sm:$0xff] %vm540_vm0, %v4610_v20  ;;  %vm475_vm6 = vcmp.ge.f32.partialorder %v443_v35, 0.0  ;;  %v507_v25 = vmul.f32 0.01, %v443_v35  ;;  %v1751_v30 = vmul.f32 %v4570_v26, %v4618_v15 }
  0x85   : > { %1010 = vrot.lane.b32.xlu1 %v4540_v8, %s3959_s19  ;;  %vm474_vm5 = vcmp.ge.f32.partialorder %v442_v54, 0.0 }
  0x86   : > { %1361 = vrot.lane.b32.xlu0 %v1323_v6, %s3962_s22  ;;  %v506_v6 = vmul.f32 0.01, %v442_v54 }
  0x88   : > { %v4621_v12 = vsel %vm474_vm5, %v442_v54, %v506_v6  ;;  %v1909_v54 = vmul.f32 %v4529_v0, %v1428_v63  ;;  %v660_v6 = vld [vmem:[#allocation2 + $0x87] sm:$0xff]  ;;  %v4651_v63 = vld [vmem:[#allocation2 + $0x9f] sm:$0xff]  ;;  %vm2299_vm5 = vcmask 294144  }
  0x89   : > { %1363 = vrot.lane.b32.xlu1 %v1324_v32, %s3962_s22  ;;  %577 = vst.msk [vmem:[#allocation2 + $0x108] sm:$0xff] %vm540_vm0, %v4621_v12  ;;  %v4626_v32 = vsel %vm475_vm6, %v443_v35, %v507_v25  ;;  %v599_v35 = vadd.s32 152, %v4043_v2  ;;  %v884_v60 = vmul.f32 %v4643_v57, %v660_v6  ;;  %v662_v6 = vld [vmem:[#allocation2 + $0x97] sm:$0xff] }
  0x8a   : > { %1522 = vrot.lane.b32.xlu0 %v1484_v55, %s3963_s25  ;;  %v997_v27 = vpop.permute.xlu0 %996  ;;  %578 = vst.msk [vmem:[#allocation2 + $0x110] sm:$0xff] %vm540_vm0, %v4626_v32  ;;  %v1774_v55 = vpack.c.bf16 %v1749_v51, %v4557_v10  ;;  %v1911_v10 = vmul.f32 %v4573_v58, %v1879_v24  ;;  %v661_v51 = vld [vmem:[#allocation2 + $0x8f] sm:$0xff]  ;;  %v1935_v0 = vpack.c.bf16 %v1429_v22, %v1909_v54  ;;  %v2040_v58 = vld [vmem:[#allocation2 + $0x98] sm:$0xff] }
  0x8b   : > { %1045 = vst.msk [vmem:[#allocation3] sm:$0xff] %vm1044_vm4, %v997_v27  ;;  %v908_v27 = vpack.c.bf16 %v661_v51, %v884_v60  ;;  %v631_v25 = vand.u32 15, %v599_v35  ;;  %v2200_v22 = vmul.f32 %v4544_v46, %v4618_v15  ;;  %v663_v54 = vld [vmem:[#allocation2 + $0x9f] sm:$0xff] }
  0x8c   : > { %v1936_v38 = vpack.c.bf16 %v4651_v63, %v1911_v10 }
  0x8d   : > { %1524 = vrot.lane.b32.xlu1 %v1485_v13, %s3963_s25  ;;  %v694_v13 = vadd.s32 4294967295, %v630_v3  ;;  %v1110_v3 = vadd.s32 1, %v629_v43  ;;  %924 = vst.msk [vmem:[#allocation3 + $0x40] sm:$0xff] %vm540_vm0, %v908_v27  ;;  %v1112_v43 = vadd.s32 1, %v631_v25  ;;  %v2225_v46 = vpack.c.bf16 %v2200_v22, %v4638_v31  ;;  %v4676_v25 = vld [vmem:[#allocation2 + $0x99] sm:$0xff] }
  0x8e   : > { %1651 = vrot.lane.b32.xlu0 %v4540_v8, %s3960_s20  ;;  %v1775_v8 = vpack.c.bf16 %v1751_v30, %v4638_v31  ;;  %v2041_v30 = vld [vmem:[#allocation2 + $0xa0] sm:$0xff] }
  0x8f   : > { %vm726_vm8 = vcmp.ge.s32.totalorder %v694_v13, 0  ;;  %v4662_v13 = vld [vmem:[#allocation2 + $0xa1] sm:$0xff]  ;;  %vm1174_vm9 = vcmp.lt.s32.totalorder %v1110_v3, 16  ;;  %v4667_v10 = vpack.c.bf16 %v2041_v30, %v2040_v58  ;;  %vm1176_vm10 = vcmp.lt.s32.totalorder %v1112_v43, 16 }
  0x90   : > { %v4679_v3 = vsel %vm1174_vm9, 1.0, %v5599_v47  ;;  %v4689_v58 = vsel %vm1176_vm10, 1.0, %v5599_v47 }
  0x91   : > { %1653 = vrot.lane.b32.xlu1 %v4629_v14, %s3960_s20  ;;  %v1304_v43 = vmul.f32 %v4689_v58, %v4662_v13 }
  0x92   : > { %1812 = vrot.lane.b32.xlu0 %v1774_v55, %s3964_s28  ;;  %v4660_v55 = vsel %vm726_vm8, 1.0, %v5599_v47 }
  0x93   : > { %v886_v60 = vmul.f32 %v4660_v55, %v662_v6 }
  0x95   : > { %1814 = vrot.lane.b32.xlu1 %v1775_v8, %s3964_s28  ;;  %v909_v51 = vpack.c.bf16 %v663_v54, %v886_v60  ;;  %v600_v54 = vadd.s32 160, %v4043_v2  ;;  %v1462_v60 = vmul.f32 %v4643_v57, %v1879_v24 }
  0x96   : > { %1973 = vrot.lane.b32.xlu0 %v1935_v0, %s3965_s29  ;;  %v2202_v0 = vmul.f32 %v4570_v26, %v4662_v13  ;;  %v1302_v26 = vmul.f32 %v4679_v3, %v4618_v15 }
  0x97   : > { %v1642_v35 = vpop.permute.xlu1 %1641  ;;  %925 = vst.msk [vmem:[#allocation3 + $0x48] sm:$0xff] %vm540_vm0, %v909_v51  ;;  %v1486_v24 = vpack.c.bf16 %v4651_v63, %v1462_v60  ;;  %v1593_v63 = vld [vmem:[#allocation2 + $0xa8] sm:$0xff]  ;;  %v4720_v60 = vld [vmem:[#allocation2 + $0xb1] sm:$0xff] }
  0x98   : > { %v999_v8 = vpop.permute.xlu0 %998  ;;  %v2226_v6 = vpack.c.bf16 %v2202_v0, %v4676_v25  ;;  %v1325_v15 = vpack.c.bf16 %v1302_v26, %v4638_v31  ;;  %v632_v0 = vand.u32 15, %v600_v54 }
  0x99   : > { %1046 = vst.msk [vmem:[#allocation3 + $0x8] sm:$0xff] %vm1044_vm4, %v999_v8  ;;  %1975 = vrot.lane.b32.xlu1 %v1936_v38, %s3965_s29  ;;  %v1432_v8 = vld [vmem:[#allocation2 + $0xa7] sm:$0xff] }
  0x9a   : > { %2102 = vrot.lane.b32.xlu0 %v4629_v14, %s3961_s21  ;;  %v1464_v31 = vmul.f32 %v4660_v55, %v1432_v8 }
  0x9b   : > { %v4674_v27 = vpop.permute.xlu1 %2092 }
  0x9c   : > { %v1640_v38 = vpop.permute.xlu0 %1639 }
  0x9d   : > { %2104 = vrot.lane.b32.xlu1 %v4667_v10, %s3961_s21 }
  0x9e   : > { %2263 = vrot.lane.b32.xlu0 %v2225_v46, %s3966_s11 }
  0x9f   : > { %v1350_v30 = vpop.permute.xlu1 %1349 }
  0xa0   : > { %1398 = vst.msk [vmem:[#allocation3] sm:$0xff] %vm1397_vm11, %v1350_v30  ;;  %v2091_v22 = vpop.permute.xlu0 %2090  ;;  %v602_v30 = vadd.s32 176, %v4043_v2 }
  0xa1   : > { %1012 = vrot.lane.b32.xlu1 %v4629_v14, %s3959_s19  ;;  %v1326_v14 = vpack.c.bf16 %v1304_v43, %v4676_v25 }
  0xa2   : > { %2265 = vrot.lane.b32.xlu0 %v2226_v6, %s3966_s11  ;;  %v4710_v6 = vld [vmem:[#allocation2 + $0xaf] sm:$0xff] }
  0xa3   : > { %v1352_v51 = vpop.permute.xlu1 %1351  ;;  %v1487_v43 = vpack.c.bf16 %v4710_v6, %v1464_v31 }
  0xa4   : > { %1399 = vst.msk [vmem:[#allocation3 + $0x8] sm:$0xff] %vm1397_vm11, %v1352_v51  ;;  %v1511_v46 = vpop.permute.xlu0 %1510  ;;  %v696_v51 = vadd.s32 4294967295, %v632_v0 }
  0xa5   : > { %1559 = vst.msk [vmem:[#allocation3] sm:$0xff] %vm1558_vm12, %v1511_v46  ;;  %1014 = vrot.lane.b32.xlu1 %v4667_v10, %s3959_s19  ;;  %v634_v46 = vand.u32 15, %v602_v30 }
  0xa6   : > { %1365 = vrot.lane.b32.xlu0 %v1325_v15, %s3962_s22  ;;  %1688 = vst.msk [vmem:[#allocation3] sm:$0xff] %vm1687_vm13, %v1640_v38  ;;  %v1594_v38 = vld [vmem:[#allocation2 + $0xb0] sm:$0xff]  ;;  %v1753_v15 = vmul.f32 %v4679_v3, %v4662_v13  ;;  %vm728_vm2 = vcmp.ge.s32.totalorder %v696_v51, 0  ;;  %v1755_v13 = vmul.f32 %v4689_v58, %v4720_v60 }
  0xa7   : > { %v1513_v26 = vpop.permute.xlu1 %1512  ;;  %v4726_v31 = vpack.c.bf16 %v1594_v38, %v1593_v63  ;;  %v4737_v51 = vld [vmem:[#allocation2 + $0xb7] sm:$0xff]  ;;  %v4741_v63 = vsel %vm728_vm2, 1.0, %v5599_v47  ;;  %v664_v38 = vld [vmem:[#allocation2 + $0xa7] sm:$0xff] }
  0xa8   : > { %1560 = vst.msk [vmem:[#allocation3 + $0x8] sm:$0xff] %vm1558_vm12, %v1513_v26  ;;  %v1801_v54 = vpop.permute.xlu0 %1800  ;;  %v4734_v26 = vld [vmem:[#allocation2 + $0xa9] sm:$0xff] }
  0xa9   : > { %1849 = vst.msk [vmem:[#allocation3] sm:$0xff] %vm1848_vm14, %v1801_v54  ;;  %1367 = vrot.lane.b32.xlu1 %v1326_v14, %s3962_s22  ;;  %v698_v14 = vadd.s32 4294967295, %v634_v46  ;;  %v1913_v54 = vmul.f32 %v4643_v57, %v1432_v8  ;;  %v1777_v57 = vpack.c.bf16 %v1755_v13, %v4734_v26  ;;  %v1915_v8 = vmul.f32 %v4660_v55, %v4737_v51 }
  0xaa   : > { %1689 = vst.msk [vmem:[#allocation3 + $0x8] sm:$0xff] %vm1687_vm13, %v1642_v35  ;;  %1526 = vrot.lane.b32.xlu0 %v1486_v24, %s3963_s25  ;;  %v601_v35 = vadd.s32 168, %v4043_v2  ;;  %v1776_v24 = vpack.c.bf16 %v1753_v15, %v4676_v25  ;;  %v888_v25 = vmul.f32 %v4741_v63, %v664_v38  ;;  %v665_v15 = vld [vmem:[#allocation2 + $0xaf] sm:$0xff]  ;;  %v666_v38 = vld [vmem:[#allocation2 + $0xb7] sm:$0xff] }
  0xab   : > { %v1803_v0 = vpop.permute.xlu1 %1802  ;;  %vm730_vm6 = vcmp.ge.s32.totalorder %v698_v14, 0 }
  0xac   : > { %1850 = vst.msk [vmem:[#allocation3 + $0x8] sm:$0xff] %vm1848_vm14, %v1803_v0  ;;  %v1962_v30 = vpop.permute.xlu0 %1961  ;;  %v1937_v0 = vpack.c.bf16 %v4710_v6, %v1913_v54  ;;  %v2044_v54 = vld [vmem:[#allocation2 + $0xb8] sm:$0xff] }
  0xad   : > { %2010 = vst.msk [vmem:[#allocation3] sm:$0xff] %vm2009_vm15, %v1962_v30  ;;  %1528 = vrot.lane.b32.xlu1 %v1487_v43, %s3963_s25  ;;  %v603_v43 = vadd.s32 184, %v4043_v2  ;;  %v4755_v30 = vld [vmem:[#allocation2 + $0xbf] sm:$0xff] }
  0xae   : > { %1655 = vrot.lane.b32.xlu0 %v4667_v10, %s3960_s20  ;;  %2139 = vst.msk [vmem:[#allocation3] sm:$0xff] %vm2138_vm1, %v2091_v22  ;;  %v633_v22 = vand.u32 15, %v601_v35  ;;  %v910_v35 = vpack.c.bf16 %v665_v15, %v888_v25  ;;  %v1938_v6 = vpack.c.bf16 %v4755_v30, %v1915_v8  ;;  %v2204_v25 = vmul.f32 %v4679_v3, %v4720_v60 }
  0xaf   : > { %v1964_v46 = vpop.permute.xlu1 %1963 }
  0xb0   : > { %2011 = vst.msk [vmem:[#allocation3 + $0x8] sm:$0xff] %vm2009_vm15, %v1964_v46  ;;  %v2252_v10 = vpop.permute.xlu0 %2251  ;;  %v635_v46 = vand.u32 15, %v603_v43  ;;  %v2045_v43 = vld [vmem:[#allocation2 + $0xc0] sm:$0xff]  ;;  %v2227_v3 = vpack.c.bf16 %v2204_v25, %v4734_v26 }
  0xb1   : > { %2300 = vst.msk [vmem:[#allocation3] sm:$0xff] %vm2299_vm5, %v2252_v10  ;;  %1657 = vrot.lane.b32.xlu1 %v4726_v31, %s3960_s20  ;;  %v1114_v10 = vadd.s32 1, %v633_v22 }
  0xb2   : > { %2140 = vst.msk [vmem:[#allocation3 + $0x8] sm:$0xff] %vm2138_vm1, %v4674_v27  ;;  %1816 = vrot.lane.b32.xlu0 %v1776_v24, %s3964_s28  ;;  %v4758_v27 = vsel %vm730_vm6, 1.0, %v5599_v47  ;;  %v667_v24 = vld [vmem:[#allocation2 + $0xbf] sm:$0xff] }
  0xb3   : > { %v1001_v14 = vpop.permute.xlu1 %1000  ;;  %926 = vst.msk [vmem:[#allocation3 + $0x50] sm:$0xff] %vm540_vm0, %v910_v35  ;;  %v890_v55 = vmul.f32 %v4758_v27, %v666_v38  ;;  %v2174_v35 = vld [vmem:[#allocation2 + $0xc1] sm:$0xff]  ;;  %vm1178_vm8 = vcmp.lt.s32.totalorder %v1114_v10, 16 }
  0xb4   : > { %1047 = vst.msk [vmem:[#allocation3 + $0x10] sm:$0xff] %vm1044_vm4, %v1001_v14  ;;  %v2254_v13 = vpop.permute.xlu0 %2253  ;;  %v1116_v14 = vadd.s32 1, %v635_v46  ;;  %v2206_v8 = vmul.f32 %v4689_v58, %v2174_v35  ;;  %v4780_v46 = vld [vmem:[#allocation2 + $0xb9] sm:$0xff]  ;;  %v4783_v10 = vsel %vm1178_vm8, 1.0, %v5599_v47 }
  0xb5   : > { %2301 = vst.msk [vmem:[#allocation3 + $0x8] sm:$0xff] %vm2299_vm5, %v2254_v13  ;;  %1818 = vrot.lane.b32.xlu1 %v1777_v57, %s3964_s28  ;;  %v911_v22 = vpack.c.bf16 %v667_v24, %v890_v55  ;;  %v4774_v57 = vpack.c.bf16 %v2045_v43, %v2044_v54  ;;  %v1306_v24 = vmul.f32 %v4783_v10, %v4720_v60 }
  0xb6   : > { %1977 = vrot.lane.b32.xlu0 %v1937_v0, %s3965_s29  ;;  %vm1180_vm9 = vcmp.lt.s32.totalorder %v1116_v14, 16  ;;  %v2228_v58 = vpack.c.bf16 %v2206_v8, %v4780_v46  ;;  %v1466_v14 = vmul.f32 %v4741_v63, %v4737_v51 }
  0xb7   : > { %v1003_v15 = vpop.permute.xlu1 %1002  ;;  %927 = vst.msk [vmem:[#allocation3 + $0x58] sm:$0xff] %vm540_vm0, %v911_v22  ;;  %v4795_v54 = vsel %vm1180_vm9, 1.0, %v5599_v47  ;;  %v604_v22 = vadd.s32 192, %v4043_v2  ;;  %v1327_v60 = vpack.c.bf16 %v1306_v24, %v4734_v26 }
  0xb8   : > { %1048 = vst.msk [vmem:[#allocation3 + $0x18] sm:$0xff] %vm1044_vm4, %v1003_v15  ;;  %v1354_v38 = vpop.permute.xlu0 %1353  ;;  %v2316_v13 = vld [vmem:[#allocation3] sm:$0xff]  ;;  %v1308_v15 = vmul.f32 %v4795_v54, %v2174_v35  ;;  %v1488_v51 = vpack.c.bf16 %v4755_v30, %v1466_v14 }
  0xb9   : > { %1400 = vst.msk [vmem:[#allocation3 + $0x10] sm:$0xff] %vm1397_vm11, %v1354_v38  ;;  %1979 = vrot.lane.b32.xlu1 %v1938_v6, %s3965_s29  ;;  %3825 = vmatprep.mubr.msk.bf16.mxu0 %vm2352_vm7, %v2316_v13  ;;  %v1436_v38 = vld [vmem:[#allocation2 + $0xc7] sm:$0xff]  ;;  %v636_v8 = vand.u32 15, %v604_v22 }
  0xba   : > { %2106 = vrot.lane.b32.xlu0 %v4726_v31, %s3961_s21  ;;  %v1468_v26 = vmul.f32 %v4758_v27, %v1436_v38  ;;  %v1597_v22 = vld [vmem:[#allocation2 + $0xc8] sm:$0xff] }
  0xbb   : > { %v1356_v0 = vpop.permute.xlu1 %1355  ;;  %v700_v24 = vadd.s32 4294967295, %v636_v8 }
  0xbc   : > { %1401 = vst.msk [vmem:[#allocation3 + $0x18] sm:$0xff] %vm1397_vm11, %v1356_v0  ;;  %v1515_v55 = vpop.permute.xlu0 %1514  ;;  %v2317_v6 = vld [vmem:[#allocation3 + $0x8] sm:$0xff]  ;;  %v606_v0 = vadd.s32 208, %v4043_v2 }
  0xbd   : > { %1561 = vst.msk [vmem:[#allocation3 + $0x10] sm:$0xff] %vm1558_vm12, %v1515_v55  ;;  %3826 = vmatmul.mubr.msk.bf16.vlgmr.msra.gmra.mrb[0].mxu0 %vm2352_vm7, %v2317_v6  ;;  %2108 = vrot.lane.b32.xlu1 %v4774_v57, %s3961_s21  ;;  %v1437_v55 = vld [vmem:[#allocation2 + $0xcf] sm:$0xff]  ;;  %vm732_vm10 = vcmp.ge.s32.totalorder %v700_v24, 0  ;;  %v607_v24 = vadd.s32 216, %v4043_v2 }
  0xbe   : > { %2267 = vrot.lane.b32.xlu0 %v2227_v3, %s3966_s11 }
  0xbf   : > { %v1517_v43 = vpop.permute.xlu1 %1516 }
  0xc0   : > { %1562 = vst.msk [vmem:[#allocation3 + $0x18] sm:$0xff] %vm1558_vm12, %v1517_v43  ;;  %v1644_v25 = vpop.permute.xlu0 %1643  ;;  %v638_v43 = vand.u32 15, %v606_v0 }
  0xc1   : > { %1690 = vst.msk [vmem:[#allocation3 + $0x10] sm:$0xff] %vm1687_vm13, %v1644_v25  ;;  %1016 = vrot.lane.b32.xlu1 %v4726_v31, %s3959_s19  ;;  %v1328_v31 = vpack.c.bf16 %v1308_v15, %v4780_v46  ;;  %v1489_v25 = vpack.c.bf16 %v1437_v55, %v1468_v26  ;;  %v1598_v15 = vld [vmem:[#allocation2 + $0xd0] sm:$0xff] }
  0xc2   : > { %2269 = vrot.lane.b32.xlu0 %v2228_v58, %s3966_s11  ;;  %v702_v8 = vadd.s32 4294967295, %v638_v43  ;;  %v4827_v0 = vpack.c.bf16 %v1598_v15, %v1597_v22  ;;  %v4834_v26 = vld [vmem:[#allocation2 + $0xc9] sm:$0xff]  ;;  %v4841_v43 = vsel %vm732_vm10, 1.0, %v5599_v47 }
  0xc3   : > { %v1646_v13 = vpop.permute.xlu1 %1645 }
  0xc4   : > { %1691 = vst.msk [vmem:[#allocation3 + $0x18] sm:$0xff] %vm1687_vm13, %v1646_v13  ;;  %v1805_v3 = vpop.permute.xlu0 %1804  ;;  %v4821_v13 = vld [vmem:[#allocation2 + $0xd1] sm:$0xff]  ;;  %vm734_vm2 = vcmp.ge.s32.totalorder %v702_v8, 0 }
  0xc5   : > { %1851 = vst.msk [vmem:[#allocation3 + $0x10] sm:$0xff] %vm1848_vm14, %v1805_v3  ;;  %1018 = vrot.lane.b32.xlu1 %v4774_v57, %s3959_s19  ;;  %v605_v3 = vadd.s32 200, %v4043_v2 }
  0xc6   : > { %1369 = vrot.lane.b32.xlu0 %v1327_v60, %s3962_s22  ;;  %v1757_v60 = vmul.f32 %v4783_v10, %v2174_v35 }
  0xc7   : > { %v1807_v6 = vpop.permute.xlu1 %1806  ;;  %v637_v22 = vand.u32 15, %v605_v3  ;;  %v639_v3 = vand.u32 15, %v607_v24 }
  0xc8   : > { %1852 = vst.msk [vmem:[#allocation3 + $0x18] sm:$0xff] %vm1848_vm14, %v1807_v6  ;;  %v1966_v58 = vpop.permute.xlu0 %1965  ;;  %v1778_v35 = vpack.c.bf16 %v1757_v60, %v4780_v46  ;;  %v4837_v6 = vld [vmem:[#allocation2 + $0xd7] sm:$0xff]  ;;  %v4852_v60 = vld [vmem:[#allocation2 + $0xdf] sm:$0xff] }
  0xc9   : > { %2012 = vst.msk [vmem:[#allocation3 + $0x10] sm:$0xff] %vm2009_vm15, %v1966_v58  ;;  %1371 = vrot.lane.b32.xlu1 %v1328_v31, %s3962_s22  ;;  %v1759_v31 = vmul.f32 %v4795_v54, %v4821_v13  ;;  %v1919_v46 = vmul.f32 %v4758_v27, %v4837_v6 }
  0xca   : > { %1530 = vrot.lane.b32.xlu0 %v1488_v51, %s3963_s25  ;;  %v1917_v51 = vmul.f32 %v4741_v63, %v1436_v38 }
  0xcb   : > { %v1968_v30 = vpop.permute.xlu1 %1967  ;;  %v1779_v63 = vpack.c.bf16 %v1759_v31, %v4834_v26  ;;  %v2048_v31 = vld [vmem:[#allocation2 + $0xd8] sm:$0xff] }
  0xcc   : > { %2013 = vst.msk [vmem:[#allocation3 + $0x18] sm:$0xff] %vm2009_vm15, %v1968_v30  ;;  %v2095_v14 = vpop.permute.xlu0 %2094  ;;  %v1939_v15 = vpack.c.bf16 %v1437_v55, %v1917_v51  ;;  %v2208_v51 = vmul.f32 %v4783_v10, %v4821_v13 }
  0xcd   : > { %2141 = vst.msk [vmem:[#allocation3 + $0x10] sm:$0xff] %vm2138_vm1, %v2095_v14  ;;  %1532 = vrot.lane.b32.xlu1 %v1489_v25, %s3963_s25 }
  0xce   : > { %1659 = vrot.lane.b32.xlu0 %v4774_v57, %s3960_s20  ;;  %v892_v57 = vmul.f32 %v4841_v43, %v1436_v38  ;;  %v4855_v38 = vsel %vm734_vm2, 1.0, %v5599_v47  ;;  %v2229_v10 = vpack.c.bf16 %v2208_v51, %v4834_v26 }
  0xcf   : > { %v2097_v58 = vpop.permute.xlu1 %2096  ;;  %v894_v27 = vmul.f32 %v4855_v38, %v4837_v6 }
  0xd0   : > { %2142 = vst.msk [vmem:[#allocation3 + $0x18] sm:$0xff] %vm2138_vm1, %v2097_v58  ;;  %v2256_v25 = vpop.permute.xlu0 %2255  ;;  %v912_v30 = vpack.c.bf16 %v1437_v55, %v892_v57  ;;  %v1118_v58 = vadd.s32 1, %v637_v22  ;;  %v1940_v55 = vpack.c.bf16 %v4852_v60, %v1919_v46  ;;  %v2178_v22 = vld [vmem:[#allocation2 + $0xe1] sm:$0xff]  ;;  %v1120_v57 = vadd.s32 1, %v639_v3  ;;  %v4879_v3 = vld [vmem:[#allocation2 + $0xd9] sm:$0xff] }
  0xd1   : > { %2302 = vst.msk [vmem:[#allocation3 + $0x10] sm:$0xff] %vm2299_vm5, %v2256_v25  ;;  %1661 = vrot.lane.b32.xlu1 %v4827_v0, %s3960_s20  ;;  %v913_v24 = vpack.c.bf16 %v4852_v60, %v894_v27  ;;  %v2210_v46 = vmul.f32 %v4795_v54, %v2178_v22 }
  0xd2   : > { %1820 = vrot.lane.b32.xlu0 %v1778_v35, %s3964_s28  ;;  %928 = vst.msk [vmem:[#allocation3 + $0x60] sm:$0xff] %vm540_vm0, %v912_v30  ;;  %v2049_v35 = vld [vmem:[#allocation2 + $0xe0] sm:$0xff]  ;;  %vm1182_vm6 = vcmp.lt.s32.totalorder %v1118_v58, 16  ;;  %vm1184_vm8 = vcmp.lt.s32.totalorder %v1120_v57, 16  ;;  %v1470_v57 = vmul.f32 %v4841_v43, %v4837_v6 }
  0xd3   : > { %v1005_v14 = vpop.permute.xlu1 %1004  ;;  %929 = vst.msk [vmem:[#allocation3 + $0x68] sm:$0xff] %vm540_vm0, %v913_v24  ;;  %v2230_v54 = vpack.c.bf16 %v2210_v46, %v4879_v3  ;;  %v608_v24 = vadd.s32 224, %v4043_v2 }
  0xd4   : > { %1049 = vst.msk [vmem:[#allocation3 + $0x20] sm:$0xff] %vm1044_vm4, %v1005_v14  ;;  %v2258_v8 = vpop.permute.xlu0 %2257  ;;  %v1490_v6 = vpack.c.bf16 %v4852_v60, %v1470_v57 }
  0xd5   : > { %2303 = vst.msk [vmem:[#allocation3 + $0x18] sm:$0xff] %vm2299_vm5, %v2258_v8  ;;  %1822 = vrot.lane.b32.xlu1 %v1779_v63, %s3964_s28  ;;  %v4873_v63 = vpack.c.bf16 %v2049_v35, %v2048_v31  ;;  %v4882_v8 = vsel %vm1182_vm6, 1.0, %v5599_v47  ;;  %v4894_v31 = vsel %vm1184_vm8, 1.0, %v5599_v47  ;;  %v640_v46 = vand.u32 15, %v608_v24  ;;  %v1601_v24 = vld [vmem:[#allocation2 + $0xe8] sm:$0xff] }
  0xd6   : > { %1981 = vrot.lane.b32.xlu0 %v1939_v15, %s3965_s29 }
  0xd7   : > { %v1007_v25 = vpop.permute.xlu1 %1006 }
  0xd8   : > { %1050 = vst.msk [vmem:[#allocation3 + $0x28] sm:$0xff] %vm1044_vm4, %v1007_v25  ;;  %v1358_v30 = vpop.permute.xlu0 %1357  ;;  %v2318_v14 = vld [vmem:[#allocation3 + $0x10] sm:$0xff]  ;;  %v1312_v25 = vmul.f32 %v4894_v31, %v2178_v22 }
  0xd9   : > { %1402 = vst.msk [vmem:[#allocation3 + $0x20] sm:$0xff] %vm1397_vm11, %v1358_v30  ;;  %1983 = vrot.lane.b32.xlu1 %v1940_v55, %s3965_s29  ;;  %3829 = vmatprep.mubr.msk.bf16.mxu0 %vm2352_vm7, %v2318_v14  ;;  %v1310_v55 = vmul.f32 %v4882_v8, %v4821_v13  ;;  %v1440_v30 = vld [vmem:[#allocation2 + $0xe7] sm:$0xff] }
  0xda   : > { %2110 = vrot.lane.b32.xlu0 %v4827_v0, %s3961_s21 }
  0xdb   : > { %v1360_v15 = vpop.permute.xlu1 %1359  ;;  %v1329_v13 = vpack.c.bf16 %v1310_v55, %v4834_v26  ;;  %v1472_v26 = vmul.f32 %v4855_v38, %v1440_v30  ;;  %v704_v55 = vadd.s32 4294967295, %v640_v46 }
  0xdc   : > { %1403 = vst.msk [vmem:[#allocation3 + $0x28] sm:$0xff] %vm1397_vm11, %v1360_v15  ;;  %v1519_v58 = vpop.permute.xlu0 %1518  ;;  %v2319_v27 = vld [vmem:[#allocation3 + $0x18] sm:$0xff]  ;;  %v610_v15 = vadd.s32 240, %v4043_v2 }
  0xdd   : > { %1563 = vst.msk [vmem:[#allocation3 + $0x20] sm:$0xff] %vm1558_vm12, %v1519_v58  ;;  %3830 = vmatmul.mubr.msk.bf16.gmra.mrb[4].mxu0 %vm2352_vm7, %v2319_v27  ;;  %2112 = vrot.lane.b32.xlu1 %v4873_v63, %s3961_s21  ;;  %v1441_v58 = vld [vmem:[#allocation2 + $0xef] sm:$0xff]  ;;  %vm736_vm9 = vcmp.ge.s32.totalorder %v704_v55, 0  ;;  %v611_v55 = vadd.s32 248, %v4043_v2 }
  0xde   : > { %2271 = vrot.lane.b32.xlu0 %v2229_v10, %s3966_s11 }
  0xdf   : > { %v1521_v35 = vpop.permute.xlu1 %1520 }
  0xe0   : > { %1564 = vst.msk [vmem:[#allocation3 + $0x28] sm:$0xff] %vm1558_vm12, %v1521_v35  ;;  %v1648_v51 = vpop.permute.xlu0 %1647  ;;  %v642_v35 = vand.u32 15, %v610_v15 }
  0xe1   : > { %1692 = vst.msk [vmem:[#allocation3 + $0x20] sm:$0xff] %vm1687_vm13, %v1648_v51  ;;  %1020 = vrot.lane.b32.xlu1 %v4827_v0, %s3959_s19  ;;  %v1330_v0 = vpack.c.bf16 %v1312_v25, %v4879_v3  ;;  %v1491_v51 = vpack.c.bf16 %v1441_v58, %v1472_v26  ;;  %v1602_v25 = vld [vmem:[#allocation2 + $0xf0] sm:$0xff] }
  0xe2   : > { %2273 = vrot.lane.b32.xlu0 %v2230_v54, %s3966_s11  ;;  %v706_v46 = vadd.s32 4294967295, %v642_v35  ;;  %v4926_v15 = vpack.c.bf16 %v1602_v25, %v1601_v24  ;;  %v4933_v26 = vld [vmem:[#allocation2 + $0xe9] sm:$0xff]  ;;  %v4940_v35 = vsel %vm736_vm9, 1.0, %v5599_v47 }
  0xe3   : > { %v1650_v14 = vpop.permute.xlu1 %1649 }
  0xe4   : > { %1693 = vst.msk [vmem:[#allocation3 + $0x28] sm:$0xff] %vm1687_vm13, %v1650_v14  ;;  %v1809_v10 = vpop.permute.xlu0 %1808  ;;  %v4920_v14 = vld [vmem:[#allocation2 + $0xf1] sm:$0xff]  ;;  %vm738_vm10 = vcmp.ge.s32.totalorder %v706_v46, 0 }
  0xe5   : > { %1853 = vst.msk [vmem:[#allocation3 + $0x20] sm:$0xff] %vm1848_vm14, %v1809_v10  ;;  %1022 = vrot.lane.b32.xlu1 %v4873_v63, %s3959_s19  ;;  %v609_v10 = vadd.s32 232, %v4043_v2 }
  0xe6   : > { %1373 = vrot.lane.b32.xlu0 %v1329_v13, %s3962_s22  ;;  %v1761_v13 = vmul.f32 %v4882_v8, %v2178_v22 }
  0xe7   : > { %v1811_v27 = vpop.permute.xlu1 %1810  ;;  %v641_v24 = vand.u32 15, %v609_v10  ;;  %v643_v10 = vand.u32 15, %v611_v55 }
  0xe8   : > { %1854 = vst.msk [vmem:[#allocation3 + $0x28] sm:$0xff] %vm1848_vm14, %v1811_v27  ;;  %v1970_v54 = vpop.permute.xlu0 %1969  ;;  %v1780_v22 = vpack.c.bf16 %v1761_v13, %v4879_v3  ;;  %v4936_v27 = vld [vmem:[#allocation2 + $0xf7] sm:$0xff]  ;;  %v4951_v13 = vld [vmem:[#allocation2 + $0xff] sm:$0xff] }
  0xe9   : > { %2014 = vst.msk [vmem:[#allocation3 + $0x20] sm:$0xff] %vm2009_vm15, %v1970_v54  ;;  %1375 = vrot.lane.b32.xlu1 %v1330_v0, %s3962_s22  ;;  %v1763_v0 = vmul.f32 %v4894_v31, %v4920_v14  ;;  %v1923_v3 = vmul.f32 %v4855_v38, %v4936_v27 }
  0xea   : > { %1534 = vrot.lane.b32.xlu0 %v1490_v6, %s3963_s25  ;;  %v1921_v6 = vmul.f32 %v4841_v43, %v1440_v30 }
  0xeb   : > { %v1972_v60 = vpop.permute.xlu1 %1971  ;;  %v1781_v43 = vpack.c.bf16 %v1763_v0, %v4933_v26  ;;  %v2052_v0 = vld [vmem:[#allocation2 + $0xf8] sm:$0xff] }
  0xec   : > { %2015 = vst.msk [vmem:[#allocation3 + $0x28] sm:$0xff] %vm2009_vm15, %v1972_v60  ;;  %v2099_v57 = vpop.permute.xlu0 %2098  ;;  %v1941_v25 = vpack.c.bf16 %v1441_v58, %v1921_v6  ;;  %v2212_v6 = vmul.f32 %v4882_v8, %v4920_v14 }
  0xed   : > { %2143 = vst.msk [vmem:[#allocation3 + $0x20] sm:$0xff] %vm2138_vm1, %v2099_v57  ;;  %1536 = vrot.lane.b32.xlu1 %v1491_v51, %s3963_s25 }
  0xee   : > { %1663 = vrot.lane.b32.xlu0 %v4873_v63, %s3960_s20  ;;  %v896_v63 = vmul.f32 %v4940_v35, %v1440_v30  ;;  %v4954_v30 = vsel %vm738_vm10, 1.0, %v5599_v47  ;;  %v2231_v8 = vpack.c.bf16 %v2212_v6, %v4933_v26 }
  0xef   : > { %v2101_v54 = vpop.permute.xlu1 %2100  ;;  %v898_v38 = vmul.f32 %v4954_v30, %v4936_v27 }
  0xf0   : > { %2144 = vst.msk [vmem:[#allocation3 + $0x28] sm:$0xff] %vm2138_vm1, %v2101_v54  ;;  %v2260_v51 = vpop.permute.xlu0 %2259  ;;  %v914_v60 = vpack.c.bf16 %v1441_v58, %v896_v63  ;;  %v1122_v54 = vadd.s32 1, %v641_v24  ;;  %v1942_v58 = vpack.c.bf16 %v4951_v13, %v1923_v3  ;;  %v2182_v24 = vld [vmem:[#allocation2 + $0x101] sm:$0xff]  ;;  %v1124_v63 = vadd.s32 1, %v643_v10  ;;  %v4976_v10 = vld [vmem:[#allocation2 + $0xf9] sm:$0xff] }
  0xf1   : > { %2304 = vst.msk [vmem:[#allocation3 + $0x20] sm:$0xff] %vm2299_vm5, %v2260_v51  ;;  %1665 = vrot.lane.b32.xlu1 %v4926_v15, %s3960_s20  ;;  %v915_v55 = vpack.c.bf16 %v4951_v13, %v898_v38  ;;  %v2214_v3 = vmul.f32 %v4894_v31, %v2182_v24 }
  0xf2   : > { %1824 = vrot.lane.b32.xlu0 %v1780_v22, %s3964_s28  ;;  %930 = vst.msk [vmem:[#allocation3 + $0x70] sm:$0xff] %vm540_vm0, %v914_v60  ;;  %v2053_v22 = vld [vmem:[#allocation2 + $0x100] sm:$0xff]  ;;  %vm1186_vm2 = vcmp.lt.s32.totalorder %v1122_v54, 16  ;;  %vm1188_vm6 = vcmp.lt.s32.totalorder %v1124_v63, 16 }
  0xf3   : > { %v1009_v57 = vpop.permute.xlu1 %1008  ;;  %931 = vst.msk [vmem:[#allocation3 + $0x78] sm:$0xff] %vm540_vm0, %v915_v55  ;;  %v2232_v31 = vpack.c.bf16 %v2214_v3, %v4976_v10  ;;  %v1444_v63 = vld [vmem:[#allocation2 + $0x107] sm:$0xff]  ;;  %v1445_v3 = vld [vmem:[#allocation2 + $0x10f] sm:$0xff] }
  0xf4   : > { %1051 = vst.msk [vmem:[#allocation3 + $0x30] sm:$0xff] %vm1044_vm4, %v1009_v57  ;;  %v2262_v46 = vpop.permute.xlu0 %2261 }
  0xf5   : > { %2305 = vst.msk [vmem:[#allocation3 + $0x28] sm:$0xff] %vm2299_vm5, %v2262_v46  ;;  %1826 = vrot.lane.b32.xlu1 %v1781_v43, %s3964_s28  ;;  %v2071_v43 = vpack.c.bf16 %v2053_v22, %v2052_v0  ;;  %v4979_v46 = vsel %vm1186_vm2, 1.0, %v5599_v47  ;;  %v4990_v0 = vsel %vm1188_vm6, 1.0, %v5599_v47 }
  0xf6   : > { %1985 = vrot.lane.b32.xlu0 %v1941_v25, %s3965_s29  ;;  %v1316_v55 = vmul.f32 %v4990_v0, %v2182_v24 }
  0xf7   : > { %v1011_v51 = vpop.permute.xlu1 %1010 }
  0xf8   : > { %1052 = vst.msk [vmem:[#allocation3 + $0x38] sm:$0xff] %vm1044_vm4, %v1011_v51  ;;  %v1362_v60 = vpop.permute.xlu0 %1361  ;;  %v2320_v57 = vld [vmem:[#allocation3 + $0x20] sm:$0xff] }
  0xf9   : > { %1404 = vst.msk [vmem:[#allocation3 + $0x30] sm:$0xff] %vm1397_vm11, %v1362_v60  ;;  %1987 = vrot.lane.b32.xlu1 %v1942_v58, %s3965_s29  ;;  %3833 = vmatprep.mubr.msk.bf16.mxu0 %vm2352_vm7, %v2320_v57  ;;  %v1314_v58 = vmul.f32 %v4979_v46, %v4920_v14  ;;  %v1474_v14 = vmul.f32 %v4940_v35, %v4936_v27 }
  0xfa   : > { %2114 = vrot.lane.b32.xlu0 %v4926_v15, %s3961_s21 }
  0xfb   : > { %v1364_v25 = vpop.permute.xlu1 %1363  ;;  %v1331_v51 = vpack.c.bf16 %v1314_v58, %v4933_v26  ;;  %v1492_v26 = vpack.c.bf16 %v4951_v13, %v1474_v14  ;;  %v1765_v58 = vmul.f32 %v4979_v46, %v2182_v24  ;;  %v1895_v24 = vld [vmem:[#allocation2 + $0x117] sm:$0xff] }
  0xfc   : > { %1405 = vst.msk [vmem:[#allocation3 + $0x38] sm:$0xff] %vm1397_vm11, %v1364_v25  ;;  %v1523_v54 = vpop.permute.xlu0 %1522  ;;  %v2321_v38 = vld [vmem:[#allocation3 + $0x28] sm:$0xff] }
  0xfd   : > { %1565 = vst.msk [vmem:[#allocation3 + $0x30] sm:$0xff] %vm1558_vm12, %v1523_v54  ;;  %3834 = vmatmul.mubr.msk.bf16.gmra.mrb[8].mxu0 %vm2352_vm7, %v2321_v38  ;;  %2116 = vrot.lane.b32.xlu1 %v2071_v43, %s3961_s21  ;;  %v1605_v38 = vld [vmem:[#allocation2 + $0x108] sm:$0xff]  ;;  %v1782_v14 = vpack.c.bf16 %v1765_v58, %v4976_v10 }
  0xfe   : > { %2275 = vrot.lane.b32.xlu0 %v2231_v8, %s3966_s11  ;;  %v1476_v8 = vmul.f32 %v4954_v30, %v1444_v63 }
  0xff   : > { %v1525_v22 = vpop.permute.xlu1 %1524 }
 0x100   : > { %1566 = vst.msk [vmem:[#allocation3 + $0x38] sm:$0xff] %vm1558_vm12, %v1525_v22  ;;  %v1652_v6 = vpop.permute.xlu0 %1651  ;;  %v1493_v54 = vpack.c.bf16 %v1445_v3, %v1476_v8  ;;  %v1735_v22 = vld [vmem:[#allocation2 + $0x111] sm:$0xff] }
 0x101   : > { %1694 = vst.msk [vmem:[#allocation3 + $0x30] sm:$0xff] %vm1687_vm13, %v1652_v6  ;;  %1024 = vrot.lane.b32.xlu1 %v4926_v15, %s3959_s19  ;;  %v1332_v15 = vpack.c.bf16 %v1316_v55, %v4976_v10 }
 0x102   : > { %2277 = vrot.lane.b32.xlu0 %v2232_v31, %s3966_s11  ;;  %v1606_v31 = vld [vmem:[#allocation2 + $0x110] sm:$0xff] }
 0x103   : > { %v1654_v60 = vpop.permute.xlu1 %1653  ;;  %v1622_v55 = vpack.c.bf16 %v1606_v31, %v1605_v38  ;;  %v2057_v38 = vld [vmem:[#allocation2 + $0x120] sm:$0xff]  ;;  %v2216_v31 = vmul.f32 %v4979_v46, %v1735_v22 }
 0x104   : > { %1695 = vst.msk [vmem:[#allocation3 + $0x38] sm:$0xff] %vm1687_vm13, %v1654_v60  ;;  %v1813_v57 = vpop.permute.xlu0 %1812  ;;  %v1734_v60 = vld [vmem:[#allocation2 + $0x109] sm:$0xff] }
 0x105   : > { %1855 = vst.msk [vmem:[#allocation3 + $0x30] sm:$0xff] %vm1848_vm14, %v1813_v57  ;;  %1026 = vrot.lane.b32.xlu1 %v2071_v43, %s3959_s19  ;;  %v1925_v57 = vmul.f32 %v4940_v35, %v1444_v63 }
 0x106   : > { %1377 = vrot.lane.b32.xlu0 %v1331_v51, %s3962_s22  ;;  %v1767_v51 = vmul.f32 %v4990_v0, %v1735_v22 }
 0x107   : > { %v1815_v25 = vpop.permute.xlu1 %1814 }
 0x108   : > { %1856 = vst.msk [vmem:[#allocation3 + $0x38] sm:$0xff] %vm1848_vm14, %v1815_v25  ;;  %v1974_v27 = vpop.permute.xlu0 %1973  ;;  %v1927_v25 = vmul.f32 %v4954_v30, %v1895_v24  ;;  %v2186_v30 = vld [vmem:[#allocation2 + $0x121] sm:$0xff] }
 0x109   : > { %2016 = vst.msk [vmem:[#allocation3 + $0x30] sm:$0xff] %vm2009_vm15, %v1974_v27  ;;  %1379 = vrot.lane.b32.xlu1 %v1332_v15, %s3962_s22  ;;  %v1896_v27 = vld [vmem:[#allocation2 + $0x11f] sm:$0xff] }
 0x10a   : > { %1538 = vrot.lane.b32.xlu0 %v1492_v26, %s3963_s25  ;;  %v1783_v26 = vpack.c.bf16 %v1767_v51, %v1734_v60  ;;  %v1944_v63 = vpack.c.bf16 %v1896_v27, %v1927_v25  ;;  %v2218_v51 = vmul.f32 %v4990_v0, %v2186_v30 }
 0x10b   : > { %v1976_v6 = vpop.permute.xlu1 %1975 }
 0x10c   : > { %2017 = vst.msk [vmem:[#allocation3 + $0x38] sm:$0xff] %vm2009_vm15, %v1976_v6  ;;  %v2103_v13 = vpop.permute.xlu0 %2102 }
 0x10d   : > { %2145 = vst.msk [vmem:[#allocation3 + $0x30] sm:$0xff] %vm2138_vm1, %v2103_v13  ;;  %1540 = vrot.lane.b32.xlu1 %v1493_v54, %s3963_s25  ;;  %v2056_v54 = vld [vmem:[#allocation2 + $0x118] sm:$0xff] }
 0x10e   : > { %1667 = vrot.lane.b32.xlu0 %v2071_v43, %s3960_s20  ;;  %v1943_v43 = vpack.c.bf16 %v1445_v3, %v1925_v57  ;;  %v2073_v13 = vpack.c.bf16 %v2057_v38, %v2056_v54  ;;  %v2185_v57 = vld [vmem:[#allocation2 + $0x119] sm:$0xff] }
 0x10f   : > { %v2105_v15 = vpop.permute.xlu1 %2104 }
 0x110   : > { %2146 = vst.msk [vmem:[#allocation3 + $0x38] sm:$0xff] %vm2138_vm1, %v2105_v15  ;;  %v2264_v8 = vpop.permute.xlu0 %2263  ;;  %v2234_v15 = vpack.c.bf16 %v2218_v51, %v2185_v57 }
 0x111   : > { %2306 = vst.msk [vmem:[#allocation3 + $0x30] sm:$0xff] %vm2299_vm5, %v2264_v8  ;;  %1669 = vrot.lane.b32.xlu1 %v1622_v55, %s3960_s20 }
 0x112   : > { %1828 = vrot.lane.b32.xlu0 %v1782_v14, %s3964_s28  ;;  %v2233_v14 = vpack.c.bf16 %v2216_v31, %v1734_v60 }
 0x113   : > { %v1013_v10 = vpop.permute.xlu1 %1012 }
 0x114   : > { %1053 = vst.msk [vmem:[#allocation3 + $0x40] sm:$0xff] %vm1044_vm4, %v1013_v10  ;;  %v2266_v35 = vpop.permute.xlu0 %2265 }
 0x115   : > { %2307 = vst.msk [vmem:[#allocation3 + $0x38] sm:$0xff] %vm2299_vm5, %v2266_v35  ;;  %1830 = vrot.lane.b32.xlu1 %v1783_v26, %s3964_s28  ;;  %s3968_s28 = smov 40  }
 0x116   : > { %1989 = vrot.lane.b32.xlu0 %v1943_v43, %s3965_s29 }
 0x117   : > { %v1015_v58 = vpop.permute.xlu1 %1014 }
 0x118   : > { %1054 = vst.msk [vmem:[#allocation3 + $0x48] sm:$0xff] %vm1044_vm4, %v1015_v58  ;;  %v1366_v3 = vpop.permute.xlu0 %1365  ;;  %v2322_v6 = vld [vmem:[#allocation3 + $0x30] sm:$0xff] }
 0x119   : > { %1406 = vst.msk [vmem:[#allocation3 + $0x40] sm:$0xff] %vm1397_vm11, %v1366_v3  ;;  %1991 = vrot.lane.b32.xlu1 %v1944_v63, %s3965_s29  ;;  %3837 = vmatprep.mubr.msk.bf16.mxu0 %vm2352_vm7, %v2322_v6 }
 0x11a   : > { %2118 = vrot.lane.b32.xlu0 %v1622_v55, %s3961_s21 }
 0x11b   : > { %v1368_v46 = vpop.permute.xlu1 %1367 }
 0x11c   : > { %1407 = vst.msk [vmem:[#allocation3 + $0x48] sm:$0xff] %vm1397_vm11, %v1368_v46  ;;  %v1527_v22 = vpop.permute.xlu0 %1526  ;;  %v2323_v24 = vld [vmem:[#allocation3 + $0x38] sm:$0xff] }
 0x11d   : > { %1567 = vst.msk [vmem:[#allocation3 + $0x40] sm:$0xff] %vm1558_vm12, %v1527_v22  ;;  %3838 = vmatmul.mubr.msk.bf16.gmra.mrb[12].mxu0 %vm2352_vm7, %v2323_v24  ;;  %2120 = vrot.lane.b32.xlu1 %v2073_v13, %s3961_s21  ;;  %s3970_s21 = smov 64  }
 0x11e   : > { %2279 = vrot.lane.b32.xlu0 %v2233_v14, %s3966_s11 }
 0x11f   : > { %v1529_v8 = vpop.permute.xlu1 %1528 }
 0x120   : > { %1568 = vst.msk [vmem:[#allocation3 + $0x48] sm:$0xff] %vm1558_vm12, %v1529_v8  ;;  %v1656_v0 = vpop.permute.xlu0 %1655 }
 0x121   : > { %1696 = vst.msk [vmem:[#allocation3 + $0x40] sm:$0xff] %vm1687_vm13, %v1656_v0  ;;  %2281 = vrot.lane.b32.xlu1 %v2234_v15, %s3966_s11 }
 0x123   : > { %v1658_v55 = vpop.permute.xlu1 %1657 }
 0x124   : > { %1697 = vst.msk [vmem:[#allocation3 + $0x48] sm:$0xff] %vm1687_vm13, %v1658_v55  ;;  %v1817_v60 = vpop.permute.xlu0 %1816 }
 0x125   : > { %1857 = vst.msk [vmem:[#allocation3 + $0x40] sm:$0xff] %vm1848_vm14, %v1817_v60 }
 0x127   : > { %v1819_v26 = vpop.permute.xlu1 %1818 }
 0x128   : > { %1858 = vst.msk [vmem:[#allocation3 + $0x48] sm:$0xff] %vm1848_vm14, %v1819_v26  ;;  %v1978_v25 = vpop.permute.xlu0 %1977 }
 0x129   : > { %2018 = vst.msk [vmem:[#allocation3 + $0x40] sm:$0xff] %vm2009_vm15, %v1978_v25 }
 0x12b   : > { %v1980_v43 = vpop.permute.xlu1 %1979 }
 0x12c   : > { %2019 = vst.msk [vmem:[#allocation3 + $0x48] sm:$0xff] %vm2009_vm15, %v1980_v43  ;;  %v2107_v27 = vpop.permute.xlu0 %2106 }
 0x12d   : > { %2147 = vst.msk [vmem:[#allocation3 + $0x40] sm:$0xff] %vm2138_vm1, %v2107_v27 }
 0x12f   : > { %v2109_v10 = vpop.permute.xlu1 %2108 }
 0x130   : > { %2148 = vst.msk [vmem:[#allocation3 + $0x48] sm:$0xff] %vm2138_vm1, %v2109_v10  ;;  %v2268_v35 = vpop.permute.xlu0 %2267 }
 0x131   : > { %2308 = vst.msk [vmem:[#allocation3 + $0x40] sm:$0xff] %vm2299_vm5, %v2268_v35 }
 0x133   : > { %v1017_v63 = vpop.permute.xlu1 %1016 }
 0x134   : > { %1055 = vst.msk [vmem:[#allocation3 + $0x50] sm:$0xff] %vm1044_vm4, %v1017_v63  ;;  %v2270_v54 = vpop.permute.xlu0 %2269 }
 0x135   : > { %2309 = vst.msk [vmem:[#allocation3 + $0x48] sm:$0xff] %vm2299_vm5, %v2270_v54 }
 0x137   : > { %v1019_v38 = vpop.permute.xlu1 %1018 }
 0x138   : > { %1056 = vst.msk [vmem:[#allocation3 + $0x58] sm:$0xff] %vm1044_vm4, %v1019_v38  ;;  %v1370_v31 = vpop.permute.xlu0 %1369  ;;  %v2324_v30 = vld [vmem:[#allocation3 + $0x40] sm:$0xff] }
 0x139   : > { %1408 = vst.msk [vmem:[#allocation3 + $0x50] sm:$0xff] %vm1397_vm11, %v1370_v31  ;;  %3841 = vmatprep.mubr.msk.bf16.mxu0 %vm2352_vm7, %v2324_v30 }
 0x13b   : > { %v1372_v58 = vpop.permute.xlu1 %1371 }
 0x13c   : > { %1409 = vst.msk [vmem:[#allocation3 + $0x58] sm:$0xff] %vm1397_vm11, %v1372_v58  ;;  %v1531_v3 = vpop.permute.xlu0 %1530  ;;  %v2325_v6 = vld [vmem:[#allocation3 + $0x48] sm:$0xff] }
 0x13d   : > { %1569 = vst.msk [vmem:[#allocation3 + $0x50] sm:$0xff] %vm1558_vm12, %v1531_v3  ;;  %3842 = vmatmul.mubr.msk.bf16.gmra.mrb[16].mxu0 %vm2352_vm7, %v2325_v6 }
 0x13f   : > { %v1533_v13 = vpop.permute.xlu1 %1532 }
 0x140   : > { %1570 = vst.msk [vmem:[#allocation3 + $0x58] sm:$0xff] %vm1558_vm12, %v1533_v13  ;;  %v1660_v51 = vpop.permute.xlu0 %1659 }
 0x141   : > { %1698 = vst.msk [vmem:[#allocation3 + $0x50] sm:$0xff] %vm1687_vm13, %v1660_v51 }
 0x143   : > { %v1662_v14 = vpop.permute.xlu1 %1661 }
 0x144   : > { %1699 = vst.msk [vmem:[#allocation3 + $0x58] sm:$0xff] %vm1687_vm13, %v1662_v14  ;;  %v1821_v57 = vpop.permute.xlu0 %1820 }
 0x145   : > { %1859 = vst.msk [vmem:[#allocation3 + $0x50] sm:$0xff] %vm1848_vm14, %v1821_v57 }
 0x147   : > { %v1823_v46 = vpop.permute.xlu1 %1822 }
 0x148   : > { %1860 = vst.msk [vmem:[#allocation3 + $0x58] sm:$0xff] %vm1848_vm14, %v1823_v46  ;;  %v1982_v22 = vpop.permute.xlu0 %1981 }
 0x149   : > { %2020 = vst.msk [vmem:[#allocation3 + $0x50] sm:$0xff] %vm2009_vm15, %v1982_v22 }
 0x14b   : > { %v1984_v24 = vpop.permute.xlu1 %1983 }
 0x14c   : > { %2021 = vst.msk [vmem:[#allocation3 + $0x58] sm:$0xff] %vm2009_vm15, %v1984_v24  ;;  %v2111_v15 = vpop.permute.xlu0 %2110 }
 0x14d   : > { %2149 = vst.msk [vmem:[#allocation3 + $0x50] sm:$0xff] %vm2138_vm1, %v2111_v15 }
 0x14f   : > { %v2113_v8 = vpop.permute.xlu1 %2112 }
 0x150   : > { %2150 = vst.msk [vmem:[#allocation3 + $0x58] sm:$0xff] %vm2138_vm1, %v2113_v8  ;;  %v2272_v0 = vpop.permute.xlu0 %2271 }
 0x151   : > { %2310 = vst.msk [vmem:[#allocation3 + $0x50] sm:$0xff] %vm2299_vm5, %v2272_v0 }
 0x153   : > { %v1021_v55 = vpop.permute.xlu1 %1020 }
 0x154   : > { %1057 = vst.msk [vmem:[#allocation3 + $0x60] sm:$0xff] %vm1044_vm4, %v1021_v55  ;;  %v2274_v60 = vpop.permute.xlu0 %2273 }
 0x155   : > { %2311 = vst.msk [vmem:[#allocation3 + $0x58] sm:$0xff] %vm2299_vm5, %v2274_v60 }
 0x157   : > { %v1023_v26 = vpop.permute.xlu1 %1022 }
 0x158   : > { %1058 = vst.msk [vmem:[#allocation3 + $0x68] sm:$0xff] %vm1044_vm4, %v1023_v26  ;;  %v1374_v25 = vpop.permute.xlu0 %1373  ;;  %v2326_v43 = vld [vmem:[#allocation3 + $0x50] sm:$0xff] }
 0x159   : > { %1410 = vst.msk [vmem:[#allocation3 + $0x60] sm:$0xff] %vm1397_vm11, %v1374_v25  ;;  %3845 = vmatprep.mubr.msk.bf16.mxu0 %vm2352_vm7, %v2326_v43 }
 0x15b   : > { %v1376_v27 = vpop.permute.xlu1 %1375 }
 0x15c   : > { %1411 = vst.msk [vmem:[#allocation3 + $0x68] sm:$0xff] %vm1397_vm11, %v1376_v27  ;;  %v1535_v10 = vpop.permute.xlu0 %1534  ;;  %v2327_v35 = vld [vmem:[#allocation3 + $0x58] sm:$0xff] }
 0x15d   : > { %1571 = vst.msk [vmem:[#allocation3 + $0x60] sm:$0xff] %vm1558_vm12, %v1535_v10  ;;  %3846 = vmatmul.mubr.msk.bf16.gmra.mrb[20].mxu0 %vm2352_vm7, %v2327_v35 }
 0x15f   : > { %v1537_v63 = vpop.permute.xlu1 %1536 }
 0x160   : > { %1572 = vst.msk [vmem:[#allocation3 + $0x68] sm:$0xff] %vm1558_vm12, %v1537_v63  ;;  %v1664_v54 = vpop.permute.xlu0 %1663 }
 0x161   : > { %1700 = vst.msk [vmem:[#allocation3 + $0x60] sm:$0xff] %vm1687_vm13, %v1664_v54 }
 0x163   : > { %v1666_v38 = vpop.permute.xlu1 %1665 }
 0x164   : > { %1701 = vst.msk [vmem:[#allocation3 + $0x68] sm:$0xff] %vm1687_vm13, %v1666_v38  ;;  %v1825_v31 = vpop.permute.xlu0 %1824 }
 0x165   : > { %1861 = vst.msk [vmem:[#allocation3 + $0x60] sm:$0xff] %vm1848_vm14, %v1825_v31 }
 0x167   : > { %v1827_v30 = vpop.permute.xlu1 %1826 }
 0x168   : > { %1862 = vst.msk [vmem:[#allocation3 + $0x68] sm:$0xff] %vm1848_vm14, %v1827_v30  ;;  %v1986_v58 = vpop.permute.xlu0 %1985 }
 0x169   : > { %2022 = vst.msk [vmem:[#allocation3 + $0x60] sm:$0xff] %vm2009_vm15, %v1986_v58 }
 0x16b   : > { %v1988_v3 = vpop.permute.xlu1 %1987 }
 0x16c   : > { %2023 = vst.msk [vmem:[#allocation3 + $0x68] sm:$0xff] %vm2009_vm15, %v1988_v3  ;;  %v2115_v6 = vpop.permute.xlu0 %2114 }
 0x16d   : > { %2151 = vst.msk [vmem:[#allocation3 + $0x60] sm:$0xff] %vm2138_vm1, %v2115_v6 }
 0x16f   : > { %v2117_v13 = vpop.permute.xlu1 %2116 }
 0x170   : > { %2152 = vst.msk [vmem:[#allocation3 + $0x68] sm:$0xff] %vm2138_vm1, %v2117_v13  ;;  %v2276_v51 = vpop.permute.xlu0 %2275 }
 0x171   : > { %2312 = vst.msk [vmem:[#allocation3 + $0x60] sm:$0xff] %vm2299_vm5, %v2276_v51 }
 0x173   : > { %v1025_v14 = vpop.permute.xlu1 %1024 }
 0x174   : > { %1059 = vst.msk [vmem:[#allocation3 + $0x70] sm:$0xff] %vm1044_vm4, %v1025_v14  ;;  %v2278_v57 = vpop.permute.xlu0 %2277 }
 0x175   : > { %2313 = vst.msk [vmem:[#allocation3 + $0x68] sm:$0xff] %vm2299_vm5, %v2278_v57 }
 0x177   : > { %v1027_v46 = vpop.permute.xlu1 %1026 }
 0x178   : > { %1060 = vst.msk [vmem:[#allocation3 + $0x78] sm:$0xff] %vm1044_vm4, %v1027_v46  ;;  %v1378_v22 = vpop.permute.xlu0 %1377  ;;  %v2328_v24 = vld [vmem:[#allocation3 + $0x60] sm:$0xff]  ;;  %vm2749_vm4 = vcmask 64512  }
 0x179   : > { %1412 = vst.msk [vmem:[#allocation3 + $0x70] sm:$0xff] %vm1397_vm11, %v1378_v22  ;;  %3849 = vmatprep.mubr.msk.bf16.mxu0 %vm2352_vm7, %v2328_v24 }
 0x17a   : > { %2750 = vst.msk [vmem:[#allocation4] sm:$0xff] %vm2749_vm4, %v5599_v47  ;;  %2751 = vst.msk [vmem:[#allocation4 + $0x8] sm:$0xff] %vm2749_vm4, %v5599_v47 }
 0x17b   : > { %v1380_v15 = vpop.permute.xlu1 %1379  ;;  %2752 = vst.msk [vmem:[#allocation4 + $0x50] sm:$0xff] %vm2749_vm4, %v5599_v47  ;;  %2753 = vst.msk [vmem:[#allocation4 + $0x58] sm:$0xff] %vm2749_vm4, %v5599_v47 }
 0x17c   : > { %1413 = vst.msk [vmem:[#allocation3 + $0x78] sm:$0xff] %vm1397_vm11, %v1380_v15  ;;  %v2329_v8 = vld [vmem:[#allocation3 + $0x68] sm:$0xff]  ;;  %v1539_v0 = vpop.permute.xlu0 %1538 }
 0x17d   : > { %3850 = vmatmul.mubr.msk.bf16.gmra.mrb[24].mxu0 %vm2352_vm7, %v2329_v8  ;;  %1573 = vst.msk [vmem:[#allocation3 + $0x70] sm:$0xff] %vm1558_vm12, %v1539_v0 }
 0x17f   : > { %v1541_v55 = vpop.permute.xlu1 %1540 }
 0x180   : > { %1574 = vst.msk [vmem:[#allocation3 + $0x78] sm:$0xff] %vm1558_vm12, %v1541_v55  ;;  %v1668_v60 = vpop.permute.xlu0 %1667 }
 0x181   : > { %1702 = vst.msk [vmem:[#allocation3 + $0x70] sm:$0xff] %vm1687_vm13, %v1668_v60 }
 0x183   : > { %v1670_v26 = vpop.permute.xlu1 %1669 }
 0x184   : > { %1703 = vst.msk [vmem:[#allocation3 + $0x78] sm:$0xff] %vm1687_vm13, %v1670_v26  ;;  %v1829_v25 = vpop.permute.xlu0 %1828 }
 0x185   : > { %1863 = vst.msk [vmem:[#allocation3 + $0x70] sm:$0xff] %vm1848_vm14, %v1829_v25 }
 0x187   : > { %v1831_v43 = vpop.permute.xlu1 %1830 }
 0x188   : > { %1864 = vst.msk [vmem:[#allocation3 + $0x78] sm:$0xff] %vm1848_vm14, %v1831_v43  ;;  %v1990_v27 = vpop.permute.xlu0 %1989 }
 0x189   : > { %2024 = vst.msk [vmem:[#allocation3 + $0x70] sm:$0xff] %vm2009_vm15, %v1990_v27 }
 0x18b   : > { %v1992_v10 = vpop.permute.xlu1 %1991 }
 0x18c   : > { %2025 = vst.msk [vmem:[#allocation3 + $0x78] sm:$0xff] %vm2009_vm15, %v1992_v10  ;;  %v2119_v35 = vpop.permute.xlu0 %2118 }
 0x18d   : > { %2153 = vst.msk [vmem:[#allocation3 + $0x70] sm:$0xff] %vm2138_vm1, %v2119_v35 }
 0x18f   : > { %v2121_v63 = vpop.permute.xlu1 %2120 }
 0x190   : > { %2154 = vst.msk [vmem:[#allocation3 + $0x78] sm:$0xff] %vm2138_vm1, %v2121_v63  ;;  %v3827_v54 = vpop.f32.mrb[0].mxu0  ;;  %v2280_v38 = vpop.permute.xlu0 %2279 }
 0x191   : > { %v2439_v31 = vpop.f32.mrb[1].mxu0  ;;  %2314 = vst.msk [vmem:[#allocation3 + $0x70] sm:$0xff] %vm2299_vm5, %v2280_v38 }
 0x192   : > { %v3828_v30 = vpop.f32.mrb[2].mxu0 }
 0x193   : > { %v2575_v58 = vpack.c.bf16 %v3828_v30, %v3827_v54  ;;  %v2442_v3 = vpop.f32.mrb[3].mxu0  ;;  %v2282_v6 = vpop.permute.xlu1 %2281 }
 0x194   : > { %v2574_v13 = vpack.c.bf16 %v2442_v3, %v2439_v31  ;;  %2315 = vst.msk [vmem:[#allocation3 + $0x78] sm:$0xff] %vm2299_vm5, %v2282_v6  ;;  %v5112_v31 = vld [vmem:[%s5586_s7 + $0x4] ss:$8 sps:$4 sm:$0xff]  }
 0x195   : > { %2662 = vmatprep.mubr.bf16.mxu1 %v5112_v31 }
 0x198   : > { %v2330_v51 = vld [vmem:[#allocation3 + $0x70] sm:$0xff] }
 0x199   : > { %3853 = vmatprep.mubr.msk.bf16.mxu0 %vm2352_vm7, %v2330_v51 }
 0x19b   : > { %v2331_v14 = vld [vmem:[#allocation3 + $0x78] sm:$0xff] }
 0x19c   : > { %3854 = vmatmul.mubr.msk.bf16.gmra.mrb[28].mxu0 %vm2352_vm7, %v2331_v14 }
 0x1b0   : > { %v3831_v57 = vpop.f32.mrb[4].mxu0 }
 0x1b1   : > { %v2455_v46 = vpop.f32.mrb[5].mxu0 }
 0x1b2   : > { %v3832_v22 = vpop.f32.mrb[6].mxu0 }
 0x1b3   : > { %v2577_v24 = vpack.c.bf16 %v3832_v22, %v3831_v57  ;;  %v2458_v15 = vpop.f32.mrb[7].mxu0 }
 0x1b4   : > { %v2576_v8 = vpack.c.bf16 %v2458_v15, %v2455_v46 }
 0x1d0   : > { %v3835_v0 = vpop.f32.mrb[8].mxu0 }
 0x1d1   : > { %v2471_v55 = vpop.f32.mrb[9].mxu0 }
 0x1d2   : > { %v3836_v60 = vpop.f32.mrb[10].mxu0 }
 0x1d3   : > { %v2579_v26 = vpack.c.bf16 %v3836_v60, %v3835_v0  ;;  %v2474_v25 = vpop.f32.mrb[11].mxu0 }
 0x1d4   : > { %v2578_v43 = vpack.c.bf16 %v2474_v25, %v2471_v55 }
 0x1f0   : > { %v3839_v27 = vpop.f32.mrb[12].mxu0 }
 0x1f1   : > { %v2487_v10 = vpop.f32.mrb[13].mxu0 }
 0x1f2   : > { %v3840_v35 = vpop.f32.mrb[14].mxu0 }
 0x1f3   : > { %v2581_v63 = vpack.c.bf16 %v3840_v35, %v3839_v27  ;;  %v2490_v54 = vpop.f32.mrb[15].mxu0 }
 0x1f4   : > { %v2580_v38 = vpack.c.bf16 %v2490_v54, %v2487_v10 }
 0x210   : > { %v3843_v30 = vpop.f32.mrb[16].mxu0 }
 0x211   : > { %v2503_v3 = vpop.f32.mrb[17].mxu0 }
 0x212   : > { %v3844_v6 = vpop.f32.mrb[18].mxu0 }
 0x213   : > { %v2583_v51 = vpack.c.bf16 %v3844_v6, %v3843_v30  ;;  %v2506_v14 = vpop.f32.mrb[19].mxu0 }
 0x214   : > { %v2582_v57 = vpack.c.bf16 %v2506_v14, %v2503_v3 }
 0x216   : > { %3725 = vmatprep.subr.bf16.mxu1 %v2582_v57  ;;  %v2765_v57 = vand.u32 7, %v4055_v5 }
 0x217   : > { %3726 = vmatpush3.bf16.msra.mxu1 %v2574_v13 }
 0x218   : > { %3727 = vmatprep.subr.bf16.mxu1 %v2583_v51 }
 0x21b   : > { %3728 = vmatpush3.bf16.msra.mxu1 %v2575_v58 }
 0x230   : > { %v3847_v46 = vpop.f32.mrb[20].mxu0 }
 0x231   : > { %v2519_v22 = vpop.f32.mrb[21].mxu0 }
 0x232   : > { %v3848_v15 = vpop.f32.mrb[22].mxu0 }
 0x233   : > { %v2585_v0 = vpack.c.bf16 %v3848_v15, %v3847_v46  ;;  %v2522_v55 = vpop.f32.mrb[23].mxu0 }
 0x234   : > { %v2584_v60 = vpack.c.bf16 %v2522_v55, %v2519_v22 }
 0x236   : > { %3729 = vmatprep.subr.bf16.mxu1 %v2584_v60  ;;  %v2767_v60 = vand.u32 7, %v4151_v18 }
 0x237   : > { %3730 = vmatpush3.bf16.msra.mxu1 %v2576_v8  ;;  %v3931_v8 = vld [vmem:[%s5586_s7] ss:$8 sps:$4 sm:$0xff]  }
 0x238   : > { %3731 = vmatprep.subr.bf16.mxu1 %v2585_v0 }
 0x23b   : > { %3732 = vmatpush3.bf16.msra.mxu1 %v2577_v24  ;;  %v3223_v24 = vpack.c.bf16 %v4376_v7, %v4348_v16  ;;  %v3216_v16 = vpack.c.bf16 %v4093_v37, %v4091_v36  ;;  %v3225_v7 = vpack.c.bf16 %v4462_v52, %v4443_v49  ;;  %v3226_v36 = vpack.c.bf16 %v4497_v50, %v4475_v61  ;;  %v3942_v52 = vld [vmem:[%s5586_s7 + $0x30] ss:$8 sps:$4 sm:$0xff]  }
 0x23c   : > { %v3218_v37 = vpack.c.bf16 %v4167_v28, %v4127_v62  ;;  %v3228_v62 = vpack.c.bf16 %v4576_v41, %v4554_v34  ;;  %v3220_v28 = vpack.c.bf16 %v4261_v59, %v4233_v29  ;;  %v3229_v49 = vpack.c.bf16 %v4610_v20, %v4598_v1  ;;  %v3336_v59 = vld [vmem:[%s5587_s8] sm:$0x3] }
 0x23d   : > { %v3222_v29 = vpack.c.bf16 %v4314_v53, %v4302_v42  ;;  %3904 = vmatprep.subr.msk.bf16.mxu0 %vm2401_vm3, %v3336_v59  ;;  %v5185_v53 = vld [vmem:[%s5583_s4] ss:$0 sm:$0xff]  ;;  %v2762_v61 = vand.u32 7, %v4043_v2 }
 0x23e   : > { %v5192_v34 = vld [vmem:[%s5584_s5] ss:$0 sm:$0xff] }
 0x23f   : > { %v2778_v46 = vadd.s32 4294967295, %v2762_v61 }
 0x241   : > { %vm2786_vm13 = vcmp.ge.s32.totalorder %v2778_v46, 0 }
 0x250   : > { %v3851_v25 = vpop.f32.mrb[24].mxu0 }
 0x251   : > { %v2535_v27 = vpop.f32.mrb[25].mxu0 }
 0x252   : > { %v3852_v10 = vpop.f32.mrb[26].mxu0 }
 0x253   : > { %v2587_v35 = vpack.c.bf16 %v3852_v10, %v3851_v25  ;;  %v2538_v54 = vpop.f32.mrb[27].mxu0  ;;  %v5600_v25 = vld [vmem:[#allocation6_spill] sm:$0xff] }
 0x254   : > { %v2586_v30 = vpack.c.bf16 %v2538_v54, %v2535_v27  ;;  %v2769_v27 = vand.u32 7, %v5600_v25 }
 0x256   : > { %3733 = vmatprep.subr.bf16.mxu1 %v2586_v30 }
 0x257   : > { %3734 = vmatpush3.bf16.msra.mxu1 %v2578_v43  ;;  %v3215_v43 = vpack.c.bf16 %v4102_v40, %v4100_v39  ;;  %v3937_v39 = vld [vmem:[%s5586_s7 + $0x24] ss:$8 sps:$4 sm:$0xff]   ;;  %v3217_v40 = vpack.c.bf16 %v4111_v45, %v4109_v44  ;;  %v3940_v44 = vld [vmem:[%s5586_s7 + $0x34] ss:$8 sps:$4 sm:$0xff]   ;;  %v3219_v45 = vpack.c.bf16 %v4220_v21, %v4213_v9  ;;  %v3221_v9 = vpack.c.bf16 %v4298_v56, %v4282_v23 }
 0x258   : > { %3735 = vmatprep.subr.bf16.mxu1 %v2587_v35  ;;  %v3230_v21 = vpack.c.bf16 %v4626_v32, %v4621_v12  ;;  %v3354_v23 = vsel %vm2401_vm3, %v3336_v59, 0  ;;  %v2764_v12 = vand.u32 7, %v4078_v17  ;;  %v2883_v32 = vadd.s32 1, %v2762_v61 }
 0x259   : > { %3858 = vmatpush3.bf16.msra.mxu0 %v3354_v23 }
 0x25a   : > { %vm2899_vm11 = vcmp.lt.s32.totalorder %v2883_v32, 8  ;;  %v2780_v10 = vadd.s32 4294967295, %v2764_v12 }
 0x25b   : > { %3736 = vmatpush3.bf16.msra.mxu1 %v2579_v26  ;;  %v3934_v26 = vld [vmem:[%s5586_s7 + $0x14] ss:$8 sps:$4 sm:$0xff]  }
 0x25c   : > { %vm2788_vm1 = vcmp.ge.s32.totalorder %v2780_v10, 0 }
 0x26f   : > { %v3855_v58 = vpop.f32.mrb[28].mxu0 }
 0x270   : > { %v2551_v13 = vpop.f32.mrb[29].mxu0 }
 0x271   : > { %v3856_v3 = vpop.f32.mrb[30].mxu0 }
 0x272   : > { %v2589_v6 = vpack.c.bf16 %v3856_v3, %v3855_v58  ;;  %v2554_v51 = vpop.f32.mrb[31].mxu0  ;;  %v5601_v58 = vld [vmem:[#allocation7_spill] sm:$0xff]  ;;  %v5602_v3 = vld [vmem:[#allocation8_spill] sm:$0xff] }
 0x273   : > { %v2588_v14 = vpack.c.bf16 %v2554_v51, %v2551_v13  ;;  %v2766_v13 = vand.u32 7, %v5601_v58 }
 0x275   : > { %3737 = vmatprep.subr.bf16.mxu1 %v2588_v14 }
 0x276   : > { %3738 = vmatpush3.bf16.msra.mxu1 %v2580_v38  ;;  %v3224_v38 = vpack.c.bf16 %v4410_v19, %v4380_v48  ;;  %v3227_v48 = vpack.c.bf16 %v4537_v11, %v4515_v33  ;;  %v3939_v19 = vld [vmem:[%s5586_s7 + $0x20] ss:$8 sps:$4 sm:$0xff]   ;;  %v2763_v11 = vand.u32 7, %v4052_v4 }
 0x277   : > { %3739 = vmatprep.subr.bf16.mxu1 %v2589_v6  ;;  %v2768_v6 = vand.u32 7, %v5602_v3 }
 0x278   : > { %v2779_v4 = vadd.s32 4294967295, %v2763_v11  ;;  %v2884_v55 = vadd.s32 1, %v2763_v11 }
 0x27a   : > { %3740 = vmatpush3.bf16.msra.mxu1 %v2581_v63  ;;  %v3936_v63 = vld [vmem:[%s5586_s7 + $0x10] ss:$8 sps:$4 sm:$0xff]   ;;  %vm2787_vm14 = vcmp.ge.s32.totalorder %v2779_v4, 0  ;;  %vm2900_vm15 = vcmp.lt.s32.totalorder %v2884_v55, 8 }
 0x27b   : > { %3765 = vmatprep.subr.bf16.mxu1 %v3223_v24 }
 0x27d   : > { %2663 = vmatmul.mubr.bf16.vlgmr.msra.gmra.mrb[0].mxu1 %v3931_v8 }
 0x27e   : > { %2670 = vmatprep.mubr.bf16.mxu1 %v3934_v26  ;;  %3766 = vmatpush3.bf16.msra.mxu1 %v3215_v43  ;;  %v2885_v43 = vadd.s32 1, %v2764_v12 }
 0x27f   : > { %3767 = vmatprep.subr.bf16.mxu1 %v3224_v38  ;;  %v2886_v38 = vadd.s32 1, %v2765_v57 }
 0x280   : > { %vm2901_vm7 = vcmp.lt.s32.totalorder %v2885_v43, 8 }
 0x281   : > { %vm2902_vm8 = vcmp.lt.s32.totalorder %v2886_v38, 8  ;;  %v5239_v32 = vsel %vm2901_vm7, 1.0, %v5599_v47 }
 0x282   : > { %3768 = vmatpush3.bf16.msra.mxu1 %v3216_v16  ;;  %v2781_v16 = vadd.s32 4294967295, %v2765_v57  ;;  %v2888_v57 = vadd.s32 1, %v2767_v60 }
 0x283   : > { %3769 = vmatprep.subr.bf16.mxu1 %v3225_v7 }
 0x284   : > { %vm2789_vm9 = vcmp.ge.s32.totalorder %v2781_v16, 0 }
 0x285   : > { %2671 = vmatmul.mubr.bf16.gmra.mrb[4].mxu1 %v3936_v63 }
 0x286   : > { %2678 = vmatprep.mubr.bf16.mxu1 %v3937_v39  ;;  %3770 = vmatpush3.bf16.msra.mxu1 %v3217_v40  ;;  %v2842_v40 = vld [vmem:[#allocation4 + $0x8] sm:$0xff] }
 0x287   : > { %3771 = vmatprep.subr.bf16.mxu1 %v3226_v36  ;;  %v5217_v36 = vsel %vm2900_vm15, 1.0, %v5599_v47 }
 0x28a   : > { %3772 = vmatpush3.bf16.msra.mxu1 %v3218_v37  ;;  %v5221_v37 = vsel %vm2787_vm14, 1.0, %v5599_v47 }
 0x28b   : > { %3773 = vmatprep.subr.bf16.mxu1 %v3227_v48  ;;  %v2887_v48 = vadd.s32 1, %v2766_v13 }
 0x28d   : > { %2679 = vmatmul.mubr.bf16.gmra.mrb[8].mxu1 %v3939_v19  ;;  %vm2903_vm2 = vcmp.lt.s32.totalorder %v2887_v48, 8 }
 0x28e   : > { %2686 = vmatprep.mubr.bf16.mxu1 %v3940_v44  ;;  %3774 = vmatpush3.bf16.msra.mxu1 %v3219_v45  ;;  %v5262_v10 = vsel %vm2903_vm2, 1.0, %v5599_v47  ;;  %vm3000_vm2 = vcmask 261312  }
 0x28f   : > { %3775 = vmatprep.subr.bf16.mxu1 %v3228_v62 }
 0x292   : > { %3776 = vmatpush3.bf16.msra.mxu1 %v3220_v28  ;;  %v2783_v28 = vadd.s32 4294967295, %v2767_v60 }
 0x293   : > { %3777 = vmatprep.subr.bf16.mxu1 %v3229_v49  ;;  %v2770_v49 = vld [vmem:[#allocation4 + $0x7] sm:$0xff] }
 0x295   : > { %2687 = vmatmul.mubr.bf16.gmra.mrb[12].mxu1 %v3942_v52 }
 0x296   : > { %3778 = vmatpush3.bf16.msra.mxu1 %v3221_v9  ;;  %3303 = vmatprep.mubr.bf16.mxu1 %v5112_v31  ;;  %v5228_v9 = vsel %vm2788_vm1, 1.0, %v5599_v47 }
 0x297   : > { %3779 = vmatprep.subr.bf16.mxu1 %v3230_v21 }
 0x29a   : > { %3780 = vmatpush3.bf16.msra.mxu1 %v3222_v29 }
 0x29d   : > { %3304 = vmatmul.mubr.bf16.vlgmr.msra.gmra.mrb[16].mxu1 %v3931_v8 }
 0x29e   : > { %3311 = vmatprep.mubr.bf16.mxu1 %v3934_v26  ;;  %v5209_v26 = vsel %vm2899_vm11, 1.0, %v5599_v47 }
 0x2a5   : > { %3312 = vmatmul.mubr.bf16.gmra.mrb[20].mxu1 %v3936_v63 }
 0x2a6   : > { %3319 = vmatprep.mubr.bf16.mxu1 %v3937_v39  ;;  %v5214_v39 = vsel %vm2786_vm13, 1.0, %v5599_v47 }
 0x2ad   : > { %3320 = vmatmul.mubr.bf16.gmra.mrb[24].mxu1 %v3939_v19  ;;  %v2782_v19 = vadd.s32 4294967295, %v2766_v13 }
 0x2ae   : > { %3327 = vmatprep.mubr.bf16.mxu1 %v3940_v44 }
 0x2af   : > { %vm2790_vm6 = vcmp.ge.s32.totalorder %v2782_v19, 0 }
 0x2b5   : > { %3328 = vmatmul.mubr.bf16.gmra.mrb[28].mxu1 %v3942_v52 }
 0x350   : > { %v3741_v56 = vpop.f32.mrb[0].mxu1 }
 0x351   : > { %v3742_v42 = vpop.f32.mrb[1].mxu1 }
 0x352   : > { %v3743_v50 = vadd.f32 %v3742_v42, %v3741_v56  ;;  %v3744_v33 = vpop.f32.mrb[2].mxu1 }
 0x353   : > { %v3745_v41 = vpop.f32.mrb[3].mxu1 }
 0x354   : > { %v2702_v1 = vmul.f32 %v3743_v50, %v5185_v53  ;;  %v3746_v20 = vadd.f32 %v3745_v41, %v3744_v33  ;;  %v2826_v33 = vmul.f32 %v5214_v39, %v2770_v49 }
 0x356   : > { %v2717_v31 = vadd.f32 %v5192_v34, %v2702_v1  ;;  %v2703_v2 = vmul.f32 %v3746_v20, %v5185_v53 }
 0x358   : > { %vm2725_vm3 = vcmp.ge.f32.partialorder %v2717_v31, 0.0  ;;  %v2733_v22 = vmul.f32 0.01, %v2717_v31  ;;  %v2718_v15 = vadd.f32 %v5192_v34, %v2703_v2  ;;  %v3747_v0 = vpop.f32.mrb[4].mxu1  ;;  %v5247_v2 = vsel %vm2789_vm9, 1.0, %v5599_v47 }
 0x359   : > { %v3748_v17 = vpop.f32.mrb[5].mxu1  ;;  %vm3461_vm9 = vcmask 1043456  }
 0x35a   : > { %v2741_v35 = vsel %vm2725_vm3, %v2717_v31, %v2733_v22  ;;  %vm2726_vm12 = vcmp.ge.f32.partialorder %v2718_v15, 0.0  ;;  %v2734_v54 = vmul.f32 0.01, %v2718_v15  ;;  %v3749_v30 = vadd.f32 %v3748_v17, %v3747_v0  ;;  %v3750_v5 = vpop.f32.mrb[6].mxu1 }
 0x35b   : > { %2754 = vst.msk [vmem:[#allocation4 + $0x10] sm:$0xff] %vm2749_vm4, %v2741_v35  ;;  %v3751_v51 = vpop.f32.mrb[7].mxu1  ;;  %vm2791_vm3 = vcmp.ge.s32.totalorder %v2783_v28, 0  ;;  %v5243_v31 = vsel %vm2902_vm8, 1.0, %v5599_v47 }
 0x35c   : > { %v2742_v14 = vsel %vm2726_vm12, %v2718_v15, %v2734_v54  ;;  %v2704_v24 = vmul.f32 %v3749_v30, %v5185_v53  ;;  %v3752_v8 = vadd.f32 %v3751_v51, %v3750_v5  ;;  %v5255_v15 = vsel %vm2790_vm6, 1.0, %v5599_v47 }
 0x35d   : > { %2755 = vst.msk [vmem:[#allocation4 + $0x18] sm:$0xff] %vm2749_vm4, %v2742_v14  ;;  %v5265_v18 = vsel %vm2791_vm3, 1.0, %v5599_v47  ;;  %vm2904_vm12 = vcmp.lt.s32.totalorder %v2888_v57, 8  ;;  %v5274_v51 = vadd.s32 1, %v2768_v6  ;;  %v5278_v14 = vadd.s32 4294967295, %v2768_v6 }
 0x35e   : > { %v2719_v7 = vadd.f32 %v5192_v34, %v2704_v24  ;;  %v2705_v63 = vmul.f32 %v3752_v8, %v5185_v53  ;;  %v2890_v57 = vadd.s32 1, %v2769_v27  ;;  %vm3033_vm6 = vcmask 326912  }
 0x35f   : > { %vm2792_vm14 = vcmp.ge.s32.totalorder %v5278_v14, 0  ;;  %vm2905_vm1 = vcmp.lt.s32.totalorder %v5274_v51, 8  ;;  %vm3074_vm3 = vcmask 392512  }
 0x360   : > { %vm2727_vm5 = vcmp.ge.f32.partialorder %v2719_v7, 0.0  ;;  %v2735_v44 = vmul.f32 0.01, %v2719_v7  ;;  %v2720_v45 = vadd.f32 %v5192_v34, %v2705_v63  ;;  %v3753_v62 = vpop.f32.mrb[8].mxu1  ;;  %vm2906_vm8 = vcmp.lt.s32.totalorder %v2890_v57, 8 }
 0x361   : > { %v3754_v52 = vpop.f32.mrb[9].mxu1 }
 0x362   : > { %v2743_v21 = vsel %vm2727_vm5, %v2719_v7, %v2735_v44  ;;  %vm2728_vm10 = vcmp.ge.f32.partialorder %v2720_v45, 0.0  ;;  %v2736_v29 = vmul.f32 0.01, %v2720_v45  ;;  %v3755_v59 = vadd.f32 %v3754_v52, %v3753_v62  ;;  %v3756_v23 = vpop.f32.mrb[10].mxu1  ;;  %v2843_v56 = vld [vmem:[#allocation4 + $0x10] sm:$0xff] }
 0x363   : > { %2756 = vst.msk [vmem:[#allocation4 + $0x20] sm:$0xff] %vm2749_vm4, %v2743_v21  ;;  %v3757_v42 = vpop.f32.mrb[11].mxu1  ;;  %v2850_v61 = vpack.c.bf16 %v2843_v56, %v2842_v40  ;;  %v2964_v50 = vld [vmem:[#allocation4 + $0xf] sm:$0xff] }
 0x364   : > { %v2744_v11 = vsel %vm2728_vm10, %v2720_v45, %v2736_v29  ;;  %v2706_v41 = vmul.f32 %v3755_v59, %v5185_v53  ;;  %v3758_v1 = vadd.f32 %v3757_v42, %v3756_v23  ;;  %v3006_v20 = vld [vmem:[#allocation4 + $0x18] sm:$0xff]  ;;  %v2875_v22 = vld [vmem:[#allocation4 + $0x9] sm:$0xff]  ;;  %v2827_v0 = vmul.f32 %v5221_v37, %v2964_v50 }
 0x365   : > { %v5233_v12 = vld [vmem:[#allocation4 + $0x11] sm:$0xff]  ;;  %2757 = vst.msk [vmem:[#allocation4 + $0x28] sm:$0xff] %vm2749_vm4, %v2744_v11  ;;  %2858 = vrot.lane.b32.xlu1 %v2850_v61, %s3962_s22  ;;  %v3013_v55 = vpack.c.bf16 %v3006_v20, %v2843_v56  ;;  %v2931_v13 = vmul.f32 %v5209_v26, %v2875_v22  ;;  %v2972_v19 = vmul.f32 %v5214_v39, %v2964_v50  ;;  %v5303_v56 = vadd.s32 4294967295, %v2769_v27 }
 0x366   : > { %v2721_v46 = vadd.f32 %v5192_v34, %v2706_v41  ;;  %v2707_v4 = vmul.f32 %v3758_v1, %v5185_v53  ;;  %v2932_v17 = vmul.f32 %v5217_v36, %v5233_v12  ;;  %v5268_v30 = vld [vmem:[#allocation4 + $0x17] sm:$0xff]  ;;  %v2834_v5 = vpack.c.bf16 %v2827_v0, %v2826_v33 }
 0x367   : > { %v2973_v3 = vmul.f32 %v5221_v37, %v5268_v30  ;;  %v5309_v50 = vsel %vm2904_vm12, 1.0, %v5599_v47  ;;  %vm2793_vm5 = vcmp.ge.s32.totalorder %v5303_v56, 0  ;;  %vm2959_vm10 = vcmask 195712  }
 0x368   : > { %vm2729_vm11 = vcmp.ge.f32.partialorder %v2721_v46, 0.0  ;;  %v2737_v60 = vmul.f32 0.01, %v2721_v46  ;;  %v2722_v35 = vadd.f32 %v5192_v34, %v2707_v4  ;;  %v3759_v54 = vpop.f32.mrb[12].mxu1  ;;  %2838 = vst.msk [vmem:[#allocation5] sm:$0xff] %vm2749_vm4, %v2834_v5  ;;  %v2939_v48 = vpack.c.bf16 %v2932_v17, %v2931_v13 }
 0x369   : > { %v3760_v58 = vpop.f32.mrb[13].mxu1  ;;  %3021 = vrot.lane.b32.xlu1 %v3013_v55, %s3966_s11  ;;  %v2980_v11 = vpack.c.bf16 %v2973_v3, %v2972_v19  ;;  %vm3148_vm12 = vcmask 523712  }
 0x36a   : > { %v2745_v24 = vsel %vm2729_vm11, %v2721_v46, %v2737_v60  ;;  %vm2730_vm13 = vcmp.ge.f32.partialorder %v2722_v35, 0.0  ;;  %v2738_v8 = vmul.f32 0.01, %v2722_v35  ;;  %v3761_v43 = vadd.f32 %v3760_v58, %v3759_v54  ;;  %v3762_v38 = vpop.f32.mrb[14].mxu1  ;;  %v2845_v16 = vld [vmem:[#allocation4 + $0x20] sm:$0xff] }
 0x36b   : > { %v5280_v7 = vld [vmem:[#allocation4 + $0x19] sm:$0xff]  ;;  %2758 = vst.msk [vmem:[#allocation4 + $0x30] sm:$0xff] %vm2749_vm4, %v2745_v24  ;;  %v3763_v63 = vpop.f32.mrb[15].mxu1  ;;  %v2851_v40 = vpack.c.bf16 %v2845_v16, %v3006_v20  ;;  %v2828_v24 = vmul.f32 %v5228_v9, %v5268_v30  ;;  %vm3115_vm11 = vcmask 458112  }
 0x36c   : > { %v2966_v6 = vld [vmem:[#allocation4 + $0x1f] sm:$0xff]  ;;  %v2746_v44 = vsel %vm2730_vm13, %v2722_v35, %v2738_v8  ;;  %v2708_v45 = vmul.f32 %v3761_v43, %v5185_v53  ;;  %v3764_v62 = vadd.f32 %v3763_v63, %v3762_v38  ;;  %v5288_v28 = vld [vmem:[#allocation4 + $0x28] sm:$0xff]  ;;  %v2933_v52 = vmul.f32 %v5239_v32, %v5280_v7 }
 0x36d   : > { %v5290_v49 = vld [vmem:[#allocation4 + $0x21] sm:$0xff]  ;;  %2759 = vst.msk [vmem:[#allocation4 + $0x38] sm:$0xff] %vm2749_vm4, %v2746_v44  ;;  %2860 = vrot.lane.b32.xlu0 %v2851_v40, %s3962_s22  ;;  %2947 = vrot.lane.b32.xlu1 %v2939_v48, %s3960_s20  ;;  %v2974_v59 = vmul.f32 %v5228_v9, %v2966_v6  ;;  %v3014_v33 = vpack.c.bf16 %v5288_v28, %v2845_v16  ;;  %v3160_v48 = vld [vmem:[#allocation4 + $0x51] sm:$0xff]  ;;  %vm3189_vm13 = vcmask 589312  }
 0x36e   : > { %v2967_v21 = vld [vmem:[#allocation4 + $0x27] sm:$0xff]  ;;  %v2934_v29 = vmul.f32 %v5243_v31, %v5290_v49  ;;  %v2723_v42 = vadd.f32 %v5192_v34, %v2708_v45  ;;  %v2709_v61 = vmul.f32 %v3764_v62, %v5185_v53  ;;  %v3047_v4 = vmul.f32 %v5217_v36, %v5280_v7 }
 0x36f   : > { %v2975_v23 = vmul.f32 %v5247_v2, %v2967_v21  ;;  %v3046_v53 = vmul.f32 %v5209_v26, %v5233_v12  ;;  %v5326_v55 = vmul.f32 %v5239_v32, %v5290_v49  ;;  %v5333_v25 = vmul.f32 %v5228_v9, %v2967_v21 }
 0x370   : > { %v2940_v41 = vpack.c.bf16 %v2934_v29, %v2933_v52  ;;  %vm2731_vm15 = vcmp.ge.f32.partialorder %v2723_v42, 0.0  ;;  %v2739_v20 = vmul.f32 0.01, %v2723_v42  ;;  %v2724_v46 = vadd.f32 %v5192_v34, %v2709_v61 }
 0x371   : > { %v2981_v1 = vpack.c.bf16 %v2975_v23, %v2974_v59  ;;  %3023 = vrot.lane.b32.xlu0 %v3014_v33, %s3966_s11  ;;  %2988 = vrot.lane.b32.xlu1 %v2980_v11, %s3965_s29  ;;  %v2829_v60 = vmul.f32 %v5247_v2, %v2966_v6  ;;  %v3054_v54 = vpack.c.bf16 %v3047_v4, %v3046_v53  ;;  %v3672_v23 = vsel %vm2793_vm5, 1.0, %v5599_v47 }
 0x372   : > { %v2747_v22 = vsel %vm2731_vm15, %v2723_v42, %v2739_v20  ;;  %vm2732_vm7 = vcmp.ge.f32.partialorder %v2724_v46, 0.0  ;;  %v2740_v34 = vmul.f32 0.01, %v2724_v46  ;;  %v3041_v0 = vld [vmem:[#allocation4 + $0x29] sm:$0xff]  ;;  %v3088_v5 = vmul.f32 %v5221_v37, %v2966_v6 }
 0x373   : > { %v3082_v17 = vld [vmem:[#allocation4 + $0x2f] sm:$0xff]  ;;  %2760 = vst.msk [vmem:[#allocation4 + $0x40] sm:$0xff] %vm2749_vm4, %v2747_v22  ;;  %v5330_v12 = vmul.f32 %v5243_v31, %v3041_v0  ;;  %v2830_v37 = vmul.f32 %v5255_v15, %v2967_v21  ;;  %v5351_v43 = vmul.f32 %v5262_v10, %v3041_v0  ;;  %v5363_v63 = vmul.f32 %v5239_v32, %v3041_v0 }
 0x374   : > { %v5336_v27 = vmul.f32 %v5247_v2, %v3082_v17  ;;  %v2748_v35 = vsel %vm2732_vm7, %v2724_v46, %v2740_v34  ;;  %v2880_v58 = vld [vmem:[#allocation4 + $0x31] sm:$0xff]  ;;  %v5357_v38 = vmul.f32 %v5255_v15, %v3082_v17  ;;  %v2835_v19 = vpack.c.bf16 %v2829_v60, %v2828_v24 }
 0x375   : > { %v2969_v13 = vld [vmem:[#allocation4 + $0x37] sm:$0xff]  ;;  %2761 = vst.msk [vmem:[#allocation4 + $0x48] sm:$0xff] %vm2749_vm4, %v2748_v35  ;;  %2949 = vrot.lane.b32.xlu0 %v2940_v41, %s3960_s20  ;;  %3136 = vrot.lane.b32.xlu1 %v2851_v40, %s3967_s27  ;;  %v3055_v8 = vpack.c.bf16 %v5330_v12, %v5326_v55  ;;  %v5354_v9 = vmul.f32 %v5309_v50, %v2880_v58  ;;  %v3671_v32 = vsel %vm2792_vm14, 1.0, %v5599_v47  ;;  %vm3448_vm14 = vcmask 588800  }
 0x376   : > { %v3096_v2 = vpack.c.bf16 %v5336_v27, %v5333_v25  ;;  %v5360_v16 = vmul.f32 %v5265_v18, %v2969_v13  ;;  %v5366_v40 = vmul.f32 %v5243_v31, %v2880_v58  ;;  %v2831_v3 = vmul.f32 %v5265_v18, %v3082_v17  ;;  %v5369_v6 = vld [vmem:[#allocation4 + $0x30] sm:$0xff]  ;;  %v3781_v31 = vpop.f32.mrb[16].mxu1  ;;  %2839 = vst.msk [vmem:[#allocation5 + $0x8] sm:$0xff] %vm2749_vm4, %v2835_v19  ;;  %v3010_v24 = vld [vmem:[#allocation4 + $0x38] sm:$0xff] }
 0x377   : > { %v3087_v44 = vmul.f32 %v5214_v39, %v5268_v30  ;;  %v2941_v45 = vpack.c.bf16 %v5354_v9, %v5351_v43  ;;  %v3679_v39 = vsel %vm2905_vm1, 1.0, %v5599_v47  ;;  %v3680_v30 = vsel %vm2906_vm8, 1.0, %v5599_v47  ;;  %v3782_v21 = vpop.f32.mrb[17].mxu1  ;;  %v3945_v9 = vld [vmem:[%s5585_s6 + $0x10] sm:$0xff]  }
 0x378   : > { %v2982_v62 = vpack.c.bf16 %v5360_v16, %v5357_v38  ;;  %v3170_v52 = vpack.c.bf16 %v5366_v40, %v5363_v63  ;;  %v2836_v14 = vpack.c.bf16 %v2831_v3, %v2830_v37  ;;  %v5393_v61 = vmul.f32 %v3680_v30, %v3160_v48  ;;  %v3784_v35 = vpop.f32.mrb[18].mxu1 }
 0x379   : > { %2990 = vrot.lane.b32.xlu0 %v2981_v1, %s3965_s29  ;;  %3062 = vrot.lane.b32.xlu1 %v3054_v54, %s3968_s28  ;;  %v3095_v29 = vpack.c.bf16 %v3088_v5, %v3087_v44  ;;  %v3783_v51 = vadd.f32 %v3782_v21, %v3781_v31  ;;  %v2852_v33 = vpack.c.bf16 %v5369_v6, %v5288_v28  ;;  %v3943_v31 = vld [vmem:[%s5585_s6] sm:$0xff]  }
 0x37a   : > { %v2881_v59 = vld [vmem:[#allocation4 + $0x39] sm:$0xff]  ;;  %v5398_v11 = vmul.f32 %v5262_v10, %v2880_v58  ;;  %v5404_v1 = vmul.f32 %v5255_v15, %v2969_v13  ;;  %2840 = vst.msk [vmem:[#allocation5 + $0x10] sm:$0xff] %vm2749_vm4, %v2836_v14  ;;  %v2832_v28 = vmul.f32 %v3671_v32, %v2969_v13  ;;  %v3785_v13 = vpop.f32.mrb[19].mxu1  ;;  %3885 = vmatprep.subr.bf16.mxu1 %v3943_v31 }
 0x37b   : > { %v2970_v42 = vld [vmem:[#allocation4 + $0x3f] sm:$0xff]  ;;  %v5401_v41 = vmul.f32 %v5309_v50, %v2881_v59  ;;  %v5407_v47 = vmul.f32 %v3679_v39, %v2881_v59  ;;  %v5419_v57 = vmul.f32 %v5262_v10, %v2881_v59  ;;  %v3786_v3 = vadd.f32 %v3785_v13, %v3784_v35  ;;  %v3787_v44 = vpop.f32.mrb[20].mxu1  ;;  %3890 = vmatpush3.bf16.msra.mxu1 %v3943_v31 }
 0x37c   : > { %v2882_v56 = vld [vmem:[#allocation4 + $0x41] sm:$0xff]  ;;  %v5409_v46 = vmul.f32 %v3671_v32, %v2970_v42  ;;  %v5412_v4 = vmul.f32 %v5265_v18, %v2970_v42  ;;  %v3045_v15 = vld [vmem:[#allocation4 + $0x49] sm:$0xff]  ;;  %v2833_v34 = vmul.f32 %v3672_v23, %v2970_v42  ;;  %v3015_v12 = vpack.c.bf16 %v3010_v24, %v5369_v6  ;;  %3867 = vmatprep.subr.bf16.mxu0 %v3943_v31  ;;  %v3944_v6 = vld [vmem:[%s5585_s6 + $0x8] sm:$0xff]  }
 0x37d   : > { %v2971_v20 = vld [vmem:[#allocation4 + $0x47] sm:$0xff]  ;;  %2862 = vrot.lane.b32.xlu0 %v2852_v33, %s3962_s22  ;;  %3103 = vrot.lane.b32.xlu1 %v3095_v29, %s3969_s12  ;;  %v5416_v53 = vmul.f32 %v3680_v30, %v2882_v56  ;;  %v3086_v22 = vld [vmem:[#allocation4 + $0x4f] sm:$0xff]  ;;  %v3056_v0 = vpack.c.bf16 %v5401_v41, %v5398_v11  ;;  %v5427_v60 = vmul.f32 %v3679_v39, %v2882_v56 }
 0x37e   : > { %v5423_v17 = vmul.f32 %v3672_v23, %v2971_v20  ;;  %v3097_v18 = vpack.c.bf16 %v5412_v4, %v5404_v1  ;;  %v5431_v5 = vmul.f32 %v3680_v30, %v3045_v15  ;;  %v5434_v10 = vmul.f32 %v5309_v50, %v2882_v56  ;;  %v3788_v30 = vpop.f32.mrb[21].mxu1  ;;  %3886 = vmatprep.subr.bf16.mxu1 %v3944_v6  ;;  %v3947_v11 = vld [vmem:[%s5585_s6 + $0x20] ss:$0 sps:$4 sm:$0xff]  }
 0x37f   : > { %v2942_v54 = vpack.c.bf16 %v5416_v53, %v5407_v47  ;;  %v5436_v58 = vmul.f32 %v3671_v32, %v2971_v20  ;;  %v5440_v48 = vmul.f32 %v3672_v23, %v3086_v22  ;;  %v5442_v19 = vmul.f32 %v3679_v39, %v3045_v15  ;;  %3891 = vmatpush3.bf16.msra.mxu1 %v3944_v6 }
 0x380   : > { %v2983_v37 = vpack.c.bf16 %v5423_v17, %v5409_v46  ;;  %v3057_v50 = vpack.c.bf16 %v5431_v5, %v5427_v60  ;;  %v3171_v32 = vpack.c.bf16 %v5434_v10, %v5419_v57  ;;  %v2837_v39 = vpack.c.bf16 %v2833_v34, %v2832_v28  ;;  %v3127_v28 = vld [vmem:[#allocation4 + $0x50] sm:$0xff]  ;;  %3887 = vmatprep.subr.bf16.mxu1 %v3945_v9 }
 0x381   : > { %3064 = vrot.lane.b32.xlu0 %v3055_v8, %s3968_s28  ;;  %3138 = vrot.lane.b32.xlu1 %v2852_v33, %s3967_s27  ;;  %v3098_v14 = vpack.c.bf16 %v5440_v48, %v5436_v58  ;;  %v3172_v21 = vpack.c.bf16 %v5393_v61, %v5442_v19  ;;  %v3337_v29 = vpack.c.bf16 %v3786_v3, %v3783_v51  ;;  %v3790_v8 = vpop.f32.mrb[22].mxu1  ;;  %v3011_v51 = vld [vmem:[#allocation4 + $0x40] sm:$0xff]  ;;  %v3012_v33 = vld [vmem:[#allocation4 + $0x48] sm:$0xff]  ;;  %v3463_v41 = vsel %vm3461_vm9, %v3947_v11, 0 }
 0x382   : > { %v3789_v55 = vadd.f32 %v3788_v30, %v3787_v44  ;;  %2841 = vst.msk [vmem:[#allocation5 + $0x18] sm:$0xff] %vm2749_vm4, %v2837_v39  ;;  %v3791_v59 = vpop.f32.mrb[23].mxu1  ;;  %v2853_v20 = vpack.c.bf16 %v3011_v51, %v3010_v24  ;;  %v3131_v16 = vpack.c.bf16 %v3127_v28, %v3012_v33  ;;  %v3946_v44 = vld [vmem:[%s5585_s6 + $0x18] sm:$0xff]   ;;  %v3162_v1 = vmul.f32 %v5217_v36, %v5290_v49 }
 0x383   : > { %3859 = vmatprep.mubr.msk.bf16.mxu0 %vm540_vm0, %v3337_v29  ;;  %v3792_v23 = vadd.f32 %v3791_v59, %v3790_v8  ;;  %v3793_v56 = vpop.f32.mrb[24].mxu1  ;;  %3892 = vmatpush3.bf16.msra.mxu1 %v3945_v9  ;;  %v3161_v47 = vmul.f32 %v5209_v26, %v5280_v7 }
 0x384   : > { %v3794_v25 = vpop.f32.mrb[25].mxu1  ;;  %3888 = vmatprep.subr.bf16.mxu1 %v3946_v44 }
 0x385   : > { %3105 = vrot.lane.b32.xlu0 %v3096_v2, %s3969_s12  ;;  %3025 = vrot.lane.b32.xlu1 %v3015_v12, %s3966_s11  ;;  %v3338_v42 = vpack.c.bf16 %v3792_v23, %v3789_v55  ;;  %v3795_v27 = vadd.f32 %v3794_v25, %v3793_v56  ;;  %v3016_v2 = vpack.c.bf16 %v3012_v33, %v3011_v51  ;;  %v3796_v43 = vpop.f32.mrb[26].mxu1 }
 0x386   : > { %v3797_v38 = vpop.f32.mrb[27].mxu1  ;;  %v3169_v46 = vpack.c.bf16 %v3162_v1, %v3161_v47 }
 0x387   : > { %3860 = vmatmul.mubr.msk.bf16.vlgmr.msra.gmra.mrb[32].mxu0 %vm540_vm0, %v3338_v42  ;;  %3893 = vmatpush3.bf16.msra.mxu1 %v3946_v44 }
 0x388   : > { %3868 = vmatpush3.bf16.msra.mxu0 %v3943_v31  ;;  %3906 = vmatprep.subr.msk.bf16.mxu1 %vm3461_vm9, %v3947_v11 }
 0x389   : > { %2951 = vrot.lane.b32.xlu0 %v2941_v45, %s3960_s20  ;;  %2992 = vrot.lane.b32.xlu1 %v2982_v62, %s3965_s29  ;;  %v3798_v45 = vadd.f32 %v3797_v38, %v3796_v43  ;;  %v3799_v62 = vpop.f32.mrb[28].mxu1 }
 0x38a   : > { %3869 = vmatprep.subr.bf16.mxu0 %v3944_v6  ;;  %v3800_v15 = vpop.f32.mrb[29].mxu1 }
 0x38b   : > { %v3339_v22 = vpack.c.bf16 %v3798_v45, %v3795_v27  ;;  %v3801_v34 = vadd.f32 %v3800_v15, %v3799_v62  ;;  %v3802_v35 = vpop.f32.mrb[30].mxu1  ;;  %3894 = vmatpush3.bf16.msra.mxu1 %v3463_v41 }
 0x38c   : > { %3870 = vmatpush3.bf16.msra.mxu0 %v3944_v6  ;;  %v3803_v13 = vpop.f32.mrb[31].mxu1 }
 0x38d   : > { %3027 = vrot.lane.b32.xlu0 %v3016_v2, %s3966_s11  ;;  %2864 = vrot.lane.b32.xlu1 %v2853_v20, %s3962_s22  ;;  %v3804_v24 = vadd.f32 %v3803_v13, %v3802_v35 }
 0x38e   : > { %3871 = vmatprep.subr.bf16.mxu0 %v3945_v9  ;;  %3863 = vmatprep.mubr.msk.bf16.mxu0 %vm540_vm0, %v3339_v22 }
 0x38f   : > { %v3340_v3 = vpack.c.bf16 %v3804_v24, %v3801_v34 }
 0x390   : > { %3872 = vmatpush3.bf16.msra.mxu0 %v3945_v9 }
 0x391   : > { %3142 = vrot.lane.b32.xlu0 %v3131_v16, %s3967_s27  ;;  %3140 = vrot.lane.b32.xlu1 %v2853_v20, %s3967_s27 }
 0x392   : > { %3864 = vmatmul.mubr.msk.bf16.gmra.mrb[36].mxu0 %vm540_vm0, %v3340_v3  ;;  %3873 = vmatprep.subr.bf16.mxu0 %v3946_v44  ;;  %vm2870_vm0 = vcmask 130112  }
 0x394   : > { %3874 = vmatpush3.bf16.msra.mxu0 %v3946_v44 }
 0x395   : > { %2953 = vrot.lane.b32.xlu0 %v2942_v54, %s3960_s20  ;;  %3066 = vrot.lane.b32.xlu1 %v3056_v0, %s3968_s28 }
 0x396   : > { %3905 = vmatprep.subr.msk.bf16.mxu0 %vm3461_vm9, %v3947_v11 }
 0x398   : > { %3876 = vmatpush3.bf16.msra.mxu0 %v3463_v41 }
 0x399   : > { %2994 = vrot.lane.b32.xlu0 %v2983_v37, %s3965_s29  ;;  %3107 = vrot.lane.b32.xlu1 %v3097_v18, %s3969_s12  ;;  %s3705_s29 = sshll.u32 %s5604_s10, 6 }
 0x39a   : > { %s332_s25 = scalar_lea.vmem %s5588_s9, %s3705_s29 }
 0x39d   : > { %3068 = vrot.lane.b32.xlu0 %v3057_v50, %s3968_s28  ;;  %3181 = vrot.lane.b32.xlu1 %v3171_v32, %s3970_s21 }
 0x3a1   : > { %3109 = vrot.lane.b32.xlu0 %v3098_v14, %s3969_s12  ;;  %3179 = vrot.lane.b32.xlu1 %v3170_v52, %s3970_s21 }
 0x3a5   : > { %3183 = vrot.lane.b32.xlu0 %v3172_v21, %s3970_s21 }
 0x3a9   : > { %3177 = vrot.lane.b32.xlu0 %v3169_v46, %s3970_s21 }
 0x3d7   : > { %v2859_v4 = vpop.permute.xlu1 %2858 }
 0x3d8   : > { %2871 = vst.msk [vmem:[#allocation5] sm:$0xff] %vm2870_vm0, %v2859_v4 }
 0x3db   : > { %v3022_v53 = vpop.permute.xlu1 %3021 }
 0x3df   : > { %v2861_v63 = vpop.permute.xlu0 %2860  ;;  %v2948_v40 = vpop.permute.xlu1 %2947 }
 0x3e0   : > { %2872 = vst.msk [vmem:[#allocation5 + $0x8] sm:$0xff] %vm2870_vm0, %v2861_v63 }
 0x3e1   : > { %2960 = vst.msk [vmem:[#allocation5] sm:$0xff] %vm2959_vm10, %v2948_v40 }
 0x3e3   : > { %v3024_v36 = vpop.permute.xlu0 %3023  ;;  %v2989_v49 = vpop.permute.xlu1 %2988 }
 0x3e4   : > { %3001 = vst.msk [vmem:[#allocation5] sm:$0xff] %vm3000_vm2, %v2989_v49 }
 0x3e5   : > { %3034 = vst.msk [vmem:[#allocation5] sm:$0xff] %vm3033_vm6, %v3022_v53 }
 0x3e7   : > { %v2950_v26 = vpop.permute.xlu0 %2949  ;;  %v3137_v7 = vpop.permute.xlu1 %3136 }
 0x3e8   : > { %2961 = vst.msk [vmem:[#allocation5 + $0x8] sm:$0xff] %vm2959_vm10, %v2950_v26 }
 0x3eb   : > { %v2991_v52 = vpop.permute.xlu0 %2990  ;;  %v3063_v61 = vpop.permute.xlu1 %3062 }
 0x3ec   : > { %3002 = vst.msk [vmem:[#allocation5 + $0x8] sm:$0xff] %vm3000_vm2, %v2991_v52 }
 0x3ed   : > { %3075 = vst.msk [vmem:[#allocation5] sm:$0xff] %vm3074_vm3, %v3063_v61 }
 0x3ee   : > { %3035 = vst.msk [vmem:[#allocation5 + $0x8] sm:$0xff] %vm3033_vm6, %v3024_v36 }
 0x3ef   : > { %v2863_v57 = vpop.permute.xlu0 %2862  ;;  %v3104_v0 = vpop.permute.xlu1 %3103 }
 0x3f0   : > { %2873 = vst.msk [vmem:[#allocation5 + $0x10] sm:$0xff] %vm2870_vm0, %v2863_v57 }
 0x3f1   : > { %3116 = vst.msk [vmem:[#allocation5] sm:$0xff] %vm3115_vm11, %v3104_v0 }
 0x3f2   : > { %3149 = vst.msk [vmem:[#allocation5] sm:$0xff] %vm3148_vm12, %v3137_v7 }
 0x3f3   : > { %v3065_v17 = vpop.permute.xlu0 %3064  ;;  %v3139_v18 = vpop.permute.xlu1 %3138 }
 0x3f4   : > { %3076 = vst.msk [vmem:[#allocation5 + $0x8] sm:$0xff] %vm3074_vm3, %v3065_v17 }
 0x3f7   : > { %v3106_v60 = vpop.permute.xlu0 %3105  ;;  %v3026_v54 = vpop.permute.xlu1 %3025 }
 0x3f8   : > { %3117 = vst.msk [vmem:[#allocation5 + $0x8] sm:$0xff] %vm3115_vm11, %v3106_v60 }
 0x3f9   : > { %3150 = vst.msk [vmem:[#allocation5 + $0x8] sm:$0xff] %vm3148_vm12, %v3139_v18 }
 0x3fb   : > { %v2952_v5 = vpop.permute.xlu0 %2951  ;;  %v2993_v10 = vpop.permute.xlu1 %2992 }
 0x3fc   : > { %2962 = vst.msk [vmem:[#allocation5 + $0x10] sm:$0xff] %vm2959_vm10, %v2952_v5 }
 0x3fd   : > { %3003 = vst.msk [vmem:[#allocation5 + $0x10] sm:$0xff] %vm3000_vm2, %v2993_v10 }
 0x3fe   : > { %3036 = vst.msk [vmem:[#allocation5 + $0x10] sm:$0xff] %vm3033_vm6, %v3026_v54 }
 0x3ff   : > { %v3028_v58 = vpop.permute.xlu0 %3027  ;;  %v2865_v37 = vpop.permute.xlu1 %2864 }
 0x400   : > { %2874 = vst.msk [vmem:[#allocation5 + $0x18] sm:$0xff] %vm2870_vm0, %v2865_v37 }
 0x403   : > { %v3143_v48 = vpop.permute.xlu0 %3142  ;;  %v3141_v19 = vpop.permute.xlu1 %3140 }
 0x407   : > { %v2954_v31 = vpop.permute.xlu0 %2953  ;;  %v3067_v50 = vpop.permute.xlu1 %3066 }
 0x408   : > { %2963 = vst.msk [vmem:[#allocation5 + $0x18] sm:$0xff] %vm2959_vm10, %v2954_v31 }
 0x409   : > { %3077 = vst.msk [vmem:[#allocation5 + $0x10] sm:$0xff] %vm3074_vm3, %v3067_v50 }
 0x40b   : > { %v2995_v32 = vpop.permute.xlu0 %2994  ;;  %v3108_v39 = vpop.permute.xlu1 %3107 }
 0x40c   : > { %3004 = vst.msk [vmem:[#allocation5 + $0x18] sm:$0xff] %vm3000_vm2, %v2995_v32 }
 0x40d   : > { %3118 = vst.msk [vmem:[#allocation5 + $0x10] sm:$0xff] %vm3115_vm11, %v3108_v39 }
 0x40e   : > { %3037 = vst.msk [vmem:[#allocation5 + $0x18] sm:$0xff] %vm3033_vm6, %v3028_v58 }
 0x40f   : > { %3151 = vst.msk [vmem:[#allocation5 + $0x10] sm:$0xff] %vm3148_vm12, %v3141_v19  ;;  %v3069_v30 = vpop.permute.xlu0 %3068  ;;  %v3182_v14 = vpop.permute.xlu1 %3181 }
 0x410   : > { %3078 = vst.msk [vmem:[#allocation5 + $0x18] sm:$0xff] %vm3074_vm3, %v3069_v30 }
 0x411   : > { %3192 = vst.msk [vmem:[#allocation5 + $0x10] sm:$0xff] %vm3189_vm13, %v3182_v14 }
 0x413   : > { %v3110_v21 = vpop.permute.xlu0 %3109  ;;  %v3180_v29 = vpop.permute.xlu1 %3179 }
 0x414   : > { %3119 = vst.msk [vmem:[#allocation5 + $0x18] sm:$0xff] %vm3115_vm11, %v3110_v21 }
 0x415   : > { %3191 = vst.msk [vmem:[#allocation5 + $0x8] sm:$0xff] %vm3189_vm13, %v3180_v29 }
 0x416   : > { %3152 = vst.msk [vmem:[#allocation5 + $0x18] sm:$0xff] %vm3148_vm12, %v3143_v48 }
 0x417   : > { %v3184_v55 = vpop.permute.xlu0 %3183 }
 0x418   : > { %v3196_v12 = vld [vmem:[#allocation5 + $0x10] sm:$0xff]  ;;  %3193 = vst.msk [vmem:[#allocation5 + $0x18] sm:$0xff] %vm3189_vm13, %v3184_v55 }
 0x419   : > { %3881 = vmatprep.mubr.msk.bf16.mxu1 %vm3448_vm14, %v3196_v12 }
 0x41b   : > { %v3178_v8 = vpop.permute.xlu0 %3177 }
 0x41c   : > { %3190 = vst.msk [vmem:[#allocation5] sm:$0xff] %vm3189_vm13, %v3178_v8  ;;  %v3195_v42 = vld [vmem:[#allocation5 + $0x8] sm:$0xff] }
 0x41f   : > { %v3197_v59 = vld [vmem:[#allocation5 + $0x18] sm:$0xff] }
 0x420   : > { %3882 = vmatmul.mubr.msk.bf16.vlgmr.msra.gmra.mrb[32].mxu1 %vm3448_vm14, %v3197_v59 }
 0x423   : > { %v3194_v23 = vld [vmem:[#allocation5] sm:$0xff] }
 0x424   : > { %3877 = vmatprep.mubr.msk.bf16.mxu0 %vm3448_vm14, %v3194_v23 }
 0x425   : > { %3878 = vmatmul.mubr.msk.bf16.vlgmr.msra.gmra.mrb[32].mxu0 %vm3448_vm14, %v3195_v42 }
 0x465   : > { %v3865_v51 = vpop.f32.mrb[36].mxu0 }
 0x466   : > { %v3406_v33 = vpop.f32.mrb[37].mxu0 }
 0x467   : > { %v3866_v6 = vpop.f32.mrb[38].mxu0 }
 0x468   : > { %v3409_v56 = vpop.f32.mrb[39].mxu0 }
 0x4f3   : > { %v3883_v25 = vpop.f32.mrb[32].mxu1 }
 0x4f4   : > { %v3524_v27 = vadd.f32 %v3883_v25, %v3865_v51  ;;  %v3515_v2 = vpop.f32.mrb[33].mxu1 }
 0x4f5   : > { %v3516_v20 = vadd.f32 %v3515_v2, %v3406_v33  ;;  %v3884_v28 = vpop.f32.mrb[34].mxu1 }
 0x4f6   : > { %3536 = vst.msk [vmem:[%s332_s25 + $0x30] sm:$0xff] %vm2749_vm4, %v3524_v27  ;;  %v3527_v43 = vadd.f32 %v3884_v28, %v3866_v6  ;;  %v3518_v9 = vpop.f32.mrb[35].mxu1 }
 0x4f7   : > { %3534 = vst.msk [vmem:[%s332_s25 + $0x20] sm:$0xff] %vm2749_vm4, %v3516_v20  ;;  %v3519_v38 = vadd.f32 %v3518_v9, %v3409_v56 }
 0x4f8   : > { %3537 = vst.msk [vmem:[%s332_s25 + $0x38] sm:$0xff] %vm2749_vm4, %v3527_v43  ;;  %v3879_v16 = vpop.f32.mrb[32].mxu0 }
 0x4f9   : > { %3535 = vst.msk [vmem:[%s332_s25 + $0x28] sm:$0xff] %vm2749_vm4, %v3519_v38  ;;  %3532 = vst.msk [vmem:[%s332_s25 + $0x10] sm:$0xff] %vm2749_vm4, %v3879_v16  ;;  %v3499_v45 = vpop.f32.mrb[33].mxu0 }
 0x4fa   : > { %3530 = vst.msk [vmem:[%s332_s25] sm:$0xff] %vm2749_vm4, %v3499_v45  ;;  %v3880_v62 = vpop.f32.mrb[34].mxu0 }
 0x4fb   : > { %3533 = vst.msk [vmem:[%s332_s25 + $0x18] sm:$0xff] %vm2749_vm4, %v3880_v62  ;;  %v3502_v15 = vpop.f32.mrb[35].mxu0 }
 0x4fc   : > { %3531 = vst.msk [vmem:[%s332_s25 + $0x8] sm:$0xff] %vm2749_vm4, %v3502_v15 }
 0x4fd PF: > { %s19_s30 = sadd.s32 1, %s3956_s30  }
 0x4fe   : > { %p16_p4 = scmp.ge.s32.totalorder %s19_s30, 4  }
 0x500   :  { %18 = sbr.rel (!%p16_p4) target bundleno = 1 (0x1), region = 86 }

</bundles_post_ra>
